<compile_context>
chip_gen: v6e
topology: v6e:2x2x1
jax: 0.10.0
libtpu: 0.0.40
codegen_flags: <defaults>
</compile_context>

<pallas_src>
import functools
import math

import jax
import jax.numpy as jnp
from jax.experimental import pallas as pl
from jax.experimental.pallas import tpu as pltpu

# ----------------------------- config --------------------------------------
HIDDEN = 32          # gine.gnn_hidden_dim == tokengt.gnn_hidden_dim
GIN_LAYERS = 2       # gine.gin_num_layers
TOK_LAYERS = 2       # tokengt.num_layers
NUM_HEADS = 4        # tokengt.num_heads
D_P = 8              # tokengt.d_p (node identifier dim)
FEAT_DIM = 16        # tokengt.input_feat_dim
FFN_DIM = 4 * HIDDEN
NUM_ATOM_TYPES = 16
NUM_CHIRALITY = 4
NUM_BOND_TYPES = 6   # index 4 reserved for GIN self-loop bond
NUM_BOND_DIRS = 3
MAX_POS = 32         # tokengt.max_position_embeddings
LN_EPS = 1e-5


def _round_up(v, m):
    return ((v + m - 1) // m) * m


def _ln_op(x, g, b, eps):
    """Row-wise LayerNorm on a traced [R, D] value (used inside kernels)."""
    mu = jnp.mean(x, axis=-1, keepdims=True)
    xc = x - mu
    var = jnp.mean(xc * xc, axis=-1, keepdims=True)
    return xc * jax.lax.rsqrt(var + eps) * g + b


# ------------------------- Pallas kernels ----------------------------------
def _linear_kernel(x_ref, w_ref, b_ref, o_ref):
    x = x_ref[...].astype(jnp.float32)
    y = jnp.dot(x, w_ref[...], preferred_element_type=jnp.float32) + b_ref[...]
    o_ref[...] = y.astype(o_ref.dtype)


def pallas_linear(x, w, b, block_rows=256):
    """y = x @ w + b, row-tiled (blocks are multiples of 8 sublanes)."""
    M, K = x.shape
    N = w.shape[1]
    bm = min(block_rows, _round_up(M, 8))
    Mp = _round_up(M, bm)
    xp = x if Mp == M else jnp.pad(x, ((0, Mp - M), (0, 0)))
    out = pl.pallas_call(
        _linear_kernel,
        out_shape=jax.ShapeDtypeStruct((Mp, N), jnp.float32),
        grid=(Mp // bm,),
        in_specs=[pl.BlockSpec((bm, K), lambda i: (i, 0)),
                  pl.BlockSpec((K, N), lambda i: (0, 0)),
                  pl.BlockSpec((1, N), lambda i: (0, 0))],
        out_specs=pl.BlockSpec((bm, N), lambda i: (i, 0)),
        compiler_params=pltpu.CompilerParams(dimension_semantics=("parallel",)),
    )(xp, w, b.reshape(1, N))
    return out[:M]


def _gin_mlp_kernel(x_ref, w1_ref, b1_ref, w2_ref, b2_ref, g_ref, bln_ref,
                    o_ref, *, relu_out, apply_ln, eps):
    """Fused GIN MLP: Linear -> ReLU -> Linear(+folded BN) [-> ReLU | -> LN]."""
    x = x_ref[...].astype(jnp.float32)
    h = jnp.dot(x, w1_ref[...], preferred_element_type=jnp.float32) + b1_ref[...]
    h = jnp.maximum(h, 0.0)
    h = jnp.dot(h, w2_ref[...], preferred_element_type=jnp.float32) + b2_ref[...]
    if relu_out:
        h = jnp.maximum(h, 0.0)
    if apply_ln:
        h = _ln_op(h, g_ref[...], bln_ref[...], eps)
    o_ref[...] = h.astype(o_ref.dtype)


def gin_mlp(x, w1, b1, w2, b2, ln_g, ln_b, *, relu_out, apply_ln,
            block_rows=256, eps=LN_EPS):
    M, D = x.shape
    H2 = w1.shape[1]
    bm = min(block_rows, _round_up(M, 8))
    Mp = _round_up(M, bm)
    xp = x if Mp == M else jnp.pad(x, ((0, Mp - M), (0, 0)))
    out = pl.pallas_call(
        functools.partial(_gin_mlp_kernel, relu_out=relu_out,
                          apply_ln=apply_ln, eps=eps),
        out_shape=jax.ShapeDtypeStruct((Mp, D), jnp.float32),
        grid=(Mp // bm,),
        in_specs=[pl.BlockSpec((bm, D), lambda i: (i, 0)),
                  pl.BlockSpec((D, H2), lambda i: (0, 0)),
                  pl.BlockSpec((1, H2), lambda i: (0, 0)),
                  pl.BlockSpec((H2, D), lambda i: (0, 0)),
                  pl.BlockSpec((1, D), lambda i: (0, 0)),
                  pl.BlockSpec((1, D), lambda i: (0, 0)),
                  pl.BlockSpec((1, D), lambda i: (0, 0))],
        out_specs=pl.BlockSpec((bm, D), lambda i: (i, 0)),
        compiler_params=pltpu.CompilerParams(dimension_semantics=("parallel",)),
    )(xp, w1, b1.reshape(1, -1), w2, b2.reshape(1, -1),
      ln_g.reshape(1, -1), ln_b.reshape(1, -1))
    return out[:M]


def _tokengt_encoder_kernel(tok_ref, bias_ref, pos_ref, emb_g_ref, emb_b_ref,
                            wqkv_ref, bqkv_ref, wo_ref, bo_ref,
                            ln1g_ref, ln1b_ref, wf1_ref, bf1_ref,
                            wf2_ref, bf2_ref, ln2g_ref, ln2b_ref,
                            fing_ref, finb_ref, o_ref,
                            *, num_layers, num_heads, hidden, scale, eps):
    """Whole TokenGT transformer stack for one graph (grid step = one graph)."""
    D = hidden
    dh = D // num_heads

    h = tok_ref[0].astype(jnp.float32) + pos_ref[...]          # [S, D]
    h = _ln_op(h, emb_g_ref[...], emb_b_ref[...], eps)          # embedding LN
    bias = bias_ref[0]                                          # [1, S]

    for li in range(num_layers):
        # --- fused QKV projection (single [D, 3D] matmul) ---
        qkv = jnp.dot(h, wqkv_ref[li],
                      preferred_element_type=jnp.float32) + bqkv_ref[li]  # [S,3D]
        wo = wo_ref[li]                                          # [D, D]

        # --- multi-head attention, heads split in-VMEM (no HBM transposes) ---
        attn = jnp.zeros_like(h)
        for hh in range(num_heads):
            q = qkv[:, hh * dh:(hh + 1) * dh]                    # [S, dh]
            k = qkv[:, D + hh * dh:D + (hh + 1) * dh]
            v = qkv[:, 2 * D + hh * dh:2 * D + (hh + 1) * dh]
            s = jax.lax.dot_general(q, k, (((1,), (1,)), ((), ())),
                                    preferred_element_type=jnp.float32)  # [S,S]
            s = s * scale + bias
            m = jnp.max(s, axis=-1, keepdims=True)
            p = jnp.exp(s - m)
            denom = jnp.sum(p, axis=-1, keepdims=True)
            p = p * pl.reciprocal(denom, approx=True)            # EUP slot
            ctx_h = jnp.dot(p, v, preferred_element_type=jnp.float32)  # [S,dh]
            # fold per-head O-projection into the accumulation
            attn = attn + jnp.dot(ctx_h, wo[hh * dh:(hh + 1) * dh, :],
                                  preferred_element_type=jnp.float32)
        attn = attn + bo_ref[li]

        # --- residual + LN1 ---
        h = _ln_op(h + attn, ln1g_ref[li], ln1b_ref[li], eps)

        # --- FFN (GELU) + residual + LN2 ---
        ff = jnp.dot(h, wf1_ref[li],
                     preferred_element_type=jnp.float32) + bf1_ref[li]
        ff = jax.nn.gelu(ff)
        ff = jnp.dot(ff, wf2_ref[li],
                     preferred_element_type=jnp.float32) + bf2_ref[li]
        h = _ln_op(h + ff, ln2g_ref[li], ln2b_ref[li], eps)

    # top-level layer_norm_tokengt fused as epilogue
    h = _ln_op(h, fing_ref[...], finb_ref[...], eps)
    o_ref[0] = h.astype(o_ref.dtype)


# ---------------------------- parameters ------------------------------------
def init_params(key):
    ks = iter(jax.random.split(key, 256))
    nrm = lambda shape, s=0.1: s * jax.random.normal(next(ks), shape, jnp.float32)
    zeros = lambda shape: jnp.zeros(shape, jnp.float32)
    ones = lambda shape: jnp.ones(shape, jnp.float32)

    gine = {
        "atom_emb0": nrm((NUM_ATOM_TYPES, HIDDEN)),
        "atom_emb1": nrm((NUM_CHIRALITY, HIDDEN)),
        "layers": [],
    }
    for _ in range(GIN_LAYERS):
        gine["layers"].append({
            "bond_emb0": nrm((NUM_BOND_TYPES, HIDDEN)),
            "bond_emb1": nrm((NUM_BOND_DIRS, HIDDEN)),
            "W1": nrm((HIDDEN, 2 * HIDDEN)), "b1": zeros((2 * HIDDEN,)),
            "W2": nrm((2 * HIDDEN, HIDDEN)), "b2": zeros((HIDDEN,)),
            "bn_g": ones((HIDDEN,)), "bn_b": zeros((HIDDEN,)),
            "bn_mean": zeros((HIDDEN,)), "bn_var": ones((HIDDEN,)),
        })

    tok = {
        "atom_emb0": nrm((NUM_ATOM_TYPES, FEAT_DIM)),
        "atom_emb1": nrm((NUM_CHIRALITY, FEAT_DIM)),
        "bond_emb0": nrm((NUM_BOND_TYPES, FEAT_DIM)),
        "bond_emb1": nrm((NUM_BOND_DIRS, FEAT_DIM)),
        "W_feat": nrm((FEAT_DIM, HIDDEN)), "b_feat": zeros((HIDDEN,)),
        "W_id": nrm((2 * D_P, HIDDEN)), "b_id": zeros((HIDDEN,)),
        "type_emb": nrm((2, HIDDEN)),
        "graph_token": nrm((HIDDEN,)),
        "pos_emb": nrm((MAX_POS, HIDDEN)),
        "emb_ln_g": ones((HIDDEN,)), "emb_ln_b": zeros((HIDDEN,)),
        "layers": [],
    }
    for _ in range(TOK_LAYERS):
        tok["layers"].append({
            "Wq": nrm((HIDDEN, HIDDEN)), "bq": zeros((HIDDEN,)),
            "Wk": nrm((HIDDEN, HIDDEN)), "bk": zeros((HIDDEN,)),
            "Wv": nrm((HIDDEN, HIDDEN)), "bv": zeros((HIDDEN,)),
            "Wo": nrm((HIDDEN, HIDDEN)), "bo": zeros((HIDDEN,)),
            "ln1_g": ones((HIDDEN,)), "ln1_b": zeros((HIDDEN,)),
            "Wf1": nrm((HIDDEN, FFN_DIM)), "bf1": zeros((FFN_DIM,)),
            "Wf2": nrm((FFN_DIM, HIDDEN)), "bf2": zeros((HIDDEN,)),
            "ln2_g": ones((HIDDEN,)), "ln2_b": zeros((HIDDEN,)),
        })

    top = {
        "ln_gine_g": ones((HIDDEN,)), "ln_gine_b": zeros((HIDDEN,)),
        "ln_tok_g": ones((HIDDEN,)), "ln_tok_b": zeros((HIDDEN,)),
    }
    return {"gine": gine, "tokengt": tok, "top": top}


# --------------------------- GINE branch ------------------------------------
def to_dense_batch(h, batch, num_graphs, max_nodes, fill):
    """Dense-batch [N,D] -> [B,max_nodes,D]; padded rows = `fill` (= LN(0))."""
    N = h.shape[0]
    graph_start = jnp.searchsorted(batch, jnp.arange(num_graphs))
    pos = jnp.arange(N) - graph_start[batch]
    dense = jnp.broadcast_to(fill[None, None, :],
                             (num_graphs, max_nodes, h.shape[-1])).astype(h.dtype)
    dense = dense.at[batch, pos].set(h)
    mask = jnp.zeros((num_graphs, max_nodes), bool).at[batch, pos].set(True)
    return dense, mask


def gine_forward(p, x, edge_index, edge_attr, batch, num_graphs, max_nodes,
                 fin_g, fin_b):
    N = x.shape[0]
    h = p["atom_emb0"][x[:, 0]] + p["atom_emb1"][x[:, 1]]
    # add self loops (self-loop bond type = 4, as in MoleculeSTM GINConv)
    self_idx = jnp.arange(N, dtype=jnp.int32)
    src = jnp.concatenate([edge_index[0], self_idx])
    dst = jnp.concatenate([edge_index[1], self_idx])
    sl_attr = jnp.stack([jnp.full((N,), 4, jnp.int32),
                         jnp.zeros((N,), jnp.int32)], axis=1)
    ea = jnp.concatenate([edge_attr, sl_attr], axis=0)

    L = len(p["layers"])
    for li, lp in enumerate(p["layers"]):
        e = lp["bond_emb0"][ea[:, 0]] + lp["bond_emb1"][ea[:, 1]]
        msg = h[src] + e                                     # message(x_j, e)
        agg = jax.ops.segment_sum(msg, dst, num_segments=N)
        # fold eval-mode BatchNorm into W2 / b2 (scale/shift with running stats)
        s = lp["bn_g"] * jax.lax.rsqrt(lp["bn_var"] + 1e-5)
        w2f = lp["W2"] * s[None, :]
        b2f = lp["b2"] * s + lp["bn_b"] - lp["bn_mean"] * s
        last = (li == L - 1)
        # fused: Linear -> ReLU -> Linear(+BN) -> (ReLU | final LayerNorm)
        h = gin_mlp(agg, lp["W1"], lp["b1"], w2f, b2f, fin_g, fin_b,
                    relu_out=not last, apply_ln=last)
    return to_dense_batch(h, batch, num_graphs, max_nodes, fill=fin_b)


# -------------------------- TokenGT branch ----------------------------------
def tokengt_forward(p, x, edge_index, edge_attr, batch, num_graphs,
                    node_ids, max_tokens, fin_g, fin_b):
    N = x.shape[0]
    E = edge_index.shape[1]
    D = HIDDEN
    B, S = num_graphs, max_tokens
    src, dst = edge_index[0], edge_index[1]

    nfeat = p["atom_emb0"][x[:, 0]] + p["atom_emb1"][x[:, 1]]            # [N,F]
    efeat = p["bond_emb0"][edge_attr[:, 0]] + p["bond_emb1"][edge_attr[:, 1]]

    # one fused projection for node AND edge tokens:
    #   [feat | id_pair | onehot(type)] @ [W_feat ; W_id ; type_emb] + (b_feat+b_id)
    node_in = jnp.concatenate(
        [nfeat, node_ids, node_ids,
         jnp.ones((N, 1), jnp.float32), jnp.zeros((N, 1), jnp.float32)], axis=-1)
    edge_in = jnp.concatenate(
        [efeat, node_ids[src], node_ids[dst],
         jnp.zeros((E, 1), jnp.float32), jnp.ones((E, 1), jnp.float32)], axis=-1)
    feats = jnp.concatenate([node_in, edge_in], axis=0)        # [N+E, F+2dp+2]
    W_all = jnp.concatenate([p["W_feat"], p["W_id"], p["type_emb"]], axis=0)
    b_all = p["b_feat"] + p["b_id"]
    toks = pallas_linear(feats, W_all, b_all)                  # [N+E, D]
    node_tok, edge_tok = toks[:N], toks[N:]

    # pack tokens per graph: [graph_token, node tokens..., edge tokens...]
    n_per = jax.ops.segment_sum(jnp.ones((N,), jnp.int32), batch,
                                num_segments=num_graphs)
    node_start = jnp.searchsorted(batch, jnp.arange(num_graphs))
    node_pos = 1 + jnp.arange(N) - node_start[batch]
    ebatch = batch[src]
    edge_start = jnp.searchsorted(ebatch, jnp.arange(num_graphs))
    edge_pos = 1 + n_per[ebatch] + jnp.arange(E) - edge_start[ebatch]

    tokens = jnp.zeros((B, S, D), jnp.float32)
    tokens = tokens.at[:, 0, :].set(p["graph_token"][None, :])
    tokens = tokens.at[batch, node_pos].set(node_tok)
    tokens = tokens.at[ebatch, edge_pos].set(edge_tok)
    mask = jnp.zeros((B, S), bool)
    mask = mask.at[:, 0].set(True)
    mask = mask.at[batch, node_pos].set(True)
    mask = mask.at[ebatch, edge_pos].set(True)
    bias = jnp.where(mask, 0.0, -1e9).astype(jnp.float32)[:, None, :]   # [B,1,S]

    # stack per-layer weights; QKV fused into one [D, 3D] matmul per layer
    layers = p["layers"]
    L = len(layers)
    wqkv = jnp.stack([jnp.concatenate([lp["Wq"], lp["Wk"], lp["Wv"]], axis=1)
                      for lp in layers])                                 # [L,D,3D]
    bqkv = jnp.stack([jnp.concatenate([lp["bq"], lp["bk"], lp["bv"]])
                      for lp in layers])[:, None, :]                     # [L,1,3D]
    wo = jnp.stack([lp["Wo"] for lp in layers])
    bo = jnp.stack([lp["bo"] for lp in layers])[:, None, :]
    ln1g = jnp.stack([lp["ln1_g"] for lp in layers])[:, None, :]
    ln1b = jnp.stack([lp["ln1_b"] for lp in layers])[:, None, :]
    wf1 = jnp.stack([lp["Wf1"] for lp in layers])
    bf1 = jnp.stack([lp["bf1"] for lp in layers])[:, None, :]
    wf2 = jnp.stack([lp["Wf2"] for lp in layers])
    bf2 = jnp.stack([lp["bf2"] for lp in layers])[:, None, :]
    ln2g = jnp.stack([lp["ln2_g"] for lp in layers])[:, None, :]
    ln2b = jnp.stack([lp["ln2_b"] for lp in layers])[:, None, :]

    pos = p["pos_emb"][:S]                                               # [S, D]
    scale = 1.0 / math.sqrt(D // NUM_HEADS)
    wspec2 = lambda shape: pl.BlockSpec(shape, lambda b: (0, 0))
    wspec3 = lambda shape: pl.BlockSpec(shape, lambda b: (0, 0, 0))

    out = pl.pallas_call(
        functools.partial(_tokengt_encoder_kernel, num_layers=L,
                          num_heads=NUM_HEADS, hidden=D, scale=scale,
                          eps=LN_EPS),
        out_shape=jax.ShapeDtypeStruct((B, S, D), jnp.float32),
        grid=(B,),
        in_specs=[
            pl.BlockSpec((1, S, D), lambda b: (b, 0, 0)),   # tokens
            pl.BlockSpec((1, 1, S), lambda b: (b, 0, 0)),   # mask bias
            wspec2((S, D)),                                 # pos emb
            wspec2((1, D)), wspec2((1, D)),                 # emb LN g/b
            wspec3((L, D, 3 * D)), wspec3((L, 1, 3 * D)),   # Wqkv / bqkv
            wspec3((L, D, D)), wspec3((L, 1, D)),           # Wo / bo
            wspec3((L, 1, D)), wspec3((L, 1, D)),           # ln1 g/b
            wspec3((L, D, FFN_DIM)), wspec3((L, 1, FFN_DIM)),  # Wf1 / bf1
            wspec3((L, FFN_DIM, D)), wspec3((L, 1, D)),     # Wf2 / bf2
            wspec3((L, 1, D)), wspec3((L, 1, D)),           # ln2 g/b
            wspec2((1, D)), wspec2((1, D)),                 # final LN g/b
        ],
        out_specs=pl.BlockSpec((1, S, D), lambda b: (b, 0, 0)),
        compiler_params=pltpu.CompilerParams(dimension_semantics=("parallel",)),
    )(tokens, bias, pos,
      p["emb_ln_g"].reshape(1, D), p["emb_ln_b"].reshape(1, D),
      wqkv, bqkv, wo, bo, ln1g, ln1b, wf1, bf1, wf2, bf2, ln2g, ln2b,
      fin_g.reshape(1, D), fin_b.reshape(1, D))
    return out, mask


# ------------------------------ top module ----------------------------------
def gine_tokengt_forward(params, x, edge_index, edge_attr, batch,
                         num_graphs, max_nodes, node_ids, max_tokens):
    # final layer_norm_gine / layer_norm_tokengt are fused into the branch kernels
    gine_out, gine_mask = gine_forward(
        params["gine"], x, edge_index, edge_attr, batch, num_graphs, max_nodes,
        params["top"]["ln_gine_g"], params["top"]["ln_gine_b"])
    tok_out, tok_mask = tokengt_forward(
        params["tokengt"], x, edge_index, edge_attr, batch, num_graphs,
        node_ids, max_tokens,
        params["top"]["ln_tok_g"], params["top"]["ln_tok_b"])
    output = jnp.concatenate([gine_out, tok_out], axis=1)
    mask = jnp.concatenate([gine_mask, tok_mask], axis=1)
    return output, mask


# --------------------------------- main -------------------------------------
if __name__ == "__main__":
    key = jax.random.PRNGKey(0)
    kx0, kx1, ke0, ke1, kid, kp = jax.random.split(key, 6)

    # two small molecule graphs: 5-node chain + 4-node chain (directed edges both ways)
    n0, n1 = 5, 4
    N = n0 + n1
    batch = jnp.array([0] * n0 + [1] * n1, jnp.int32)

    def chain_edges(offset, n):
        s, d = [], []
        for i in range(n - 1):
            s += [offset + i, offset + i + 1]
            d += [offset + i + 1, offset + i]
        return s, d

    s0, d0 = chain_edges(0, n0)
    s1, d1 = chain_edges(n0, n1)
    edge_index = jnp.array([s0 + s1, d0 + d1], jnp.int32)
    E = edge_index.shape[1]

    x = jnp.stack([jax.random.randint(kx0, (N,), 0, NUM_ATOM_TYPES),
                   jax.random.randint(kx1, (N,), 0, NUM_CHIRALITY)],
                  axis=1).astype(jnp.int32)
    edge_attr = jnp.stack([jax.random.randint(ke0, (E,), 0, 4),
                           jax.random.randint(ke1, (E,), 0, NUM_BOND_DIRS)],
                          axis=1).astype(jnp.int32)

    # TokenGT node identifiers (ORF-style random features, deterministic key)
    node_ids = jax.random.normal(kid, (N, D_P), jnp.float32) / math.sqrt(D_P)

    max_nodes = n0                                  # 5
    max_tokens = 1 + n0 + 2 * (n0 - 1)              # graph token + nodes + directed edges = 14

    params = init_params(kp)

    fwd = jax.jit(gine_tokengt_forward,
                  static_argnames=("num_graphs", "max_nodes", "max_tokens"))
    out, mask = fwd(params, x, edge_index, edge_attr, batch,
                    num_graphs=2, max_nodes=max_nodes,
                    node_ids=node_ids, max_tokens=max_tokens)
    out = jax.block_until_ready(out)
    mask = jax.block_until_ready(mask)
    assert out.shape == (2, max_nodes + max_tokens, HIDDEN)
    assert mask.shape == (2, max_nodes + max_tokens)
    assert bool(jnp.isfinite(out).all())
    print("KERNEL_OK")
</pallas_src>

<mosaic_0001>
module attributes {stable_mosaic.version = 11 : i64} {
  func.func @_linear_kernel(%arg0: i32, %arg1: memref<24x34xf32, #tpu.memory_space<vmem>>, %arg2: memref<34x32xf32, #tpu.memory_space<vmem>>, %arg3: memref<1x32xf32, #tpu.memory_space<vmem>>, %arg4: memref<24x32xf32, #tpu.memory_space<vmem>>) attributes {dimension_semantics = [#tpu.dimension_semantics<parallel>], iteration_bounds = array<i64: 1>, scalar_prefetch = 0 : i64, scratch_operands = 0 : i64, tpu.core_type = #tpu.core_type<tc>, window_params = [{transform_indices = @transform_0, window_bounds = array<i64: 24, 34>}, {pipeline_mode = #tpu.pipeline_mode<synchronous>, transform_indices = @transform_1, window_bounds = array<i64: 34, 32>}, {pipeline_mode = #tpu.pipeline_mode<synchronous>, transform_indices = @transform_2, window_bounds = array<i64: 1, 32>}, {transform_indices = @transform_3, window_bounds = array<i64: 24, 32>}]} {
    %c0 = arith.constant 0 : index
    %c0_0 = arith.constant 0 : index
    %0 = vector.load %arg1[%c0, %c0_0] : memref<24x34xf32, #tpu.memory_space<vmem>>, vector<24x34xf32>
    %c0_1 = arith.constant 0 : index
    %c0_2 = arith.constant 0 : index
    %1 = vector.load %arg2[%c0_1, %c0_2] : memref<34x32xf32, #tpu.memory_space<vmem>>, vector<34x32xf32>
    %cst = arith.constant dense<0.000000e+00> : vector<24x32xf32>
    %2 = tpu.matmul %0, %1, %cst {dimension_numbers = #tpu.dot_dimension_numbers<[1], [0], [0], [1], [0, 0, 1, 1], [], []>} : vector<24x34xf32>, vector<34x32xf32>, vector<24x32xf32> -> vector<24x32xf32>
    %c0_3 = arith.constant 0 : index
    %c0_4 = arith.constant 0 : index
    %3 = vector.load %arg3[%c0_3, %c0_4] : memref<1x32xf32, #tpu.memory_space<vmem>>, vector<1x32xf32>
    %4 = vector.broadcast %3 : vector<1x32xf32> to vector<24x32xf32>
    %5 = arith.addf %2, %4 : vector<24x32xf32>
    %c0_5 = arith.constant 0 : index
    %c0_6 = arith.constant 0 : index
    %6 = vector.load %arg4[%c0_5, %c0_6] : memref<24x32xf32, #tpu.memory_space<vmem>>, vector<24x32xf32>
    tpu.vector_store %arg4[%c0_5, %c0_6], %5 {strides = array<i32>} : memref<24x32xf32, #tpu.memory_space<vmem>>, vector<24x32xf32>,
    return
  }
  func.func @transform_0(%arg0: i32) -> (i32, i32) {
    %c0_i32 = arith.constant 0 : i32
    %c0_i32_0 = arith.constant 0 : i32
    return %arg0, %c0_i32 : i32, i32
  }
  func.func @transform_1(%arg0: i32) -> (i32, i32) {
    %c0_i32 = arith.constant 0 : i32
    %c0_i32_0 = arith.constant 0 : i32
    %c0_i32_1 = arith.constant 0 : i32
    return %c0_i32, %c0_i32_0 : i32, i32
  }
  func.func @transform_2(%arg0: i32) -> (i32, i32) {
    %c0_i32 = arith.constant 0 : i32
    %c0_i32_0 = arith.constant 0 : i32
    %c0_i32_1 = arith.constant 0 : i32
    return %c0_i32, %c0_i32_0 : i32, i32
  }
  func.func @transform_3(%arg0: i32) -> (i32, i32) {
    %c0_i32 = arith.constant 0 : i32
    %c0_i32_0 = arith.constant 0 : i32
    return %arg0, %c0_i32 : i32, i32
  }
}

module attributes {stable_mosaic.version = 11 : i64} {
  func.func @_tokengt_encoder_kernel(%arg0: i32, %arg1: memref<1x14x32xf32, #tpu.memory_space<vmem>>, %arg2: memref<1x1x14xf32, #tpu.memory_space<vmem>>, %arg3: memref<14x32xf32, #tpu.memory_space<vmem>>, %arg4: memref<1x32xf32, #tpu.memory_space<vmem>>, %arg5: memref<1x32xf32, #tpu.memory_space<vmem>>, %arg6: memref<2x32x96xf32, #tpu.memory_space<vmem>>, %arg7: memref<2x1x96xf32, #tpu.memory_space<vmem>>, %arg8: memref<2x32x32xf32, #tpu.memory_space<vmem>>, %arg9: memref<2x1x32xf32, #tpu.memory_space<vmem>>, %arg10: memref<2x1x32xf32, #tpu.memory_space<vmem>>, %arg11: memref<2x1x32xf32, #tpu.memory_space<vmem>>, %arg12: memref<2x32x128xf32, #tpu.memory_space<vmem>>, %arg13: memref<2x1x128xf32, #tpu.memory_space<vmem>>, %arg14: memref<2x128x32xf32, #tpu.memory_space<vmem>>, %arg15: memref<2x1x32xf32, #tpu.memory_space<vmem>>, %arg16: memref<2x1x32xf32, #tpu.memory_space<vmem>>, %arg17: memref<2x1x32xf32, #tpu.memory_space<vmem>>, %arg18: memref<1x32xf32, #tpu.memory_space<vmem>>, %arg19: memref<1x32xf32, #tpu.memory_space<vmem>>, %arg20: memref<1x14x32xf32, #tpu.memory_space<vmem>>) attributes {dimension_semantics = [#tpu.dimension_semantics<parallel>], iteration_bounds = array<i64: 2>, scalar_prefetch = 0 : i64, scratch_operands = 0 : i64, tpu.core_type = #tpu.core_type<tc>, window_params = [{transform_indices = @transform_0, window_bounds = array<i64: 1, 14, 32>}, {transform_indices = @transform_1, window_bounds = array<i64: 1, 1, 14>}, {pipeline_mode = #tpu.pipeline_mode<synchronous>, transform_indices = @transform_2, window_bounds = array<i64: 14, 32>}, {pipeline_mode = #tpu.pipeline_mode<synchronous>, transform_indices = @transform_3, window_bounds = array<i64: 1, 32>}, {pipeline_mode = #tpu.pipeline_mode<synchronous>, transform_indices = @transform_4, window_bounds = array<i64: 1, 32>}, {pipeline_mode = #tpu.pipeline_mode<synchronous>, transform_indices = @transform_5, window_bounds = array<i64: 2, 32, 96>}, {pipeline_mode = #tpu.pipeline_mode<synchronous>, transform_indices = @transform_6, window_bounds = array<i64: 2, 1, 96>}, {pipeline_mode = #tpu.pipeline_mode<synchronous>, transform_indices = @transform_7, window_bounds = array<i64: 2, 32, 32>}, {pipeline_mode = #tpu.pipeline_mode<synchronous>, transform_indices = @transform_8, window_bounds = array<i64: 2, 1, 32>}, {pipeline_mode = #tpu.pipeline_mode<synchronous>, transform_indices = @transform_9, window_bounds = array<i64: 2, 1, 32>}, {pipeline_mode = #tpu.pipeline_mode<synchronous>, transform_indices = @transform_10, window_bounds = array<i64: 2, 1, 32>}, {pipeline_mode = #tpu.pipeline_mode<synchronous>, transform_indices = @transform_11, window_bounds = array<i64: 2, 32, 128>}, {pipeline_mode = #tpu.pipeline_mode<synchronous>, transform_indices = @transform_12, window_bounds = array<i64: 2, 1, 128>}, {pipeline_mode = #tpu.pipeline_mode<synchronous>, transform_indices = @transform_13, window_bounds = array<i64: 2, 128, 32>}, {pipeline_mode = #tpu.pipeline_mode<synchronous>, transform_indices = @transform_14, window_bounds = array<i64: 2, 1, 32>}, {pipeline_mode = #tpu.pipeline_mode<synchronous>, transform_indices = @transform_15, window_bounds = array<i64: 2, 1, 32>}, {pipeline_mode = #tpu.pipeline_mode<synchronous>, transform_indices = @transform_16, window_bounds = array<i64: 2, 1, 32>}, {pipeline_mode = #tpu.pipeline_mode<synchronous>, transform_indices = @transform_17, window_bounds = array<i64: 1, 32>}, {pipeline_mode = #tpu.pipeline_mode<synchronous>, transform_indices = @transform_18, window_bounds = array<i64: 1, 32>}, {transform_indices = @transform_19, window_bounds = array<i64: 1, 14, 32>}]} {
    %c0 = arith.constant 0 : index
    %c0_0 = arith.constant 0 : index
    %c0_1 = arith.constant 0 : index
    %0 = vector.load %arg1[%c0, %c0_0, %c0_1] : memref<1x14x32xf32, #tpu.memory_space<vmem>>, vector<1x14x32xf32>
    %1 = vector.shape_cast %0 : vector<1x14x32xf32> to vector<14x32xf32>
    %c0_2 = arith.constant 0 : index
    %c0_3 = arith.constant 0 : index
    %2 = vector.load %arg3[%c0_2, %c0_3] : memref<14x32xf32, #tpu.memory_space<vmem>>, vector<14x32xf32>
    %3 = arith.addf %1, %2 : vector<14x32xf32>
    %c0_4 = arith.constant 0 : index
    %c0_5 = arith.constant 0 : index
    %4 = vector.load %arg4[%c0_4, %c0_5] : memref<1x32xf32, #tpu.memory_space<vmem>>, vector<1x32xf32>
    %c0_6 = arith.constant 0 : index
    %c0_7 = arith.constant 0 : index
    %5 = vector.load %arg5[%c0_6, %c0_7] : memref<1x32xf32, #tpu.memory_space<vmem>>, vector<1x32xf32>
    %cst = arith.constant dense<0.000000e+00> : vector<14xf32>
    %6 = vector.multi_reduction <add>, %3, %cst [1] : vector<14x32xf32> to vector<14xf32>
    %7 = vector.shape_cast %6 : vector<14xf32> to vector<14x1xf32>
    %cst_8 = arith.constant 3.200000e+01 : f32
    %8 = vector.broadcast %cst_8 : f32 to vector<14x1xf32>
    %9 = arith.divf %7, %8 : vector<14x1xf32>
    %10 = vector.broadcast %9 : vector<14x1xf32> to vector<14x32xf32>
    %11 = arith.subf %3, %10 : vector<14x32xf32>
    %12 = arith.mulf %11, %11 : vector<14x32xf32>
    %cst_9 = arith.constant dense<0.000000e+00> : vector<14xf32>
    %13 = vector.multi_reduction <add>, %12, %cst_9 [1] : vector<14x32xf32> to vector<14xf32>
    %14 = vector.shape_cast %13 : vector<14xf32> to vector<14x1xf32>
    %cst_10 = arith.constant 3.200000e+01 : f32
    %15 = vector.broadcast %cst_10 : f32 to vector<14x1xf32>
    %16 = arith.divf %14, %15 : vector<14x1xf32>
    %cst_11 = arith.constant 9.99999974E-6 : f32
    %17 = vector.broadcast %cst_11 : f32 to vector<14x1xf32>
    %18 = arith.addf %16, %17 : vector<14x1xf32>
    %19 = math.rsqrt %18 : vector<14x1xf32>
    %20 = vector.broadcast %19 : vector<14x1xf32> to vector<14x32xf32>
    %21 = arith.mulf %11, %20 : vector<14x32xf32>
    %22 = vector.broadcast %4 : vector<1x32xf32> to vector<14x32xf32>
    %23 = arith.mulf %21, %22 : vector<14x32xf32>
    %24 = vector.broadcast %5 : vector<1x32xf32> to vector<14x32xf32>
    %25 = arith.addf %23, %24 : vector<14x32xf32>
    %c0_12 = arith.constant 0 : index
    %c0_13 = arith.constant 0 : index
    %c0_14 = arith.constant 0 : index
    %26 = vector.load %arg2[%c0_12, %c0_13, %c0_14] : memref<1x1x14xf32, #tpu.memory_space<vmem>>, vector<1x1x14xf32>
    %27 = vector.shape_cast %26 : vector<1x1x14xf32> to vector<1x14xf32>
    %c0_15 = arith.constant 0 : index
    %c0_16 = arith.constant 0 : index
    %c0_17 = arith.constant 0 : index
    %28 = vector.load %arg6[%c0_15, %c0_16, %c0_17] : memref<2x32x96xf32, #tpu.memory_space<vmem>>, vector<1x32x96xf32>
    %29 = vector.shape_cast %28 : vector<1x32x96xf32> to vector<32x96xf32>
    %cst_18 = arith.constant dense<0.000000e+00> : vector<14x96xf32>
    %30 = tpu.matmul %25, %29, %cst_18 {dimension_numbers = #tpu.dot_dimension_numbers<[1], [0], [0], [1], [0, 0, 1, 1], [], []>} : vector<14x32xf32>, vector<32x96xf32>, vector<14x96xf32> -> vector<14x96xf32>
    %c0_19 = arith.constant 0 : index
    %c0_20 = arith.constant 0 : index
    %c0_21 = arith.constant 0 : index
    %31 = vector.load %arg7[%c0_19, %c0_20, %c0_21] : memref<2x1x96xf32, #tpu.memory_space<vmem>>, vector<1x1x96xf32>
    %32 = vector.shape_cast %31 : vector<1x1x96xf32> to vector<1x96xf32>
    %33 = vector.broadcast %32 : vector<1x96xf32> to vector<14x96xf32>
    %34 = arith.addf %30, %33 : vector<14x96xf32>
    %c0_22 = arith.constant 0 : index
    %c0_23 = arith.constant 0 : index
    %c0_24 = arith.constant 0 : index
    %35 = vector.load %arg8[%c0_22, %c0_23, %c0_24] : memref<2x32x32xf32, #tpu.memory_space<vmem>>, vector<1x32x32xf32>
    %36 = vector.shape_cast %35 : vector<1x32x32xf32> to vector<32x32xf32>
    %cst_25 = arith.constant 0.000000e+00 : f32
    %37 = vector.broadcast %cst_25 : f32 to vector<14x32xf32>
    %38 = vector.extract_strided_slice %34 {offsets = [0, 0], sizes = [14, 8], strides = [1, 1]} : vector<14x96xf32> to vector<14x8xf32>
    %39 = vector.extract_strided_slice %34 {offsets = [0, 32], sizes = [14, 8], strides = [1, 1]} : vector<14x96xf32> to vector<14x8xf32>
    %40 = vector.extract_strided_slice %34 {offsets = [0, 64], sizes = [14, 8], strides = [1, 1]} : vector<14x96xf32> to vector<14x8xf32>
    %cst_26 = arith.constant dense<0.000000e+00> : vector<14x14xf32>
    %41 = tpu.matmul %38, %39, %cst_26 {dimension_numbers = #tpu.dot_dimension_numbers<[1], [1], [0], [0], [0, 0, 1, 0], [], []>} : vector<14x8xf32>, vector<14x8xf32>, vector<14x14xf32> -> vector<14x14xf32>
    %cst_27 = arith.constant 0.353553385 : f32
    %42 = vector.broadcast %cst_27 : f32 to vector<14x14xf32>
    %43 = arith.mulf %41, %42 : vector<14x14xf32>
    %44 = vector.broadcast %27 : vector<1x14xf32> to vector<14x14xf32>
    %45 = arith.addf %43, %44 : vector<14x14xf32>
    %cst_28 = arith.constant dense<0xFF800000> : vector<14xf32>
    %46 = vector.multi_reduction <maximumf>, %45, %cst_28 [1] : vector<14x14xf32> to vector<14xf32>
    %47 = vector.shape_cast %46 : vector<14xf32> to vector<14x1xf32>
    %48 = vector.broadcast %47 : vector<14x1xf32> to vector<14x14xf32>
    %49 = arith.subf %45, %48 : vector<14x14xf32>
    %50 = math.exp %49 : vector<14x14xf32>
    %cst_29 = arith.constant dense<0.000000e+00> : vector<14xf32>
    %51 = vector.multi_reduction <add>, %50, %cst_29 [1] : vector<14x14xf32> to vector<14xf32>
    %52 = vector.shape_cast %51 : vector<14xf32> to vector<14x1xf32>
    %53 = tpu.reciprocal %52 {approx = true} : vector<14x1xf32> -> vector<14x1xf32>
    %54 = vector.broadcast %53 : vector<14x1xf32> to vector<14x14xf32>
    %55 = arith.mulf %50, %54 : vector<14x14xf32>
    %cst_30 = arith.constant dense<0.000000e+00> : vector<14x8xf32>
    %56 = tpu.matmul %55, %40, %cst_30 {dimension_numbers = #tpu.dot_dimension_numbers<[1], [0], [0], [1], [0, 0, 1, 1], [], []>} : vector<14x14xf32>, vector<14x8xf32>, vector<14x8xf32> -> vector<14x8xf32>
    %57 = vector.extract_strided_slice %36 {offsets = [0, 0], sizes = [8, 32], strides = [1, 1]} : vector<32x32xf32> to vector<8x32xf32>
    %cst_31 = arith.constant dense<0.000000e+00> : vector<14x32xf32>
    %58 = tpu.matmul %56, %57, %cst_31 {dimension_numbers = #tpu.dot_dimension_numbers<[1], [0], [0], [1], [0, 0, 1, 1], [], []>} : vector<14x8xf32>, vector<8x32xf32>, vector<14x32xf32> -> vector<14x32xf32>
    %59 = arith.addf %37, %58 : vector<14x32xf32>
    %60 = vector.extract_strided_slice %34 {offsets = [0, 8], sizes = [14, 8], strides = [1, 1]} : vector<14x96xf32> to vector<14x8xf32>
    %61 = vector.extract_strided_slice %34 {offsets = [0, 40], sizes = [14, 8], strides = [1, 1]} : vector<14x96xf32> to vector<14x8xf32>
    %62 = vector.extract_strided_slice %34 {offsets = [0, 72], sizes = [14, 8], strides = [1, 1]} : vector<14x96xf32> to vector<14x8xf32>
    %cst_32 = arith.constant dense<0.000000e+00> : vector<14x14xf32>
    %63 = tpu.matmul %60, %61, %cst_32 {dimension_numbers = #tpu.dot_dimension_numbers<[1], [1], [0], [0], [0, 0, 1, 0], [], []>} : vector<14x8xf32>, vector<14x8xf32>, vector<14x14xf32> -> vector<14x14xf32>
    %cst_33 = arith.constant 0.353553385 : f32
    %64 = vector.broadcast %cst_33 : f32 to vector<14x14xf32>
    %65 = arith.mulf %63, %64 : vector<14x14xf32>
    %66 = vector.broadcast %27 : vector<1x14xf32> to vector<14x14xf32>
    %67 = arith.addf %65, %66 : vector<14x14xf32>
    %cst_34 = arith.constant dense<0xFF800000> : vector<14xf32>
    %68 = vector.multi_reduction <maximumf>, %67, %cst_34 [1] : vector<14x14xf32> to vector<14xf32>
    %69 = vector.shape_cast %68 : vector<14xf32> to vector<14x1xf32>
    %70 = vector.broadcast %69 : vector<14x1xf32> to vector<14x14xf32>
    %71 = arith.subf %67, %70 : vector<14x14xf32>
    %72 = math.exp %71 : vector<14x14xf32>
    %cst_35 = arith.constant dense<0.000000e+00> : vector<14xf32>
    %73 = vector.multi_reduction <add>, %72, %cst_35 [1] : vector<14x14xf32> to vector<14xf32>
    %74 = vector.shape_cast %73 : vector<14xf32> to vector<14x1xf32>
    %75 = tpu.reciprocal %74 {approx = true} : vector<14x1xf32> -> vector<14x1xf32>
    %76 = vector.broadcast %75 : vector<14x1xf32> to vector<14x14xf32>
    %77 = arith.mulf %72, %76 : vector<14x14xf32>
    %cst_36 = arith.constant dense<0.000000e+00> : vector<14x8xf32>
    %78 = tpu.matmul %77, %62, %cst_36 {dimension_numbers = #tpu.dot_dimension_numbers<[1], [0], [0], [1], [0, 0, 1, 1], [], []>} : vector<14x14xf32>, vector<14x8xf32>, vector<14x8xf32> -> vector<14x8xf32>
    %79 = vector.extract_strided_slice %36 {offsets = [8, 0], sizes = [8, 32], strides = [1, 1]} : vector<32x32xf32> to vector<8x32xf32>
    %cst_37 = arith.constant dense<0.000000e+00> : vector<14x32xf32>
    %80 = tpu.matmul %78, %79, %cst_37 {dimension_numbers = #tpu.dot_dimension_numbers<[1], [0], [0], [1], [0, 0, 1, 1], [], []>} : vector<14x8xf32>, vector<8x32xf32>, vector<14x32xf32> -> vector<14x32xf32>
    %81 = arith.addf %59, %80 : vector<14x32xf32>
    %82 = vector.extract_strided_slice %34 {offsets = [0, 16], sizes = [14, 8], strides = [1, 1]} : vector<14x96xf32> to vector<14x8xf32>
    %83 = vector.extract_strided_slice %34 {offsets = [0, 48], sizes = [14, 8], strides = [1, 1]} : vector<14x96xf32> to vector<14x8xf32>
    %84 = vector.extract_strided_slice %34 {offsets = [0, 80], sizes = [14, 8], strides = [1, 1]} : vector<14x96xf32> to vector<14x8xf32>
    %cst_38 = arith.constant dense<0.000000e+00> : vector<14x14xf32>
    %85 = tpu.matmul %82, %83, %cst_38 {dimension_numbers = #tpu.dot_dimension_numbers<[1], [1], [0], [0], [0, 0, 1, 0], [], []>} : vector<14x8xf32>, vector<14x8xf32>, vector<14x14xf32> -> vector<14x14xf32>
    %cst_39 = arith.constant 0.353553385 : f32
    %86 = vector.broadcast %cst_39 : f32 to vector<14x14xf32>
    %87 = arith.mulf %85, %86 : vector<14x14xf32>
    %88 = vector.broadcast %27 : vector<1x14xf32> to vector<14x14xf32>
    %89 = arith.addf %87, %88 : vector<14x14xf32>
    %cst_40 = arith.constant dense<0xFF800000> : vector<14xf32>
    %90 = vector.multi_reduction <maximumf>, %89, %cst_40 [1] : vector<14x14xf32> to vector<14xf32>
    %91 = vector.shape_cast %90 : vector<14xf32> to vector<14x1xf32>
    %92 = vector.broadcast %91 : vector<14x1xf32> to vector<14x14xf32>
    %93 = arith.subf %89, %92 : vector<14x14xf32>
    %94 = math.exp %93 : vector<14x14xf32>
    %cst_41 = arith.constant dense<0.000000e+00> : vector<14xf32>
    %95 = vector.multi_reduction <add>, %94, %cst_41 [1] : vector<14x14xf32> to vector<14xf32>
    %96 = vector.shape_cast %95 : vector<14xf32> to vector<14x1xf32>
    %97 = tpu.reciprocal %96 {approx = true} : vector<14x1xf32> -> vector<14x1xf32>
    %98 = vector.broadcast %97 : vector<14x1xf32> to vector<14x14xf32>
    %99 = arith.mulf %94, %98 : vector<14x14xf32>
    %cst_42 = arith.constant dense<0.000000e+00> : vector<14x8xf32>
    %100 = tpu.matmul %99, %84, %cst_42 {dimension_numbers = #tpu.dot_dimension_numbers<[1], [0], [0], [1], [0, 0, 1, 1], [], []>} : vector<14x14xf32>, vector<14x8xf32>, vector<14x8xf32> -> vector<14x8xf32>
    %101 = vector.extract_strided_slice %36 {offsets = [16, 0], sizes = [8, 32], strides = [1, 1]} : vector<32x32xf32> to vector<8x32xf32>
    %cst_43 = arith.constant dense<0.000000e+00> : vector<14x32xf32>
    %102 = tpu.matmul %100, %101, %cst_43 {dimension_numbers = #tpu.dot_dimension_numbers<[1], [0], [0], [1], [0, 0, 1, 1], [], []>} : vector<14x8xf32>, vector<8x32xf32>, vector<14x32xf32> -> vector<14x32xf32>
    %103 = arith.addf %81, %102 : vector<14x32xf32>
    %104 = vector.extract_strided_slice %34 {offsets = [0, 24], sizes = [14, 8], strides = [1, 1]} : vector<14x96xf32> to vector<14x8xf32>
    %105 = vector.extract_strided_slice %34 {offsets = [0, 56], sizes = [14, 8], strides = [1, 1]} : vector<14x96xf32> to vector<14x8xf32>
    %106 = vector.extract_strided_slice %34 {offsets = [0, 88], sizes = [14, 8], strides = [1, 1]} : vector<14x96xf32> to vector<14x8xf32>
    %cst_44 = arith.constant dense<0.000000e+00> : vector<14x14xf32>
    %107 = tpu.matmul %104, %105, %cst_44 {dimension_numbers = #tpu.dot_dimension_numbers<[1], [1], [0], [0], [0, 0, 1, 0], [], []>} : vector<14x8xf32>, vector<14x8xf32>, vector<14x14xf32> -> vector<14x14xf32>
    %cst_45 = arith.constant 0.353553385 : f32
    %108 = vector.broadcast %cst_45 : f32 to vector<14x14xf32>
    %109 = arith.mulf %107, %108 : vector<14x14xf32>
    %110 = vector.broadcast %27 : vector<1x14xf32> to vector<14x14xf32>
    %111 = arith.addf %109, %110 : vector<14x14xf32>
    %cst_46 = arith.constant dense<0xFF800000> : vector<14xf32>
    %112 = vector.multi_reduction <maximumf>, %111, %cst_46 [1] : vector<14x14xf32> to vector<14xf32>
    %113 = vector.shape_cast %112 : vector<14xf32> to vector<14x1xf32>
    %114 = vector.broadcast %113 : vector<14x1xf32> to vector<14x14xf32>
    %115 = arith.subf %111, %114 : vector<14x14xf32>
    %116 = math.exp %115 : vector<14x14xf32>
    %cst_47 = arith.constant dense<0.000000e+00> : vector<14xf32>
    %117 = vector.multi_reduction <add>, %116, %cst_47 [1] : vector<14x14xf32> to vector<14xf32>
    %118 = vector.shape_cast %117 : vector<14xf32> to vector<14x1xf32>
    %119 = tpu.reciprocal %118 {approx = true} : vector<14x1xf32> -> vector<14x1xf32>
    %120 = vector.broadcast %119 : vector<14x1xf32> to vector<14x14xf32>
    %121 = arith.mulf %116, %120 : vector<14x14xf32>
    %cst_48 = arith.constant dense<0.000000e+00> : vector<14x8xf32>
    %122 = tpu.matmul %121, %106, %cst_48 {dimension_numbers = #tpu.dot_dimension_numbers<[1], [0], [0], [1], [0, 0, 1, 1], [], []>} : vector<14x14xf32>, vector<14x8xf32>, vector<14x8xf32> -> vector<14x8xf32>
    %123 = vector.extract_strided_slice %36 {offsets = [24, 0], sizes = [8, 32], strides = [1, 1]} : vector<32x32xf32> to vector<8x32xf32>
    %cst_49 = arith.constant dense<0.000000e+00> : vector<14x32xf32>
    %124 = tpu.matmul %122, %123, %cst_49 {dimension_numbers = #tpu.dot_dimension_numbers<[1], [0], [0], [1], [0, 0, 1, 1], [], []>} : vector<14x8xf32>, vector<8x32xf32>, vector<14x32xf32> -> vector<14x32xf32>
    %125 = arith.addf %103, %124 : vector<14x32xf32>
    %c0_50 = arith.constant 0 : index
    %c0_51 = arith.constant 0 : index
    %c0_52 = arith.constant 0 : index
    %126 = vector.load %arg9[%c0_50, %c0_51, %c0_52] : memref<2x1x32xf32, #tpu.memory_space<vmem>>, vector<1x1x32xf32>
    %127 = vector.shape_cast %126 : vector<1x1x32xf32> to vector<1x32xf32>
    %128 = vector.broadcast %127 : vector<1x32xf32> to vector<14x32xf32>
    %129 = arith.addf %125, %128 : vector<14x32xf32>
    %130 = arith.addf %25, %129 : vector<14x32xf32>
    %c0_53 = arith.constant 0 : index
    %c0_54 = arith.constant 0 : index
    %c0_55 = arith.constant 0 : index
    %131 = vector.load %arg10[%c0_53, %c0_54, %c0_55] : memref<2x1x32xf32, #tpu.memory_space<vmem>>, vector<1x1x32xf32>
    %132 = vector.shape_cast %131 : vector<1x1x32xf32> to vector<1x32xf32>
    %c0_56 = arith.constant 0 : index
    %c0_57 = arith.constant 0 : index
    %c0_58 = arith.constant 0 : index
    %133 = vector.load %arg11[%c0_56, %c0_57, %c0_58] : memref<2x1x32xf32, #tpu.memory_space<vmem>>, vector<1x1x32xf32>
    %134 = vector.shape_cast %133 : vector<1x1x32xf32> to vector<1x32xf32>
    %cst_59 = arith.constant dense<0.000000e+00> : vector<14xf32>
    %135 = vector.multi_reduction <add>, %130, %cst_59 [1] : vector<14x32xf32> to vector<14xf32>
    %136 = vector.shape_cast %135 : vector<14xf32> to vector<14x1xf32>
    %cst_60 = arith.constant 3.200000e+01 : f32
    %137 = vector.broadcast %cst_60 : f32 to vector<14x1xf32>
    %138 = arith.divf %136, %137 : vector<14x1xf32>
    %139 = vector.broadcast %138 : vector<14x1xf32> to vector<14x32xf32>
    %140 = arith.subf %130, %139 : vector<14x32xf32>
    %141 = arith.mulf %140, %140 : vector<14x32xf32>
    %cst_61 = arith.constant dense<0.000000e+00> : vector<14xf32>
    %142 = vector.multi_reduction <add>, %141, %cst_61 [1] : vector<14x32xf32> to vector<14xf32>
    %143 = vector.shape_cast %142 : vector<14xf32> to vector<14x1xf32>
    %cst_62 = arith.constant 3.200000e+01 : f32
    %144 = vector.broadcast %cst_62 : f32 to vector<14x1xf32>
    %145 = arith.divf %143, %144 : vector<14x1xf32>
    %cst_63 = arith.constant 9.99999974E-6 : f32
    %146 = vector.broadcast %cst_63 : f32 to vector<14x1xf32>
    %147 = arith.addf %145, %146 : vector<14x1xf32>
    %148 = math.rsqrt %147 : vector<14x1xf32>
    %149 = vector.broadcast %148 : vector<14x1xf32> to vector<14x32xf32>
    %150 = arith.mulf %140, %149 : vector<14x32xf32>
    %151 = vector.broadcast %132 : vector<1x32xf32> to vector<14x32xf32>
    %152 = arith.mulf %150, %151 : vector<14x32xf32>
    %153 = vector.broadcast %134 : vector<1x32xf32> to vector<14x32xf32>
    %154 = arith.addf %152, %153 : vector<14x32xf32>
    %c0_64 = arith.constant 0 : index
    %c0_65 = arith.constant 0 : index
    %c0_66 = arith.constant 0 : index
    %155 = vector.load %arg12[%c0_64, %c0_65, %c0_66] : memref<2x32x128xf32, #tpu.memory_space<vmem>>, vector<1x32x128xf32>
    %156 = vector.shape_cast %155 : vector<1x32x128xf32> to vector<32x128xf32>
    %cst_67 = arith.constant dense<0.000000e+00> : vector<14x128xf32>
    %157 = tpu.matmul %154, %156, %cst_67 {dimension_numbers = #tpu.dot_dimension_numbers<[1], [0], [0], [1], [0, 0, 1, 1], [], []>} : vector<14x32xf32>, vector<32x128xf32>, vector<14x128xf32> -> vector<14x128xf32>
    %c0_68 = arith.constant 0 : index
    %c0_69 = arith.constant 0 : index
    %c0_70 = arith.constant 0 : index
    %158 = vector.load %arg13[%c0_68, %c0_69, %c0_70] : memref<2x1x128xf32, #tpu.memory_space<vmem>>, vector<1x1x128xf32>
    %159 = vector.shape_cast %158 : vector<1x1x128xf32> to vector<1x128xf32>
    %160 = vector.broadcast %159 : vector<1x128xf32> to vector<14x128xf32>
    %161 = arith.addf %157, %160 : vector<14x128xf32>
    %162 = arith.mulf %161, %161 : vector<14x128xf32>
    %163 = arith.mulf %161, %162 : vector<14x128xf32>
    %cst_71 = arith.constant 4.471500e-02 : f32
    %164 = vector.broadcast %cst_71 : f32 to vector<14x128xf32>
    %165 = arith.mulf %164, %163 : vector<14x128xf32>
    %166 = arith.addf %161, %165 : vector<14x128xf32>
    %cst_72 = arith.constant 0.797884583 : f32
    %167 = vector.broadcast %cst_72 : f32 to vector<14x128xf32>
    %168 = arith.mulf %167, %166 : vector<14x128xf32>
    %169 = math.tanh %168 : vector<14x128xf32>
    %cst_73 = arith.constant 1.000000e+00 : f32
    %170 = vector.broadcast %cst_73 : f32 to vector<14x128xf32>
    %171 = arith.addf %170, %169 : vector<14x128xf32>
    %cst_74 = arith.constant 5.000000e-01 : f32
    %172 = vector.broadcast %cst_74 : f32 to vector<14x128xf32>
    %173 = arith.mulf %172, %171 : vector<14x128xf32>
    %174 = arith.mulf %161, %173 : vector<14x128xf32>
    %c0_75 = arith.constant 0 : index
    %c0_76 = arith.constant 0 : index
    %c0_77 = arith.constant 0 : index
    %175 = vector.load %arg14[%c0_75, %c0_76, %c0_77] : memref<2x128x32xf32, #tpu.memory_space<vmem>>, vector<1x128x32xf32>
    %176 = vector.shape_cast %175 : vector<1x128x32xf32> to vector<128x32xf32>
    %cst_78 = arith.constant dense<0.000000e+00> : vector<14x32xf32>
    %177 = tpu.matmul %174, %176, %cst_78 {dimension_numbers = #tpu.dot_dimension_numbers<[1], [0], [0], [1], [0, 0, 1, 1], [], []>} : vector<14x128xf32>, vector<128x32xf32>, vector<14x32xf32> -> vector<14x32xf32>
    %c0_79 = arith.constant 0 : index
    %c0_80 = arith.constant 0 : index
    %c0_81 = arith.constant 0 : index
    %178 = vector.load %arg15[%c0_79, %c0_80, %c0_81] : memref<2x1x32xf32, #tpu.memory_space<vmem>>, vector<1x1x32xf32>
    %179 = vector.shape_cast %178 : vector<1x1x32xf32> to vector<1x32xf32>
    %180 = vector.broadcast %179 : vector<1x32xf32> to vector<14x32xf32>
    %181 = arith.addf %177, %180 : vector<14x32xf32>
    %182 = arith.addf %154, %181 : vector<14x32xf32>
    %c0_82 = arith.constant 0 : index
    %c0_83 = arith.constant 0 : index
    %c0_84 = arith.constant 0 : index
    %183 = vector.load %arg16[%c0_82, %c0_83, %c0_84] : memref<2x1x32xf32, #tpu.memory_space<vmem>>, vector<1x1x32xf32>
    %184 = vector.shape_cast %183 : vector<1x1x32xf32> to vector<1x32xf32>
    %c0_85 = arith.constant 0 : index
    %c0_86 = arith.constant 0 : index
    %c0_87 = arith.constant 0 : index
    %185 = vector.load %arg17[%c0_85, %c0_86, %c0_87] : memref<2x1x32xf32, #tpu.memory_space<vmem>>, vector<1x1x32xf32>
    %186 = vector.shape_cast %185 : vector<1x1x32xf32> to vector<1x32xf32>
    %cst_88 = arith.constant dense<0.000000e+00> : vector<14xf32>
    %187 = vector.multi_reduction <add>, %182, %cst_88 [1] : vector<14x32xf32> to vector<14xf32>
    %188 = vector.shape_cast %187 : vector<14xf32> to vector<14x1xf32>
    %cst_89 = arith.constant 3.200000e+01 : f32
    %189 = vector.broadcast %cst_89 : f32 to vector<14x1xf32>
    %190 = arith.divf %188, %189 : vector<14x1xf32>
    %191 = vector.broadcast %190 : vector<14x1xf32> to vector<14x32xf32>
    %192 = arith.subf %182, %191 : vector<14x32xf32>
    %193 = arith.mulf %192, %192 : vector<14x32xf32>
    %cst_90 = arith.constant dense<0.000000e+00> : vector<14xf32>
    %194 = vector.multi_reduction <add>, %193, %cst_90 [1] : vector<14x32xf32> to vector<14xf32>
    %195 = vector.shape_cast %194 : vector<14xf32> to vector<14x1xf32>
    %cst_91 = arith.constant 3.200000e+01 : f32
    %196 = vector.broadcast %cst_91 : f32 to vector<14x1xf32>
    %197 = arith.divf %195, %196 : vector<14x1xf32>
    %cst_92 = arith.constant 9.99999974E-6 : f32
    %198 = vector.broadcast %cst_92 : f32 to vector<14x1xf32>
    %199 = arith.addf %197, %198 : vector<14x1xf32>
    %200 = math.rsqrt %199 : vector<14x1xf32>
    %201 = vector.broadcast %200 : vector<14x1xf32> to vector<14x32xf32>
    %202 = arith.mulf %192, %201 : vector<14x32xf32>
    %203 = vector.broadcast %184 : vector<1x32xf32> to vector<14x32xf32>
    %204 = arith.mulf %202, %203 : vector<14x32xf32>
    %205 = vector.broadcast %186 : vector<1x32xf32> to vector<14x32xf32>
    %206 = arith.addf %204, %205 : vector<14x32xf32>
    %c1 = arith.constant 1 : index
    %c0_93 = arith.constant 0 : index
    %c0_94 = arith.constant 0 : index
    %207 = vector.load %arg6[%c1, %c0_93, %c0_94] : memref<2x32x96xf32, #tpu.memory_space<vmem>>, vector<1x32x96xf32>
    %208 = vector.shape_cast %207 : vector<1x32x96xf32> to vector<32x96xf32>
    %cst_95 = arith.constant dense<0.000000e+00> : vector<14x96xf32>
    %209 = tpu.matmul %206, %208, %cst_95 {dimension_numbers = #tpu.dot_dimension_numbers<[1], [0], [0], [1], [0, 0, 1, 1], [], []>} : vector<14x32xf32>, vector<32x96xf32>, vector<14x96xf32> -> vector<14x96xf32>
    %c1_96 = arith.constant 1 : index
    %c0_97 = arith.constant 0 : index
    %c0_98 = arith.constant 0 : index
    %210 = vector.load %arg7[%c1_96, %c0_97, %c0_98] : memref<2x1x96xf32, #tpu.memory_space<vmem>>, vector<1x1x96xf32>
    %211 = vector.shape_cast %210 : vector<1x1x96xf32> to vector<1x96xf32>
    %212 = vector.broadcast %211 : vector<1x96xf32> to vector<14x96xf32>
    %213 = arith.addf %209, %212 : vector<14x96xf32>
    %c1_99 = arith.constant 1 : index
    %c0_100 = arith.constant 0 : index
    %c0_101 = arith.constant 0 : index
    %214 = vector.load %arg8[%c1_99, %c0_100, %c0_101] : memref<2x32x32xf32, #tpu.memory_space<vmem>>, vector<1x32x32xf32>
    %215 = vector.shape_cast %214 : vector<1x32x32xf32> to vector<32x32xf32>
    %cst_102 = arith.constant 0.000000e+00 : f32
    %216 = vector.broadcast %cst_102 : f32 to vector<14x32xf32>
    %217 = vector.extract_strided_slice %213 {offsets = [0, 0], sizes = [14, 8], strides = [1, 1]} : vector<14x96xf32> to vector<14x8xf32>
    %218 = vector.extract_strided_slice %213 {offsets = [0, 32], sizes = [14, 8], strides = [1, 1]} : vector<14x96xf32> to vector<14x8xf32>
    %219 = vector.extract_strided_slice %213 {offsets = [0, 64], sizes = [14, 8], strides = [1, 1]} : vector<14x96xf32> to vector<14x8xf32>
    %cst_103 = arith.constant dense<0.000000e+00> : vector<14x14xf32>
    %220 = tpu.matmul %217, %218, %cst_103 {dimension_numbers = #tpu.dot_dimension_numbers<[1], [1], [0], [0], [0, 0, 1, 0], [], []>} : vector<14x8xf32>, vector<14x8xf32>, vector<14x14xf32> -> vector<14x14xf32>
    %cst_104 = arith.constant 0.353553385 : f32
    %221 = vector.broadcast %cst_104 : f32 to vector<14x14xf32>
    %222 = arith.mulf %220, %221 : vector<14x14xf32>
    %223 = vector.broadcast %27 : vector<1x14xf32> to vector<14x14xf32>
    %224 = arith.addf %222, %223 : vector<14x14xf32>
    %cst_105 = arith.constant dense<0xFF800000> : vector<14xf32>
    %225 = vector.multi_reduction <maximumf>, %224, %cst_105 [1] : vector<14x14xf32> to vector<14xf32>
    %226 = vector.shape_cast %225 : vector<14xf32> to vector<14x1xf32>
    %227 = vector.broadcast %226 : vector<14x1xf32> to vector<14x14xf32>
    %228 = arith.subf %224, %227 : vector<14x14xf32>
    %229 = math.exp %228 : vector<14x14xf32>
    %cst_106 = arith.constant dense<0.000000e+00> : vector<14xf32>
    %230 = vector.multi_reduction <add>, %229, %cst_106 [1] : vector<14x14xf32> to vector<14xf32>
    %231 = vector.shape_cast %230 : vector<14xf32> to vector<14x1xf32>
    %232 = tpu.reciprocal %231 {approx = true} : vector<14x1xf32> -> vector<14x1xf32>
    %233 = vector.broadcast %232 : vector<14x1xf32> to vector<14x14xf32>
    %234 = arith.mulf %229, %233 : vector<14x14xf32>
    %cst_107 = arith.constant dense<0.000000e+00> : vector<14x8xf32>
    %235 = tpu.matmul %234, %219, %cst_107 {dimension_numbers = #tpu.dot_dimension_numbers<[1], [0], [0], [1], [0, 0, 1, 1], [], []>} : vector<14x14xf32>, vector<14x8xf32>, vector<14x8xf32> -> vector<14x8xf32>
    %236 = vector.extract_strided_slice %215 {offsets = [0, 0], sizes = [8, 32], strides = [1, 1]} : vector<32x32xf32> to vector<8x32xf32>
    %cst_108 = arith.constant dense<0.000000e+00> : vector<14x32xf32>
    %237 = tpu.matmul %235, %236, %cst_108 {dimension_numbers = #tpu.dot_dimension_numbers<[1], [0], [0], [1], [0, 0, 1, 1], [], []>} : vector<14x8xf32>, vector<8x32xf32>, vector<14x32xf32> -> vector<14x32xf32>
    %238 = arith.addf %216, %237 : vector<14x32xf32>
    %239 = vector.extract_strided_slice %213 {offsets = [0, 8], sizes = [14, 8], strides = [1, 1]} : vector<14x96xf32> to vector<14x8xf32>
    %240 = vector.extract_strided_slice %213 {offsets = [0, 40], sizes = [14, 8], strides = [1, 1]} : vector<14x96xf32> to vector<14x8xf32>
    %241 = vector.extract_strided_slice %213 {offsets = [0, 72], sizes = [14, 8], strides = [1, 1]} : vector<14x96xf32> to vector<14x8xf32>
    %cst_109 = arith.constant dense<0.000000e+00> : vector<14x14xf32>
    %242 = tpu.matmul %239, %240, %cst_109 {dimension_numbers = #tpu.dot_dimension_numbers<[1], [1], [0], [0], [0, 0, 1, 0], [], []>} : vector<14x8xf32>, vector<14x8xf32>, vector<14x14xf32> -> vector<14x14xf32>
    %cst_110 = arith.constant 0.353553385 : f32
    %243 = vector.broadcast %cst_110 : f32 to vector<14x14xf32>
    %244 = arith.mulf %242, %243 : vector<14x14xf32>
    %245 = vector.broadcast %27 : vector<1x14xf32> to vector<14x14xf32>
    %246 = arith.addf %244, %245 : vector<14x14xf32>
    %cst_111 = arith.constant dense<0xFF800000> : vector<14xf32>
    %247 = vector.multi_reduction <maximumf>, %246, %cst_111 [1] : vector<14x14xf32> to vector<14xf32>
    %248 = vector.shape_cast %247 : vector<14xf32> to vector<14x1xf32>
    %249 = vector.broadcast %248 : vector<14x1xf32> to vector<14x14xf32>
    %250 = arith.subf %246, %249 : vector<14x14xf32>
    %251 = math.exp %250 : vector<14x14xf32>
    %cst_112 = arith.constant dense<0.000000e+00> : vector<14xf32>
    %252 = vector.multi_reduction <add>, %251, %cst_112 [1] : vector<14x14xf32> to vector<14xf32>
    %253 = vector.shape_cast %252 : vector<14xf32> to vector<14x1xf32>
    %254 = tpu.reciprocal %253 {approx = true} : vector<14x1xf32> -> vector<14x1xf32>
    %255 = vector.broadcast %254 : vector<14x1xf32> to vector<14x14xf32>
    %256 = arith.mulf %251, %255 : vector<14x14xf32>
    %cst_113 = arith.constant dense<0.000000e+00> : vector<14x8xf32>
    %257 = tpu.matmul %256, %241, %cst_113 {dimension_numbers = #tpu.dot_dimension_numbers<[1], [0], [0], [1], [0, 0, 1, 1], [], []>} : vector<14x14xf32>, vector<14x8xf32>, vector<14x8xf32> -> vector<14x8xf32>
    %258 = vector.extract_strided_slice %215 {offsets = [8, 0], sizes = [8, 32], strides = [1, 1]} : vector<32x32xf32> to vector<8x32xf32>
    %cst_114 = arith.constant dense<0.000000e+00> : vector<14x32xf32>
    %259 = tpu.matmul %257, %258, %cst_114 {dimension_numbers = #tpu.dot_dimension_numbers<[1], [0], [0], [1], [0, 0, 1, 1], [], []>} : vector<14x8xf32>, vector<8x32xf32>, vector<14x32xf32> -> vector<14x32xf32>
    %260 = arith.addf %238, %259 : vector<14x32xf32>
    %261 = vector.extract_strided_slice %213 {offsets = [0, 16], sizes = [14, 8], strides = [1, 1]} : vector<14x96xf32> to vector<14x8xf32>
    %262 = vector.extract_strided_slice %213 {offsets = [0, 48], sizes = [14, 8], strides = [1, 1]} : vector<14x96xf32> to vector<14x8xf32>
    %263 = vector.extract_strided_slice %213 {offsets = [0, 80], sizes = [14, 8], strides = [1, 1]} : vector<14x96xf32> to vector<14x8xf32>
    %cst_115 = arith.constant dense<0.000000e+00> : vector<14x14xf32>
    %264 = tpu.matmul %261, %262, %cst_115 {dimension_numbers = #tpu.dot_dimension_numbers<[1], [1], [0], [0], [0, 0, 1, 0], [], []>} : vector<14x8xf32>, vector<14x8xf32>, vector<14x14xf32> -> vector<14x14xf32>
    %cst_116 = arith.constant 0.353553385 : f32
    %265 = vector.broadcast %cst_116 : f32 to vector<14x14xf32>
    %266 = arith.mulf %264, %265 : vector<14x14xf32>
    %267 = vector.broadcast %27 : vector<1x14xf32> to vector<14x14xf32>
    %268 = arith.addf %266, %267 : vector<14x14xf32>
    %cst_117 = arith.constant dense<0xFF800000> : vector<14xf32>
    %269 = vector.multi_reduction <maximumf>, %268, %cst_117 [1] : vector<14x14xf32> to vector<14xf32>
    %270 = vector.shape_cast %269 : vector<14xf32> to vector<14x1xf32>
    %271 = vector.broadcast %270 : vector<14x1xf32> to vector<14x14xf32>
    %272 = arith.subf %268, %271 : vector<14x14xf32>
    %273 = math.exp %272 : vector<14x14xf32>
    %cst_118 = arith.constant dense<0.000000e+00> : vector<14xf32>
    %274 = vector.multi_reduction <add>, %273, %cst_118 [1] : vector<14x14xf32> to vector<14xf32>
    %275 = vector.shape_cast %274 : vector<14xf32> to vector<14x1xf32>
    %276 = tpu.reciprocal %275 {approx = true} : vector<14x1xf32> -> vector<14x1xf32>
    %277 = vector.broadcast %276 : vector<14x1xf32> to vector<14x14xf32>
    %278 = arith.mulf %273, %277 : vector<14x14xf32>
    %cst_119 = arith.constant dense<0.000000e+00> : vector<14x8xf32>
    %279 = tpu.matmul %278, %263, %cst_119 {dimension_numbers = #tpu.dot_dimension_numbers<[1], [0], [0], [1], [0, 0, 1, 1], [], []>} : vector<14x14xf32>, vector<14x8xf32>, vector<14x8xf32> -> vector<14x8xf32>
    %280 = vector.extract_strided_slice %215 {offsets = [16, 0], sizes = [8, 32], strides = [1, 1]} : vector<32x32xf32> to vector<8x32xf32>
    %cst_120 = arith.constant dense<0.000000e+00> : vector<14x32xf32>
    %281 = tpu.matmul %279, %280, %cst_120 {dimension_numbers = #tpu.dot_dimension_numbers<[1], [0], [0], [1], [0, 0, 1, 1], [], []>} : vector<14x8xf32>, vector<8x32xf32>, vector<14x32xf32> -> vector<14x32xf32>
    %282 = arith.addf %260, %281 : vector<14x32xf32>
    %283 = vector.extract_strided_slice %213 {offsets = [0, 24], sizes = [14, 8], strides = [1, 1]} : vector<14x96xf32> to vector<14x8xf32>
    %284 = vector.extract_strided_slice %213 {offsets = [0, 56], sizes = [14, 8], strides = [1, 1]} : vector<14x96xf32> to vector<14x8xf32>
    %285 = vector.extract_strided_slice %213 {offsets = [0, 88], sizes = [14, 8], strides = [1, 1]} : vector<14x96xf32> to vector<14x8xf32>
    %cst_121 = arith.constant dense<0.000000e+00> : vector<14x14xf32>
    %286 = tpu.matmul %283, %284, %cst_121 {dimension_numbers = #tpu.dot_dimension_numbers<[1], [1], [0], [0], [0, 0, 1, 0], [], []>} : vector<14x8xf32>, vector<14x8xf32>, vector<14x14xf32> -> vector<14x14xf32>
    %cst_122 = arith.constant 0.353553385 : f32
    %287 = vector.broadcast %cst_122 : f32 to vector<14x14xf32>
    %288 = arith.mulf %286, %287 : vector<14x14xf32>
    %289 = vector.broadcast %27 : vector<1x14xf32> to vector<14x14xf32>
    %290 = arith.addf %288, %289 : vector<14x14xf32>
    %cst_123 = arith.constant dense<0xFF800000> : vector<14xf32>
    %291 = vector.multi_reduction <maximumf>, %290, %cst_123 [1] : vector<14x14xf32> to vector<14xf32>
    %292 = vector.shape_cast %291 : vector<14xf32> to vector<14x1xf32>
    %293 = vector.broadcast %292 : vector<14x1xf32> to vector<14x14xf32>
    %294 = arith.subf %290, %293 : vector<14x14xf32>
    %295 = math.exp %294 : vector<14x14xf32>
    %cst_124 = arith.constant dense<0.000000e+00> : vector<14xf32>
    %296 = vector.multi_reduction <add>, %295, %cst_124 [1] : vector<14x14xf32> to vector<14xf32>
    %297 = vector.shape_cast %296 : vector<14xf32> to vector<14x1xf32>
    %298 = tpu.reciprocal %297 {approx = true} : vector<14x1xf32> -> vector<14x1xf32>
    %299 = vector.broadcast %298 : vector<14x1xf32> to vector<14x14xf32>
    %300 = arith.mulf %295, %299 : vector<14x14xf32>
    %cst_125 = arith.constant dense<0.000000e+00> : vector<14x8xf32>
    %301 = tpu.matmul %300, %285, %cst_125 {dimension_numbers = #tpu.dot_dimension_numbers<[1], [0], [0], [1], [0, 0, 1, 1], [], []>} : vector<14x14xf32>, vector<14x8xf32>, vector<14x8xf32> -> vector<14x8xf32>
    %302 = vector.extract_strided_slice %215 {offsets = [24, 0], sizes = [8, 32], strides = [1, 1]} : vector<32x32xf32> to vector<8x32xf32>
    %cst_126 = arith.constant dense<0.000000e+00> : vector<14x32xf32>
    %303 = tpu.matmul %301, %302, %cst_126 {dimension_numbers = #tpu.dot_dimension_numbers<[1], [0], [0], [1], [0, 0, 1, 1], [], []>} : vector<14x8xf32>, vector<8x32xf32>, vector<14x32xf32> -> vector<14x32xf32>
    %304 = arith.addf %282, %303 : vector<14x32xf32>
    %c1_127 = arith.constant 1 : index
    %c0_128 = arith.constant 0 : index
    %c0_129 = arith.constant 0 : index
    %305 = vector.load %arg9[%c1_127, %c0_128, %c0_129] : memref<2x1x32xf32, #tpu.memory_space<vmem>>, vector<1x1x32xf32>
    %306 = vector.shape_cast %305 : vector<1x1x32xf32> to vector<1x32xf32>
    %307 = vector.broadcast %306 : vector<1x32xf32> to vector<14x32xf32>
    %308 = arith.addf %304, %307 : vector<14x32xf32>
    %309 = arith.addf %206, %308 : vector<14x32xf32>
    %c1_130 = arith.constant 1 : index
    %c0_131 = arith.constant 0 : index
    %c0_132 = arith.constant 0 : index
    %310 = vector.load %arg10[%c1_130, %c0_131, %c0_132] : memref<2x1x32xf32, #tpu.memory_space<vmem>>, vector<1x1x32xf32>
    %311 = vector.shape_cast %310 : vector<1x1x32xf32> to vector<1x32xf32>
    %c1_133 = arith.constant 1 : index
    %c0_134 = arith.constant 0 : index
    %c0_135 = arith.constant 0 : index
    %312 = vector.load %arg11[%c1_133, %c0_134, %c0_135] : memref<2x1x32xf32, #tpu.memory_space<vmem>>, vector<1x1x32xf32>
    %313 = vector.shape_cast %312 : vector<1x1x32xf32> to vector<1x32xf32>
    %cst_136 = arith.constant dense<0.000000e+00> : vector<14xf32>
    %314 = vector.multi_reduction <add>, %309, %cst_136 [1] : vector<14x32xf32> to vector<14xf32>
    %315 = vector.shape_cast %314 : vector<14xf32> to vector<14x1xf32>
    %cst_137 = arith.constant 3.200000e+01 : f32
    %316 = vector.broadcast %cst_137 : f32 to vector<14x1xf32>
    %317 = arith.divf %315, %316 : vector<14x1xf32>
    %318 = vector.broadcast %317 : vector<14x1xf32> to vector<14x32xf32>
    %319 = arith.subf %309, %318 : vector<14x32xf32>
    %320 = arith.mulf %319, %319 : vector<14x32xf32>
    %cst_138 = arith.constant dense<0.000000e+00> : vector<14xf32>
    %321 = vector.multi_reduction <add>, %320, %cst_138 [1] : vector<14x32xf32> to vector<14xf32>
    %322 = vector.shape_cast %321 : vector<14xf32> to vector<14x1xf32>
    %cst_139 = arith.constant 3.200000e+01 : f32
    %323 = vector.broadcast %cst_139 : f32 to vector<14x1xf32>
    %324 = arith.divf %322, %323 : vector<14x1xf32>
    %cst_140 = arith.constant 9.99999974E-6 : f32
    %325 = vector.broadcast %cst_140 : f32 to vector<14x1xf32>
    %326 = arith.addf %324, %325 : vector<14x1xf32>
    %327 = math.rsqrt %326 : vector<14x1xf32>
    %328 = vector.broadcast %327 : vector<14x1xf32> to vector<14x32xf32>
    %329 = arith.mulf %319, %328 : vector<14x32xf32>
    %330 = vector.broadcast %311 : vector<1x32xf32> to vector<14x32xf32>
    %331 = arith.mulf %329, %330 : vector<14x32xf32>
    %332 = vector.broadcast %313 : vector<1x32xf32> to vector<14x32xf32>
    %333 = arith.addf %331, %332 : vector<14x32xf32>
    %c1_141 = arith.constant 1 : index
    %c0_142 = arith.constant 0 : index
    %c0_143 = arith.constant 0 : index
    %334 = vector.load %arg12[%c1_141, %c0_142, %c0_143] : memref<2x32x128xf32, #tpu.memory_space<vmem>>, vector<1x32x128xf32>
    %335 = vector.shape_cast %334 : vector<1x32x128xf32> to vector<32x128xf32>
    %cst_144 = arith.constant dense<0.000000e+00> : vector<14x128xf32>
    %336 = tpu.matmul %333, %335, %cst_144 {dimension_numbers = #tpu.dot_dimension_numbers<[1], [0], [0], [1], [0, 0, 1, 1], [], []>} : vector<14x32xf32>, vector<32x128xf32>, vector<14x128xf32> -> vector<14x128xf32>
    %c1_145 = arith.constant 1 : index
    %c0_146 = arith.constant 0 : index
    %c0_147 = arith.constant 0 : index
    %337 = vector.load %arg13[%c1_145, %c0_146, %c0_147] : memref<2x1x128xf32, #tpu.memory_space<vmem>>, vector<1x1x128xf32>
    %338 = vector.shape_cast %337 : vector<1x1x128xf32> to vector<1x128xf32>
    %339 = vector.broadcast %338 : vector<1x128xf32> to vector<14x128xf32>
    %340 = arith.addf %336, %339 : vector<14x128xf32>
    %341 = arith.mulf %340, %340 : vector<14x128xf32>
    %342 = arith.mulf %340, %341 : vector<14x128xf32>
    %cst_148 = arith.constant 4.471500e-02 : f32
    %343 = vector.broadcast %cst_148 : f32 to vector<14x128xf32>
    %344 = arith.mulf %343, %342 : vector<14x128xf32>
    %345 = arith.addf %340, %344 : vector<14x128xf32>
    %cst_149 = arith.constant 0.797884583 : f32
    %346 = vector.broadcast %cst_149 : f32 to vector<14x128xf32>
    %347 = arith.mulf %346, %345 : vector<14x128xf32>
    %348 = math.tanh %347 : vector<14x128xf32>
    %cst_150 = arith.constant 1.000000e+00 : f32
    %349 = vector.broadcast %cst_150 : f32 to vector<14x128xf32>
    %350 = arith.addf %349, %348 : vector<14x128xf32>
    %cst_151 = arith.constant 5.000000e-01 : f32
    %351 = vector.broadcast %cst_151 : f32 to vector<14x128xf32>
    %352 = arith.mulf %351, %350 : vector<14x128xf32>
    %353 = arith.mulf %340, %352 : vector<14x128xf32>
    %c1_152 = arith.constant 1 : index
    %c0_153 = arith.constant 0 : index
    %c0_154 = arith.constant 0 : index
    %354 = vector.load %arg14[%c1_152, %c0_153, %c0_154] : memref<2x128x32xf32, #tpu.memory_space<vmem>>, vector<1x128x32xf32>
    %355 = vector.shape_cast %354 : vector<1x128x32xf32> to vector<128x32xf32>
    %cst_155 = arith.constant dense<0.000000e+00> : vector<14x32xf32>
    %356 = tpu.matmul %353, %355, %cst_155 {dimension_numbers = #tpu.dot_dimension_numbers<[1], [0], [0], [1], [0, 0, 1, 1], [], []>} : vector<14x128xf32>, vector<128x32xf32>, vector<14x32xf32> -> vector<14x32xf32>
    %c1_156 = arith.constant 1 : index
    %c0_157 = arith.constant 0 : index
    %c0_158 = arith.constant 0 : index
    %357 = vector.load %arg15[%c1_156, %c0_157, %c0_158] : memref<2x1x32xf32, #tpu.memory_space<vmem>>, vector<1x1x32xf32>
    %358 = vector.shape_cast %357 : vector<1x1x32xf32> to vector<1x32xf32>
    %359 = vector.broadcast %358 : vector<1x32xf32> to vector<14x32xf32>
    %360 = arith.addf %356, %359 : vector<14x32xf32>
    %361 = arith.addf %333, %360 : vector<14x32xf32>
    %c1_159 = arith.constant 1 : index
    %c0_160 = arith.constant 0 : index
    %c0_161 = arith.constant 0 : index
    %362 = vector.load %arg16[%c1_159, %c0_160, %c0_161] : memref<2x1x32xf32, #tpu.memory_space<vmem>>, vector<1x1x32xf32>
    %363 = vector.shape_cast %362 : vector<1x1x32xf32> to vector<1x32xf32>
    %c1_162 = arith.constant 1 : index
    %c0_163 = arith.constant 0 : index
    %c0_164 = arith.constant 0 : index
    %364 = vector.load %arg17[%c1_162, %c0_163, %c0_164] : memref<2x1x32xf32, #tpu.memory_space<vmem>>, vector<1x1x32xf32>
    %365 = vector.shape_cast %364 : vector<1x1x32xf32> to vector<1x32xf32>
    %cst_165 = arith.constant dense<0.000000e+00> : vector<14xf32>
    %366 = vector.multi_reduction <add>, %361, %cst_165 [1] : vector<14x32xf32> to vector<14xf32>
    %367 = vector.shape_cast %366 : vector<14xf32> to vector<14x1xf32>
    %cst_166 = arith.constant 3.200000e+01 : f32
    %368 = vector.broadcast %cst_166 : f32 to vector<14x1xf32>
    %369 = arith.divf %367, %368 : vector<14x1xf32>
    %370 = vector.broadcast %369 : vector<14x1xf32> to vector<14x32xf32>
    %371 = arith.subf %361, %370 : vector<14x32xf32>
    %372 = arith.mulf %371, %371 : vector<14x32xf32>
    %cst_167 = arith.constant dense<0.000000e+00> : vector<14xf32>
    %373 = vector.multi_reduction <add>, %372, %cst_167 [1] : vector<14x32xf32> to vector<14xf32>
    %374 = vector.shape_cast %373 : vector<14xf32> to vector<14x1xf32>
    %cst_168 = arith.constant 3.200000e+01 : f32
    %375 = vector.broadcast %cst_168 : f32 to vector<14x1xf32>
    %376 = arith.divf %374, %375 : vector<14x1xf32>
    %cst_169 = arith.constant 9.99999974E-6 : f32
    %377 = vector.broadcast %cst_169 : f32 to vector<14x1xf32>
    %378 = arith.addf %376, %377 : vector<14x1xf32>
    %379 = math.rsqrt %378 : vector<14x1xf32>
    %380 = vector.broadcast %379 : vector<14x1xf32> to vector<14x32xf32>
    %381 = arith.mulf %371, %380 : vector<14x32xf32>
    %382 = vector.broadcast %363 : vector<1x32xf32> to vector<14x32xf32>
    %383 = arith.mulf %381, %382 : vector<14x32xf32>
    %384 = vector.broadcast %365 : vector<1x32xf32> to vector<14x32xf32>
    %385 = arith.addf %383, %384 : vector<14x32xf32>
    %c0_170 = arith.constant 0 : index
    %c0_171 = arith.constant 0 : index
    %386 = vector.load %arg18[%c0_170, %c0_171] : memref<1x32xf32, #tpu.memory_space<vmem>>, vector<1x32xf32>
    %c0_172 = arith.constant 0 : index
    %c0_173 = arith.constant 0 : index
    %387 = vector.load %arg19[%c0_172, %c0_173] : memref<1x32xf32, #tpu.memory_space<vmem>>, vector<1x32xf32>
    %cst_174 = arith.constant dense<0.000000e+00> : vector<14xf32>
    %388 = vector.multi_reduction <add>, %385, %cst_174 [1] : vector<14x32xf32> to vector<14xf32>
    %389 = vector.shape_cast %388 : vector<14xf32> to vector<14x1xf32>
    %cst_175 = arith.constant 3.200000e+01 : f32
    %390 = vector.broadcast %cst_175 : f32 to vector<14x1xf32>
    %391 = arith.divf %389, %390 : vector<14x1xf32>
    %392 = vector.broadcast %391 : vector<14x1xf32> to vector<14x32xf32>
    %393 = arith.subf %385, %392 : vector<14x32xf32>
    %394 = arith.mulf %393, %393 : vector<14x32xf32>
    %cst_176 = arith.constant dense<0.000000e+00> : vector<14xf32>
    %395 = vector.multi_reduction <add>, %394, %cst_176 [1] : vector<14x32xf32> to vector<14xf32>
    %396 = vector.shape_cast %395 : vector<14xf32> to vector<14x1xf32>
    %cst_177 = arith.constant 3.200000e+01 : f32
    %397 = vector.broadcast %cst_177 : f32 to vector<14x1xf32>
    %398 = arith.divf %396, %397 : vector<14x1xf32>
    %cst_178 = arith.constant 9.99999974E-6 : f32
    %399 = vector.broadcast %cst_178 : f32 to vector<14x1xf32>
    %400 = arith.addf %398, %399 : vector<14x1xf32>
    %401 = math.rsqrt %400 : vector<14x1xf32>
    %402 = vector.broadcast %401 : vector<14x1xf32> to vector<14x32xf32>
    %403 = arith.mulf %393, %402 : vector<14x32xf32>
    %404 = vector.broadcast %386 : vector<1x32xf32> to vector<14x32xf32>
    %405 = arith.mulf %403, %404 : vector<14x32xf32>
    %406 = vector.broadcast %387 : vector<1x32xf32> to vector<14x32xf32>
    %407 = arith.addf %405, %406 : vector<14x32xf32>
    %c0_179 = arith.constant 0 : index
    %c0_180 = arith.constant 0 : index
    %c0_181 = arith.constant 0 : index
    %408 = vector.load %arg20[%c0_179, %c0_180, %c0_181] : memref<1x14x32xf32, #tpu.memory_space<vmem>>, vector<1x14x32xf32>
    %409 = vector.shape_cast %408 : vector<1x14x32xf32> to vector<14x32xf32>
    %410 = vector.shape_cast %407 : vector<14x32xf32> to vector<1x14x32xf32>
    tpu.vector_store %arg20[%c0_179, %c0_180, %c0_181], %410 {strides = array<i32>} : memref<1x14x32xf32, #tpu.memory_space<vmem>>, vector<1x14x32xf32>,
    return
  }
  func.func @transform_0(%arg0: i32) -> (i32, i32, i32) {
    %c0_i32 = arith.constant 0 : i32
    %c0_i32_0 = arith.constant 0 : i32
    %c0_i32_1 = arith.constant 0 : i32
    return %arg0, %c0_i32, %c0_i32_0 : i32, i32, i32
  }
  func.func @transform_1(%arg0: i32) -> (i32, i32, i32) {
    %c0_i32 = arith.constant 0 : i32
    %c0_i32_0 = arith.constant 0 : i32
    %c0_i32_1 = arith.constant 0 : i32
    return %arg0, %c0_i32, %c0_i32_0 : i32, i32, i32
  }
  func.func @transform_2(%arg0: i32) -> (i32, i32) {
    %c0_i32 = arith.constant 0 : i32
    %c0_i32_0 = arith.constant 0 : i32
    %c0_i32_1 = arith.constant 0 : i32
    return %c0_i32, %c0_i32_0 : i32, i32
  }
  func.func @transform_3(%arg0: i32) -> (i32, i32) {
    %c0_i32 = arith.constant 0 : i32
    %c0_i32_0 = arith.constant 0 : i32
    %c0_i32_1 = arith.constant 0 : i32
    return %c0_i32, %c0_i32_0 : i32, i32
  }
  func.func @transform_4(%arg0: i32) -> (i32, i32) {
    %c0_i32 = arith.constant 0 : i32
    %c0_i32_0 = arith.constant 0 : i32
    %c0_i32_1 = arith.constant 0 : i32
    return %c0_i32, %c0_i32_0 : i32, i32
  }
  func.func @transform_5(%arg0: i32) -> (i32, i32, i32) {
    %c0_i32 = arith.constant 0 : i32
    %c0_i32_0 = arith.constant 0 : i32
    %c0_i32_1 = arith.constant 0 : i32
    %c0_i32_2 = arith.constant 0 : i32
    return %c0_i32, %c0_i32_0, %c0_i32_1 : i32, i32, i32
  }
  func.func @transform_6(%arg0: i32) -> (i32, i32, i32) {
    %c0_i32 = arith.constant 0 : i32
    %c0_i32_0 = arith.constant 0 : i32
    %c0_i32_1 = arith.constant 0 : i32
    %c0_i32_2 = arith.constant 0 : i32
    return %c0_i32, %c0_i32_0, %c0_i32_1 : i32, i32, i32
  }
  func.func @transform_7(%arg0: i32) -> (i32, i32, i32) {
    %c0_i32 = arith.constant 0 : i32
    %c0_i32_0 = arith.constant 0 : i32
    %c0_i32_1 = arith.constant 0 : i32
    %c0_i32_2 = arith.constant 0 : i32
    return %c0_i32, %c0_i32_0, %c0_i32_1 : i32, i32, i32
  }
  func.func @transform_8(%arg0: i32) -> (i32, i32, i32) {
    %c0_i32 = arith.constant 0 : i32
    %c0_i32_0 = arith.constant 0 : i32
    %c0_i32_1 = arith.constant 0 : i32
    %c0_i32_2 = arith.constant 0 : i32
    return %c0_i32, %c0_i32_0, %c0_i32_1 : i32, i32, i32
  }
  func.func @transform_9(%arg0: i32) -> (i32, i32, i32) {
    %c0_i32 = arith.constant 0 : i32
    %c0_i32_0 = arith.constant 0 : i32
    %c0_i32_1 = arith.constant 0 : i32
    %c0_i32_2 = arith.constant 0 : i32
    return %c0_i32, %c0_i32_0, %c0_i32_1 : i32, i32, i32
  }
  func.func @transform_10(%arg0: i32) -> (i32, i32, i32) {
    %c0_i32 = arith.constant 0 : i32
    %c0_i32_0 = arith.constant 0 : i32
    %c0_i32_1 = arith.constant 0 : i32
    %c0_i32_2 = arith.constant 0 : i32
    return %c0_i32, %c0_i32_0, %c0_i32_1 : i32, i32, i32
  }
  func.func @transform_11(%arg0: i32) -> (i32, i32, i32) {
    %c0_i32 = arith.constant 0 : i32
    %c0_i32_0 = arith.constant 0 : i32
    %c0_i32_1 = arith.constant 0 : i32
    %c0_i32_2 = arith.constant 0 : i32
    return %c0_i32, %c0_i32_0, %c0_i32_1 : i32, i32, i32
  }
  func.func @transform_12(%arg0: i32) -> (i32, i32, i32) {
    %c0_i32 = arith.constant 0 : i32
    %c0_i32_0 = arith.constant 0 : i32
    %c0_i32_1 = arith.constant 0 : i32
    %c0_i32_2 = arith.constant 0 : i32
    return %c0_i32, %c0_i32_0, %c0_i32_1 : i32, i32, i32
  }
  func.func @transform_13(%arg0: i32) -> (i32, i32, i32) {
    %c0_i32 = arith.constant 0 : i32
    %c0_i32_0 = arith.constant 0 : i32
    %c0_i32_1 = arith.constant 0 : i32
    %c0_i32_2 = arith.constant 0 : i32
    return %c0_i32, %c0_i32_0, %c0_i32_1 : i32, i32, i32
  }
  func.func @transform_14(%arg0: i32) -> (i32, i32, i32) {
    %c0_i32 = arith.constant 0 : i32
    %c0_i32_0 = arith.constant 0 : i32
    %c0_i32_1 = arith.constant 0 : i32
    %c0_i32_2 = arith.constant 0 : i32
    return %c0_i32, %c0_i32_0, %c0_i32_1 : i32, i32, i32
  }
  func.func @transform_15(%arg0: i32) -> (i32, i32, i32) {
    %c0_i32 = arith.constant 0 : i32
    %c0_i32_0 = arith.constant 0 : i32
    %c0_i32_1 = arith.constant 0 : i32
    %c0_i32_2 = arith.constant 0 : i32
    return %c0_i32, %c0_i32_0, %c0_i32_1 : i32, i32, i32
  }
  func.func @transform_16(%arg0: i32) -> (i32, i32, i32) {
    %c0_i32 = arith.constant 0 : i32
    %c0_i32_0 = arith.constant 0 : i32
    %c0_i32_1 = arith.constant 0 : i32
    %c0_i32_2 = arith.constant 0 : i32
    return %c0_i32, %c0_i32_0, %c0_i32_1 : i32, i32, i32
  }
  func.func @transform_17(%arg0: i32) -> (i32, i32) {
    %c0_i32 = arith.constant 0 : i32
    %c0_i32_0 = arith.constant 0 : i32
    %c0_i32_1 = arith.constant 0 : i32
    return %c0_i32, %c0_i32_0 : i32, i32
  }
  func.func @transform_18(%arg0: i32) -> (i32, i32) {
    %c0_i32 = arith.constant 0 : i32
    %c0_i32_0 = arith.constant 0 : i32
    %c0_i32_1 = arith.constant 0 : i32
    return %c0_i32, %c0_i32_0 : i32, i32
  }
  func.func @transform_19(%arg0: i32) -> (i32, i32, i32) {
    %c0_i32 = arith.constant 0 : i32
    %c0_i32_0 = arith.constant 0 : i32
    %c0_i32_1 = arith.constant 0 : i32
    return %arg0, %c0_i32, %c0_i32_0 : i32, i32, i32
  }
}

module attributes {stable_mosaic.version = 11 : i64} {
  func.func @_gin_mlp_kernel(%arg0: i32, %arg1: memref<16x32xf32, #tpu.memory_space<vmem>>, %arg2: memref<32x64xf32, #tpu.memory_space<vmem>>, %arg3: memref<1x64xf32, #tpu.memory_space<vmem>>, %arg4: memref<64x32xf32, #tpu.memory_space<vmem>>, %arg5: memref<1x32xf32, #tpu.memory_space<vmem>>, %arg6: memref<1x32xf32, #tpu.memory_space<vmem>>, %arg7: memref<1x32xf32, #tpu.memory_space<vmem>>, %arg8: memref<16x32xf32, #tpu.memory_space<vmem>>) attributes {dimension_semantics = [#tpu.dimension_semantics<parallel>], iteration_bounds = array<i64: 1>, scalar_prefetch = 0 : i64, scratch_operands = 0 : i64, tpu.core_type = #tpu.core_type<tc>, window_params = [{transform_indices = @transform_0, window_bounds = array<i64: 16, 32>}, {pipeline_mode = #tpu.pipeline_mode<synchronous>, transform_indices = @transform_1, window_bounds = array<i64: 32, 64>}, {pipeline_mode = #tpu.pipeline_mode<synchronous>, transform_indices = @transform_2, window_bounds = array<i64: 1, 64>}, {pipeline_mode = #tpu.pipeline_mode<synchronous>, transform_indices = @transform_3, window_bounds = array<i64: 64, 32>}, {pipeline_mode = #tpu.pipeline_mode<synchronous>, transform_indices = @transform_4, window_bounds = array<i64: 1, 32>}, {pipeline_mode = #tpu.pipeline_mode<synchronous>, transform_indices = @transform_5, window_bounds = array<i64: 1, 32>}, {pipeline_mode = #tpu.pipeline_mode<synchronous>, transform_indices = @transform_6, window_bounds = array<i64: 1, 32>}, {transform_indices = @transform_7, window_bounds = array<i64: 16, 32>}]} {
    %c0 = arith.constant 0 : index
    %c0_0 = arith.constant 0 : index
    %0 = vector.load %arg1[%c0, %c0_0] : memref<16x32xf32, #tpu.memory_space<vmem>>, vector<16x32xf32>
    %c0_1 = arith.constant 0 : index
    %c0_2 = arith.constant 0 : index
    %1 = vector.load %arg2[%c0_1, %c0_2] : memref<32x64xf32, #tpu.memory_space<vmem>>, vector<32x64xf32>
    %cst = arith.constant dense<0.000000e+00> : vector<16x64xf32>
    %2 = tpu.matmul %0, %1, %cst {dimension_numbers = #tpu.dot_dimension_numbers<[1], [0], [0], [1], [0, 0, 1, 1], [], []>} : vector<16x32xf32>, vector<32x64xf32>, vector<16x64xf32> -> vector<16x64xf32>
    %c0_3 = arith.constant 0 : index
    %c0_4 = arith.constant 0 : index
    %3 = vector.load %arg3[%c0_3, %c0_4] : memref<1x64xf32, #tpu.memory_space<vmem>>, vector<1x64xf32>
    %4 = vector.broadcast %3 : vector<1x64xf32> to vector<16x64xf32>
    %5 = arith.addf %2, %4 : vector<16x64xf32>
    %cst_5 = arith.constant 0.000000e+00 : f32
    %6 = vector.broadcast %cst_5 : f32 to vector<16x64xf32>
    %7 = arith.maximumf %5, %6 : vector<16x64xf32>
    %c0_6 = arith.constant 0 : index
    %c0_7 = arith.constant 0 : index
    %8 = vector.load %arg4[%c0_6, %c0_7] : memref<64x32xf32, #tpu.memory_space<vmem>>, vector<64x32xf32>
    %cst_8 = arith.constant dense<0.000000e+00> : vector<16x32xf32>
    %9 = tpu.matmul %7, %8, %cst_8 {dimension_numbers = #tpu.dot_dimension_numbers<[1], [0], [0], [1], [0, 0, 1, 1], [], []>} : vector<16x64xf32>, vector<64x32xf32>, vector<16x32xf32> -> vector<16x32xf32>
    %c0_9 = arith.constant 0 : index
    %c0_10 = arith.constant 0 : index
    %10 = vector.load %arg5[%c0_9, %c0_10] : memref<1x32xf32, #tpu.memory_space<vmem>>, vector<1x32xf32>
    %11 = vector.broadcast %10 : vector<1x32xf32> to vector<16x32xf32>
    %12 = arith.addf %9, %11 : vector<16x32xf32>
    %c0_11 = arith.constant 0 : index
    %c0_12 = arith.constant 0 : index
    %13 = vector.load %arg6[%c0_11, %c0_12] : memref<1x32xf32, #tpu.memory_space<vmem>>, vector<1x32xf32>
    %c0_13 = arith.constant 0 : index
    %c0_14 = arith.constant 0 : index
    %14 = vector.load %arg7[%c0_13, %c0_14] : memref<1x32xf32, #tpu.memory_space<vmem>>, vector<1x32xf32>
    %cst_15 = arith.constant dense<0.000000e+00> : vector<16xf32>
    %15 = vector.multi_reduction <add>, %12, %cst_15 [1] : vector<16x32xf32> to vector<16xf32>
    %16 = vector.shape_cast %15 : vector<16xf32> to vector<16x1xf32>
    %cst_16 = arith.constant 3.200000e+01 : f32
    %17 = vector.broadcast %cst_16 : f32 to vector<16x1xf32>
    %18 = arith.divf %16, %17 : vector<16x1xf32>
    %19 = vector.broadcast %18 : vector<16x1xf32> to vector<16x32xf32>
    %20 = arith.subf %12, %19 : vector<16x32xf32>
    %21 = arith.mulf %20, %20 : vector<16x32xf32>
    %cst_17 = arith.constant dense<0.000000e+00> : vector<16xf32>
    %22 = vector.multi_reduction <add>, %21, %cst_17 [1] : vector<16x32xf32> to vector<16xf32>
    %23 = vector.shape_cast %22 : vector<16xf32> to vector<16x1xf32>
    %cst_18 = arith.constant 3.200000e+01 : f32
    %24 = vector.broadcast %cst_18 : f32 to vector<16x1xf32>
    %25 = arith.divf %23, %24 : vector<16x1xf32>
    %cst_19 = arith.constant 9.99999974E-6 : f32
    %26 = vector.broadcast %cst_19 : f32 to vector<16x1xf32>
    %27 = arith.addf %25, %26 : vector<16x1xf32>
    %28 = math.rsqrt %27 : vector<16x1xf32>
    %29 = vector.broadcast %28 : vector<16x1xf32> to vector<16x32xf32>
    %30 = arith.mulf %20, %29 : vector<16x32xf32>
    %31 = vector.broadcast %13 : vector<1x32xf32> to vector<16x32xf32>
    %32 = arith.mulf %30, %31 : vector<16x32xf32>
    %33 = vector.broadcast %14 : vector<1x32xf32> to vector<16x32xf32>
    %34 = arith.addf %32, %33 : vector<16x32xf32>
    %c0_20 = arith.constant 0 : index
    %c0_21 = arith.constant 0 : index
    %35 = vector.load %arg8[%c0_20, %c0_21] : memref<16x32xf32, #tpu.memory_space<vmem>>, vector<16x32xf32>
    tpu.vector_store %arg8[%c0_20, %c0_21], %34 {strides = array<i32>} : memref<16x32xf32, #tpu.memory_space<vmem>>, vector<16x32xf32>,
    return
  }
  func.func @transform_0(%arg0: i32) -> (i32, i32) {
    %c0_i32 = arith.constant 0 : i32
    %c0_i32_0 = arith.constant 0 : i32
    return %arg0, %c0_i32 : i32, i32
  }
  func.func @transform_1(%arg0: i32) -> (i32, i32) {
    %c0_i32 = arith.constant 0 : i32
    %c0_i32_0 = arith.constant 0 : i32
    %c0_i32_1 = arith.constant 0 : i32
    return %c0_i32, %c0_i32_0 : i32, i32
  }
  func.func @transform_2(%arg0: i32) -> (i32, i32) {
    %c0_i32 = arith.constant 0 : i32
    %c0_i32_0 = arith.constant 0 : i32
    %c0_i32_1 = arith.constant 0 : i32
    return %c0_i32, %c0_i32_0 : i32, i32
  }
  func.func @transform_3(%arg0: i32) -> (i32, i32) {
    %c0_i32 = arith.constant 0 : i32
    %c0_i32_0 = arith.constant 0 : i32
    %c0_i32_1 = arith.constant 0 : i32
    return %c0_i32, %c0_i32_0 : i32, i32
  }
  func.func @transform_4(%arg0: i32) -> (i32, i32) {
    %c0_i32 = arith.constant 0 : i32
    %c0_i32_0 = arith.constant 0 : i32
    %c0_i32_1 = arith.constant 0 : i32
    return %c0_i32, %c0_i32_0 : i32, i32
  }
  func.func @transform_5(%arg0: i32) -> (i32, i32) {
    %c0_i32 = arith.constant 0 : i32
    %c0_i32_0 = arith.constant 0 : i32
    %c0_i32_1 = arith.constant 0 : i32
    return %c0_i32, %c0_i32_0 : i32, i32
  }
  func.func @transform_6(%arg0: i32) -> (i32, i32) {
    %c0_i32 = arith.constant 0 : i32
    %c0_i32_0 = arith.constant 0 : i32
    %c0_i32_1 = arith.constant 0 : i32
    return %c0_i32, %c0_i32_0 : i32, i32
  }
  func.func @transform_7(%arg0: i32) -> (i32, i32) {
    %c0_i32 = arith.constant 0 : i32
    %c0_i32_0 = arith.constant 0 : i32
    return %arg0, %c0_i32 : i32, i32
  }
}

module attributes {stable_mosaic.version = 11 : i64} {
  func.func @_gin_mlp_kernel(%arg0: i32, %arg1: memref<16x32xf32, #tpu.memory_space<vmem>>, %arg2: memref<32x64xf32, #tpu.memory_space<vmem>>, %arg3: memref<1x64xf32, #tpu.memory_space<vmem>>, %arg4: memref<64x32xf32, #tpu.memory_space<vmem>>, %arg5: memref<1x32xf32, #tpu.memory_space<vmem>>, %arg6: memref<1x32xf32, #tpu.memory_space<vmem>>, %arg7: memref<1x32xf32, #tpu.memory_space<vmem>>, %arg8: memref<16x32xf32, #tpu.memory_space<vmem>>) attributes {dimension_semantics = [#tpu.dimension_semantics<parallel>], iteration_bounds = array<i64: 1>, scalar_prefetch = 0 : i64, scratch_operands = 0 : i64, tpu.core_type = #tpu.core_type<tc>, window_params = [{transform_indices = @transform_0, window_bounds = array<i64: 16, 32>}, {pipeline_mode = #tpu.pipeline_mode<synchronous>, transform_indices = @transform_1, window_bounds = array<i64: 32, 64>}, {pipeline_mode = #tpu.pipeline_mode<synchronous>, transform_indices = @transform_2, window_bounds = array<i64: 1, 64>}, {pipeline_mode = #tpu.pipeline_mode<synchronous>, transform_indices = @transform_3, window_bounds = array<i64: 64, 32>}, {pipeline_mode = #tpu.pipeline_mode<synchronous>, transform_indices = @transform_4, window_bounds = array<i64: 1, 32>}, {pipeline_mode = #tpu.pipeline_mode<synchronous>, transform_indices = @transform_5, window_bounds = array<i64: 1, 32>}, {pipeline_mode = #tpu.pipeline_mode<synchronous>, transform_indices = @transform_6, window_bounds = array<i64: 1, 32>}, {transform_indices = @transform_7, window_bounds = array<i64: 16, 32>}]} {
    %c0 = arith.constant 0 : index
    %c0_0 = arith.constant 0 : index
    %0 = vector.load %arg1[%c0, %c0_0] : memref<16x32xf32, #tpu.memory_space<vmem>>, vector<16x32xf32>
    %c0_1 = arith.constant 0 : index
    %c0_2 = arith.constant 0 : index
    %1 = vector.load %arg2[%c0_1, %c0_2] : memref<32x64xf32, #tpu.memory_space<vmem>>, vector<32x64xf32>
    %cst = arith.constant dense<0.000000e+00> : vector<16x64xf32>
    %2 = tpu.matmul %0, %1, %cst {dimension_numbers = #tpu.dot_dimension_numbers<[1], [0], [0], [1], [0, 0, 1, 1], [], []>} : vector<16x32xf32>, vector<32x64xf32>, vector<16x64xf32> -> vector<16x64xf32>
    %c0_3 = arith.constant 0 : index
    %c0_4 = arith.constant 0 : index
    %3 = vector.load %arg3[%c0_3, %c0_4] : memref<1x64xf32, #tpu.memory_space<vmem>>, vector<1x64xf32>
    %4 = vector.broadcast %3 : vector<1x64xf32> to vector<16x64xf32>
    %5 = arith.addf %2, %4 : vector<16x64xf32>
    %cst_5 = arith.constant 0.000000e+00 : f32
    %6 = vector.broadcast %cst_5 : f32 to vector<16x64xf32>
    %7 = arith.maximumf %5, %6 : vector<16x64xf32>
    %c0_6 = arith.constant 0 : index
    %c0_7 = arith.constant 0 : index
    %8 = vector.load %arg4[%c0_6, %c0_7] : memref<64x32xf32, #tpu.memory_space<vmem>>, vector<64x32xf32>
    %cst_8 = arith.constant dense<0.000000e+00> : vector<16x32xf32>
    %9 = tpu.matmul %7, %8, %cst_8 {dimension_numbers = #tpu.dot_dimension_numbers<[1], [0], [0], [1], [0, 0, 1, 1], [], []>} : vector<16x64xf32>, vector<64x32xf32>, vector<16x32xf32> -> vector<16x32xf32>
    %c0_9 = arith.constant 0 : index
    %c0_10 = arith.constant 0 : index
    %10 = vector.load %arg5[%c0_9, %c0_10] : memref<1x32xf32, #tpu.memory_space<vmem>>, vector<1x32xf32>
    %11 = vector.broadcast %10 : vector<1x32xf32> to vector<16x32xf32>
    %12 = arith.addf %9, %11 : vector<16x32xf32>
    %cst_11 = arith.constant 0.000000e+00 : f32
    %13 = vector.broadcast %cst_11 : f32 to vector<16x32xf32>
    %14 = arith.maximumf %12, %13 : vector<16x32xf32>
    %c0_12 = arith.constant 0 : index
    %c0_13 = arith.constant 0 : index
    %15 = vector.load %arg8[%c0_12, %c0_13] : memref<16x32xf32, #tpu.memory_space<vmem>>, vector<16x32xf32>
    tpu.vector_store %arg8[%c0_12, %c0_13], %14 {strides = array<i32>} : memref<16x32xf32, #tpu.memory_space<vmem>>, vector<16x32xf32>,
    return
  }
  func.func @transform_0(%arg0: i32) -> (i32, i32) {
    %c0_i32 = arith.constant 0 : i32
    %c0_i32_0 = arith.constant 0 : i32
    return %arg0, %c0_i32 : i32, i32
  }
  func.func @transform_1(%arg0: i32) -> (i32, i32) {
    %c0_i32 = arith.constant 0 : i32
    %c0_i32_0 = arith.constant 0 : i32
    %c0_i32_1 = arith.constant 0 : i32
    return %c0_i32, %c0_i32_0 : i32, i32
  }
  func.func @transform_2(%arg0: i32) -> (i32, i32) {
    %c0_i32 = arith.constant 0 : i32
    %c0_i32_0 = arith.constant 0 : i32
    %c0_i32_1 = arith.constant 0 : i32
    return %c0_i32, %c0_i32_0 : i32, i32
  }
  func.func @transform_3(%arg0: i32) -> (i32, i32) {
    %c0_i32 = arith.constant 0 : i32
    %c0_i32_0 = arith.constant 0 : i32
    %c0_i32_1 = arith.constant 0 : i32
    return %c0_i32, %c0_i32_0 : i32, i32
  }
  func.func @transform_4(%arg0: i32) -> (i32, i32) {
    %c0_i32 = arith.constant 0 : i32
    %c0_i32_0 = arith.constant 0 : i32
    %c0_i32_1 = arith.constant 0 : i32
    return %c0_i32, %c0_i32_0 : i32, i32
  }
  func.func @transform_5(%arg0: i32) -> (i32, i32) {
    %c0_i32 = arith.constant 0 : i32
    %c0_i32_0 = arith.constant 0 : i32
    %c0_i32_1 = arith.constant 0 : i32
    return %c0_i32, %c0_i32_0 : i32, i32
  }
  func.func @transform_6(%arg0: i32) -> (i32, i32) {
    %c0_i32 = arith.constant 0 : i32
    %c0_i32_0 = arith.constant 0 : i32
    %c0_i32_1 = arith.constant 0 : i32
    return %c0_i32, %c0_i32_0 : i32, i32
  }
  func.func @transform_7(%arg0: i32) -> (i32, i32) {
    %c0_i32 = arith.constant 0 : i32
    %c0_i32_0 = arith.constant 0 : i32
    return %arg0, %c0_i32 : i32, i32
  }
}

</mosaic_0001>

<bundles_post_ra>
// kernel: custom-call.12
= control target key start
LH: loop header
LB: loop body
LE: loop exit
PB: predicated region body
PF: predicated region fallthrough
CT: control target
= control target key end

     0   :  { %s6_s0 = inlined_call_operand.vmem [shape: u32[2], index: 0, kind: output, shape index: {}]  }

// kernel: gine_tokengt_forward.6
= control target key start
LH: loop header
LB: loop body
LE: loop exit
PB: predicated region body
PF: predicated region fallthrough
CT: control target
= control target key end

     0   :  { %vm39_vm0 = vcmask 1041408   ;;  %v175_v0 = vmov 0.0   ;;  %vm29_vm1 = vcmask 277504   ;;  %vm176_vm2 = vmmov 0   ;;  %s233_s1 = inlined_call_operand.vmem [shape: f32[34,32], index: 1, kind: input, shape index: {}]   ;;  %s234_s0 = inlined_call_operand.vmem [shape: f32[24,34], index: 0, kind: input, shape index: {}]   ;;  %s235_s2 = inlined_call_operand.vmem [shape: f32[1,32], index: 2, kind: input, shape index: {}]   ;;  %s236_s3 = inlined_call_operand.vmem [shape: f32[24,32], index: 3, kind: output, shape index: {}]  }
   0x1   :  { %163 = vmatprep.subr.mxu1 %v175_v0  ;;  %v21_v1 = vld [vmem:[%s233_s1 + $0x20] sm:$0x3]  ;;  %144 = vmatprep.subr.mxu0 %v175_v0  ;;  %v20_v2 = vld [vmem:[%s233_s1 + $0x18] sm:$0xff]  ;;  %v19_v3 = vld [vmem:[%s233_s1 + $0x10] sm:$0xff]  ;;  %vm123_vm3 = vcmask 261120  }
   0x2   :  { %168 = vmatpush3.msk.msra.mxu1 %vm39_vm0, %v21_v1  ;;  %145 = vmatpush3.msk.msra.mxu0 %vm39_vm0, %v21_v1  ;;  %v18_v4 = vld [vmem:[%s233_s1 + $0x8] sm:$0xff]  ;;  %v17_v5 = vld [vmem:[%s233_s1] sm:$0xff]  ;;  %v16_v8 = vld [vmem:[%s234_s0 + $0x10] sm:$0xff] }
   0x3   :  { %164 = vmatprep.subr.mxu1 %v175_v0  ;;  %146 = vmatprep.subr.mxu0 %v175_v0  ;;  %v15_v6 = vld [vmem:[%s234_s0 + $0x8] sm:$0xff]  ;;  %v14_v7 = vld [vmem:[%s234_s0] sm:$0xff] }
   0x4   :  { %169 = vmatpush3.msra.mxu1 %v20_v2  ;;  %147 = vmatpush3.msra.mxu0 %v20_v2  ;;  %v131_v9 = vld [vmem:[%s235_s2] ss:$0 sm:$0xff] }
   0x5   :  { %165 = vmatprep.subr.mxu1 %v175_v0  ;;  %148 = vmatprep.subr.mxu0 %v175_v0 }
   0x6   :  { %170 = vmatpush3.msra.mxu1 %v19_v3  ;;  %149 = vmatpush3.msra.mxu0 %v19_v3 }
   0x7   :  { %166 = vmatprep.subr.mxu1 %v175_v0  ;;  %150 = vmatprep.subr.mxu0 %v175_v0 }
   0x8   :  { %171 = vmatpush3.msra.mxu1 %v18_v4  ;;  %151 = vmatpush3.msra.mxu0 %v18_v4 }
   0x9   :  { %167 = vmatprep.subr.mxu1 %v175_v0  ;;  %157 = vmatprep.mubr.msk.f32.mxu1 %vm176_vm2, %v175_v0 }
   0xa   :  { %172 = vmatpush3.msra.mxu1 %v17_v5  ;;  %152 = vmatprep.subr.mxu0 %v175_v0 }
   0xb   :  { %158 = vmatmul.mubr.msk.f32.vlgmr.msra.gmra.mxu1 %vm29_vm1, %v15_v6  ;;  %153 = vmatpush3.msra.mxu0 %v17_v5 }
   0xc   :  { %154 = vmatprep.mubr.msk.f32.mxu0 %vm176_vm2, %v175_v0  ;;  %160 = vmatprep.mubr.msk.f32.mxu1 %vm176_vm2, %v175_v0 }
   0xd   :  { %155 = vmatmul.mubr.msk.f32.vlgmr.msra.gmra.mxu0 %vm29_vm1, %v14_v7 }
   0xf   :  { %161 = vmatmul.mubr.msk.f32.gmra.mxu1 %vm29_vm1, %v16_v8 }
  0xcb   :  { %v114_v10 = vpop.f32.mrf.mxu1 }
  0xcc   :  { %v115_v11 = vadd.f32 %v131_v9, %v114_v10 }
  0xcd   :  { %v109_v12 = vpop.f32.mrf.mxu0  ;;  %v159_v13 = vpop.f32.mrf.mxu1 }
  0xce   :  { %125 = vst.msk [vmem:[%s236_s3 + $0x8] sm:$0xff] %vm123_vm3, %v115_v11  ;;  %v110_v14 = vadd.f32 %v131_v9, %v109_v12 }
  0xcf   :  { %v156_v15 = vpop.f32.mrf.mxu0  ;;  %v119_v16 = vpop.f32.mrf.mxu1 }
  0xd0   :  { %124 = vst.msk [vmem:[%s236_s3] sm:$0xff] %vm123_vm3, %v110_v14  ;;  %v120_v17 = vadd.f32 %v131_v9, %v119_v16 }
  0xd1   :  { %v162_v18 = vpop.f32.mrf.mxu1 }
  0xd2   :  { %126 = vst.msk [vmem:[%s236_s3 + $0x10] sm:$0xff] %vm123_vm3, %v120_v17 }

// kernel: gine_tokengt_forward.5
= control target key start
LH: loop header
LB: loop body
LE: loop exit
PB: predicated region body
PF: predicated region fallthrough
CT: control target
= control target key end

     0   :  { %vm39_vm0 = vcmask 261120   ;;  %vm138_vm1 = vcmask 523264   ;;  %s437_s1 = inlined_call_operand.vmem [shape: f32[32,64], index: 1, kind: input, shape index: {}]   ;;  %s438_s0 = inlined_call_operand.vmem [shape: f32[16,32], index: 0, kind: input, shape index: {}]   ;;  %s439_s3 = inlined_call_operand.vmem [shape: f32[64,32], index: 3, kind: input, shape index: {}]   ;;  %s440_s2 = inlined_call_operand.vmem [shape: f32[1,64], index: 2, kind: input, shape index: {}]   ;;  %s441_s4 = inlined_call_operand.vmem [shape: f32[1,32], index: 4, kind: input, shape index: {}]   ;;  %s442_s5 = inlined_call_operand.vmem [shape: f32[1,32], index: 5, kind: input, shape index: {}]   ;;  %s443_s6 = inlined_call_operand.vmem [shape: f32[1,32], index: 6, kind: input, shape index: {}]   ;;  %s444_s7 = inlined_call_operand.vmem [shape: f32[16,32], index: 7, kind: output, shape index: {}]  }
   0x1   :  { %v31_v0 = vld [vmem:[%s437_s1 + $0x18] sm:$0xff]  ;;  %v30_v1 = vld [vmem:[%s437_s1 + $0x10] sm:$0xff]  ;;  %v26_v2 = vld [vmem:[%s438_s0] sm:$0xff] }
   0x2   :  { %295 = vmatprep.subr.mxu0 %v31_v0  ;;  %v29_v3 = vld [vmem:[%s437_s1 + $0x8] sm:$0xff]  ;;  %303 = vmatprep.mubr.msk.f32.mxu0 %vm39_vm0, %v26_v2  ;;  %v130_v4 = vld [vmem:[%s439_s3 + $0x38] sm:$0xff]  ;;  %v129_v5 = vld [vmem:[%s439_s3 + $0x30] sm:$0xff] }
   0x3   :  { %296 = vmatpush3.msra.mxu0 %v31_v0  ;;  %306 = vmatprep.subr.mxu1 %v130_v4  ;;  %v28_v6 = vld [vmem:[%s437_s1] sm:$0xff]  ;;  %v128_v7 = vld [vmem:[%s439_s3 + $0x28] sm:$0xff]  ;;  %v126_v10 = vld [vmem:[%s439_s3 + $0x18] sm:$0xff] }
   0x4   :  { %297 = vmatprep.subr.mxu0 %v30_v1  ;;  %307 = vmatpush3.msra.mxu1 %v130_v4  ;;  %v27_v8 = vld [vmem:[%s438_s0 + $0x8] sm:$0xff]  ;;  %v127_v9 = vld [vmem:[%s439_s3 + $0x20] sm:$0xff]  ;;  %v125_v11 = vld [vmem:[%s439_s3 + $0x10] sm:$0xff] }
   0x5   :  { %298 = vmatpush3.msra.mxu0 %v30_v1  ;;  %308 = vmatprep.subr.mxu1 %v129_v5  ;;  %v124_v12 = vld [vmem:[%s439_s3 + $0x8] sm:$0xff]  ;;  %v123_v13 = vld [vmem:[%s439_s3] sm:$0xff] }
   0x6   :  { %299 = vmatprep.subr.mxu0 %v29_v3  ;;  %309 = vmatpush3.msra.mxu1 %v129_v5  ;;  %v271_v14 = vld [vmem:[%s440_s2] ss:$0 sm:$0xff] }
   0x7   :  { %300 = vmatpush3.msra.mxu0 %v29_v3  ;;  %310 = vmatprep.subr.mxu1 %v128_v7  ;;  %v274_v22 = vld [vmem:[%s441_s4] ss:$0 sm:$0xff] }
   0x8   :  { %301 = vmatprep.subr.mxu0 %v28_v6  ;;  %311 = vmatpush3.msra.mxu1 %v128_v7  ;;  %v277_v45 = vld [vmem:[%s442_s5] ss:$0 sm:$0xff] }
   0x9   :  { %302 = vmatpush3.msra.mxu0 %v28_v6  ;;  %312 = vmatprep.subr.mxu1 %v127_v9  ;;  %v278_v47 = vld [vmem:[%s443_s6] ss:$0 sm:$0xff] }
   0xa   :  { %304 = vmatmul.mubr.msk.f32.vlgmr.msra.gmra.mxu0 %vm39_vm0, %v27_v8  ;;  %313 = vmatpush3.msra.mxu1 %v127_v9 }
   0xb   :  { %314 = vmatprep.subr.mxu1 %v126_v10 }
   0xc   :  { %315 = vmatpush3.msra.mxu1 %v126_v10 }
   0xd   :  { %316 = vmatprep.subr.mxu1 %v125_v11 }
   0xe   :  { %317 = vmatpush3.msra.mxu1 %v125_v11 }
   0xf   :  { %318 = vmatprep.subr.mxu1 %v124_v12 }
  0x10   :  { %319 = vmatpush3.msra.mxu1 %v124_v12 }
  0x11   :  { %320 = vmatprep.subr.mxu1 %v123_v13 }
  0x12   :  { %321 = vmatpush3.msra.mxu1 %v123_v13 }
  0xca   :  { %v305_v15 = vpop.f32.mrf.mxu0 }
  0xcb   :  { %v118_v16 = vadd.f32 %v305_v15, %v271_v14 }
  0xcc   :  { %v112_v17 = vpop.f32.mrf.mxu0 }
  0xcd   :  { %v113_v18 = vadd.f32 %v271_v14, %v112_v17  ;;  %v122_v20 = vmax.f32 %v118_v16, 0.0 }
  0xcf   :  { %v121_v19 = vmax.f32 %v113_v18, 0.0 }
  0xd1   :  { %322 = vmatprep.mubr.msk.f32.mxu1 %vm138_vm1, %v121_v19 }
  0xd2   :  { %323 = vmatmul.mubr.msk.f32.vlgmr.msra.gmra.mxu1 %vm138_vm1, %v122_v20 }
 0x192   :  { %v324_v21 = vpop.f32.mrf.mxu1 }
 0x193   :  { %v217_v25 = vadd.f32 %v324_v21, %v274_v22 }
 0x194   :  { %v211_v23 = vpop.f32.mrf.mxu1 }
 0x195   :  { %v212_v24 = vadd.f32 %v274_v22, %v211_v23  ;;  %v225_v27 = vsel %vm39_vm0, %v217_v25, 0.0 }
 0x197   :  { %v222_v26 = vsel %vm39_vm0, %v212_v24, 0.0 }
 0x198   :  { %223 = vadd.xlane.f32.xlu0 %v222_v26 }
 0x19c   :  { %226 = vadd.xlane.f32.xlu0 %v225_v27 }
 0x221   :  { %v224_v28 = vpop.xlane.xlu0 %223 }
 0x222   :  { %v229_v29 = vmul.f32 0.03125, %v224_v28 }
 0x224   :  { %v231_v30 = vsub.f32 %v212_v24, %v229_v29 }
 0x225   :  { %v227_v31 = vpop.xlane.xlu0 %226 }
 0x226   :  { %v230_v32 = vmul.f32 0.03125, %v227_v31  ;;  %v233_v33 = vmul.f32 %v231_v30, %v231_v30 }
 0x228   :  { %v232_v34 = vsub.f32 %v217_v25, %v230_v32  ;;  %v235_v35 = vsel %vm39_vm0, %v233_v33, 0.0 }
 0x229   :  { %236 = vadd.xlane.f32.xlu1 %v235_v35 }
 0x22a   :  { %v234_v36 = vmul.f32 %v232_v34, %v232_v34 }
 0x22c   :  { %v238_v37 = vsel %vm39_vm0, %v234_v36, 0.0 }
 0x22d   :  { %239 = vadd.xlane.f32.xlu1 %v238_v37 }
 0x2b2   :  { %v237_v38 = vpop.xlane.xlu1 %236 }
 0x2b3   :  { %v241_v39 = vmul.f32 0.03125, %v237_v38 }
 0x2b5   :  { %v243_v40 = vadd.f32 1e-05, %v241_v39 }
 0x2b6   :  { %v240_v41 = vpop.xlane.xlu1 %239 }
 0x2b7   :  { %325 = vrsqrt.f32 %v243_v40  ;;  %v242_v42 = vmul.f32 0.03125, %v240_v41 }
 0x2b9   :  { %v244_v43 = vadd.f32 1e-05, %v242_v42 }
 0x2bb   :  { %327 = vrsqrt.f32 %v244_v43 }
 0x2c4   :  { %v326_v44 = vpop.eup %325 }
 0x2c5   :  { %v247_v46 = vmul.f32 %v326_v44, %v231_v30 }
 0x2c7   :  { %v255_v48 = vmul.f32 %v277_v45, %v247_v46 }
 0x2c8   :  { %v328_v49 = vpop.eup %327 }
 0x2c9   :  { %v263_v50 = vadd.f32 %v278_v47, %v255_v48  ;;  %v248_v51 = vmul.f32 %v328_v49, %v232_v34 }
 0x2cb   :  { %265 = vst.msk [vmem:[%s444_s7] sm:$0xff] %vm39_vm0, %v263_v50  ;;  %v256_v52 = vmul.f32 %v277_v45, %v248_v51 }
 0x2cd   :  { %v264_v53 = vadd.f32 %v278_v47, %v256_v52 }
 0x2cf   :  { %266 = vst.msk [vmem:[%s444_s7 + $0x8] sm:$0xff] %vm39_vm0, %v264_v53 }

// kernel: gine_tokengt_forward.4
= control target key start
LH: loop header
LB: loop body
LE: loop exit
PB: predicated region body
PF: predicated region fallthrough
CT: control target
= control target key end

     0   :  { %vm39_vm0 = vcmask 261120   ;;  %vm138_vm1 = vcmask 523264   ;;  %s378_s1 = inlined_call_operand.vmem [shape: f32[32,64], index: 1, kind: input, shape index: {}]   ;;  %s379_s5 = inlined_call_operand.vmem [shape: f32[1,32], index: 5, kind: input, shape index: {}]   ;;  %s380_s6 = inlined_call_operand.vmem [shape: f32[1,32], index: 6, kind: input, shape index: {}]   ;;  %s381_s0 = inlined_call_operand.vmem [shape: f32[16,32], index: 0, kind: input, shape index: {}]   ;;  %s382_s3 = inlined_call_operand.vmem [shape: f32[64,32], index: 3, kind: input, shape index: {}]   ;;  %s383_s2 = inlined_call_operand.vmem [shape: f32[1,64], index: 2, kind: input, shape index: {}]   ;;  %s384_s4 = inlined_call_operand.vmem [shape: f32[1,32], index: 4, kind: input, shape index: {}]   ;;  %s385_s7 = inlined_call_operand.vmem [shape: f32[16,32], index: 7, kind: output, shape index: {}]  }
   0x1   :  { %v31_v0 = vld [vmem:[%s378_s1 + $0x18] sm:$0xff]  ;;  %v30_v1 = vld [vmem:[%s378_s1 + $0x10] sm:$0xff]  ;;  %v26_v2 = vld [vmem:[%s381_s0] sm:$0xff] }
   0x2   :  { %250 = vmatprep.subr.mxu0 %v31_v0  ;;  %v29_v3 = vld [vmem:[%s378_s1 + $0x8] sm:$0xff]  ;;  %258 = vmatprep.mubr.msk.f32.mxu0 %vm39_vm0, %v26_v2  ;;  %v130_v4 = vld [vmem:[%s382_s3 + $0x38] sm:$0xff]  ;;  %v129_v5 = vld [vmem:[%s382_s3 + $0x30] sm:$0xff] }
   0x3   :  { %251 = vmatpush3.msra.mxu0 %v31_v0  ;;  %261 = vmatprep.subr.mxu1 %v130_v4  ;;  %v28_v6 = vld [vmem:[%s378_s1] sm:$0xff]  ;;  %v128_v7 = vld [vmem:[%s382_s3 + $0x28] sm:$0xff]  ;;  %v126_v10 = vld [vmem:[%s382_s3 + $0x18] sm:$0xff] }
   0x4   :  { %252 = vmatprep.subr.mxu0 %v30_v1  ;;  %262 = vmatpush3.msra.mxu1 %v130_v4  ;;  %v27_v8 = vld [vmem:[%s381_s0 + $0x8] sm:$0xff]  ;;  %v127_v9 = vld [vmem:[%s382_s3 + $0x20] sm:$0xff]  ;;  %v125_v11 = vld [vmem:[%s382_s3 + $0x10] sm:$0xff] }
   0x5   :  { %253 = vmatpush3.msra.mxu0 %v30_v1  ;;  %263 = vmatprep.subr.mxu1 %v129_v5  ;;  %v124_v12 = vld [vmem:[%s382_s3 + $0x8] sm:$0xff]  ;;  %v123_v13 = vld [vmem:[%s382_s3] sm:$0xff] }
   0x6   :  { %254 = vmatprep.subr.mxu0 %v29_v3  ;;  %264 = vmatpush3.msra.mxu1 %v129_v5  ;;  %v228_v14 = vld [vmem:[%s383_s2] ss:$0 sm:$0xff] }
   0x7   :  { %255 = vmatpush3.msra.mxu0 %v29_v3  ;;  %265 = vmatprep.subr.mxu1 %v128_v7  ;;  %v231_v21 = vld [vmem:[%s384_s4] ss:$0 sm:$0xff] }
   0x8   :  { %256 = vmatprep.subr.mxu0 %v28_v6  ;;  %266 = vmatpush3.msra.mxu1 %v128_v7 }
   0x9   :  { %257 = vmatpush3.msra.mxu0 %v28_v6  ;;  %267 = vmatprep.subr.mxu1 %v127_v9 }
   0xa   :  { %259 = vmatmul.mubr.msk.f32.vlgmr.msra.gmra.mxu0 %vm39_vm0, %v27_v8  ;;  %268 = vmatpush3.msra.mxu1 %v127_v9 }
   0xb   :  { %269 = vmatprep.subr.mxu1 %v126_v10 }
   0xc   :  { %270 = vmatpush3.msra.mxu1 %v126_v10 }
   0xd   :  { %271 = vmatprep.subr.mxu1 %v125_v11 }
   0xe   :  { %272 = vmatpush3.msra.mxu1 %v125_v11 }
   0xf   :  { %273 = vmatprep.subr.mxu1 %v124_v12 }
  0x10   :  { %274 = vmatpush3.msra.mxu1 %v124_v12 }
  0x11   :  { %275 = vmatprep.subr.mxu1 %v123_v13 }
  0x12   :  { %276 = vmatpush3.msra.mxu1 %v123_v13 }
  0xca   :  { %v260_v15 = vpop.f32.mrf.mxu0 }
  0xcb   :  { %v118_v16 = vadd.f32 %v260_v15, %v228_v14 }
  0xcc   :  { %v112_v17 = vpop.f32.mrf.mxu0 }
  0xcd   :  { %v113_v18 = vadd.f32 %v228_v14, %v112_v17  ;;  %v122_v20 = vmax.f32 %v118_v16, 0.0 }
  0xcf   :  { %v121_v19 = vmax.f32 %v113_v18, 0.0 }
  0xd1   :  { %277 = vmatprep.mubr.msk.f32.mxu1 %vm138_vm1, %v121_v19 }
  0xd2   :  { %278 = vmatmul.mubr.msk.f32.vlgmr.msra.gmra.mxu1 %vm138_vm1, %v122_v20 }
 0x192   :  { %v279_v22 = vpop.f32.mrf.mxu1 }
 0x193   :  { %v217_v23 = vadd.f32 %v279_v22, %v231_v21 }
 0x194   :  { %v211_v24 = vpop.f32.mrf.mxu1 }
 0x195   :  { %v221_v25 = vmax.f32 %v217_v23, 0.0  ;;  %v212_v26 = vadd.f32 %v231_v21, %v211_v24 }
 0x197   :  { %223 = vst.msk [vmem:[%s385_s7 + $0x8] sm:$0xff] %vm39_vm0, %v221_v25  ;;  %v220_v27 = vmax.f32 %v212_v26, 0.0 }
 0x199   :  { %222 = vst.msk [vmem:[%s385_s7] sm:$0xff] %vm39_vm0, %v220_v27 }

// kernel: gine_tokengt_forward.7
= control target key start
LH: loop header
LB: loop body
LE: loop exit
PB: predicated region body
PF: predicated region fallthrough
CT: control target
= control target key end

     0   :  { %s5296_s0 = inlined_call_operand.vmem [shape: f32[2,14,32], index: 0, kind: input, shape index: {}]   ;;  %s5297_s1 = inlined_call_operand.vmem [shape: f32[2,1,14], index: 1, kind: input, shape index: {}]   ;;  %s5298_s2 = inlined_call_operand.vmem [shape: f32[14,32], index: 2, kind: input, shape index: {}]   ;;  %s5299_s3 = inlined_call_operand.vmem [shape: f32[1,32], index: 3, kind: input, shape index: {}]   ;;  %s5300_s4 = inlined_call_operand.vmem [shape: f32[1,32], index: 4, kind: input, shape index: {}]   ;;  %s5301_s5 = inlined_call_operand.vmem [shape: f32[2,32,96], index: 5, kind: input, shape index: {}]   ;;  %s5302_s6 = inlined_call_operand.vmem [shape: f32[2,1,96], index: 6, kind: input, shape index: {}]   ;;  %s5303_s7 = inlined_call_operand.vmem [shape: f32[2,32,32], index: 7, kind: input, shape index: {}]   ;;  %s5304_s8 = inlined_call_operand.vmem [shape: f32[2,1,32], index: 8, kind: input, shape index: {}]   ;;  %s5305_s9 = inlined_call_operand.vmem [shape: f32[2,1,32], index: 9, kind: input, shape index: {}]   ;;  %s5306_s10 = inlined_call_operand.vmem [shape: f32[2,1,32], index: 10, kind: input, shape index: {}]   ;;  %s5307_s11 = inlined_call_operand.vmem [shape: f32[2,32,128], index: 11, kind: input, shape index: {}]   ;;  %s5308_s12 = inlined_call_operand.vmem [shape: f32[2,1,128], index: 12, kind: input, shape index: {}]   ;;  %s5309_s13 = inlined_call_operand.vmem [shape: f32[2,128,32], index: 13, kind: input, shape index: {}]   ;;  %s5310_s14 = inlined_call_operand.vmem [shape: f32[2,1,32], index: 14, kind: input, shape index: {}]   ;;  %s5311_s15 = inlined_call_operand.vmem [shape: f32[2,1,32], index: 15, kind: input, shape index: {}]   ;;  %s5312_s16 = inlined_call_operand.vmem [shape: f32[2,1,32], index: 16, kind: input, shape index: {}]   ;;  %s5313_s17 = inlined_call_operand.vmem [shape: f32[1,32], index: 17, kind: input, shape index: {}]   ;;  %s5314_s18 = inlined_call_operand.vmem [shape: f32[1,32], index: 18, kind: input, shape index: {}]   ;;  %s5315_s19 = inlined_call_operand.vmem [shape: f32[2,14,32], index: 19, kind: output, shape index: {}]  }
   0x1   :  { %5334 = sst [smem:[#allocation2_spill]] %s5296_s0  ;;  %s4704_s0 = smov 0  }
   0x2   :  { %5335 = sst [smem:[#allocation3_spill]] %s5297_s1 }
   0x3   :  { %5336 = sst [smem:[#allocation4_spill]] %s5298_s2 }
   0x4   :  { %5337 = sst [smem:[#allocation5_spill]] %s5299_s3 }
   0x5 LB: > { %s3905_s30 = sadd.s32 4294967295, %s4591_s0   ;;  %p3909_p0 = scmp.ge.s32.totalorder %s4591_s0, 1  ;;  %s4591_s0 = sphi %s4704_s0, %s29_s0  }
   0x6   : > { %p545_p1 = scmp.lt.s32.totalorder %s4591_s0, 3 }
   0x8   : > { %p546_p2 = pnand %p3909_p0, %p545_p1 }
   0x9   : > { %p604_p3 = scmp.lt.s32.totalorder (!%p546_p2), %s3905_s30, 1  ;;  %s5338_s22 = sld [smem:[#allocation4_spill]] (!%p546_p2) }
   0xa   : > { %549 = sbr.rel (%p546_p2) target bundleno = 7572 (0x1d94), region = 96  ;;  %s5339_s3 = sld [smem:[#allocation2_spill]] (!%p546_p2) }
   0xb   : > { %s4593_s1 = smov (!%p546_p2), 88   ;;  %s4594_s2 = smov (!%p546_p2), 96  }
   0xc   : > { %s5332_s23 = smov (!%p546_p2), 120   ;;  %s4596_s27 = smov (!%p546_p2), 64  }
   0xd   : > { %s5330_s28 = smov (!%p546_p2), 56   ;;  %s5328_s29 = smov (!%p546_p2), 80  }
   0xe   : > { %s5326_s21 = smov (!%p546_p2), 112   ;;  %s5320_s24 = smov (!%p546_p2), 72  }
   0xf   : > { %s5352_s30 = smov (!%p604_p3, %s3905_s30), 1  ;;  %v619_v0 = vld [vmem:[%s5338_s22] sm:$0xff]  ;;  %v620_v1 = vld [vmem:[%s5338_s22 + $0x8] sm:$0x3f]  ;;  %vm625_vm0 = vcmask 261120   ;;  %vm629_vm1 = vcmask 259072  }
  0x10   : > { %s5317_s20 = sshll.u32 %s5352_s30, 4  ;;  %v674_v18 = vld [vmem:[%s5301_s5 + $0x18] sm:$0xff]  ;;  %v673_v19 = vld [vmem:[%s5301_s5 + $0x10] sm:$0xff]  ;;  %v672_v20 = vld [vmem:[%s5301_s5 + $0x8] sm:$0xff]  ;;  %vm773_vm2 = vcmask 64512   ;;  %vm871_vm3 = vcmask 111616  }
  0x11   : > { %s608_s26 = scalar_lea.vmem %s5339_s3, %s5317_s20  ;;  %4203 = vmatprep.subr.mxu0 %v674_v18  ;;  %v671_v21 = vld [vmem:[%s5301_s5] sm:$0xff]  ;;  %s5341_s3 = sld [smem:[#allocation3_spill]]  ;;  %vm867_vm4 = vcmask 113664   ;;  %vm902_vm5 = vcmask 1045504  }
  0x12   : > { %v617_v2 = vld [vmem:[%s608_s26] sm:$0xff]  ;;  %v618_v3 = vld [vmem:[%s608_s26 + $0x8] sm:$0x3f]  ;;  %4204 = vmatpush3.msra.mxu0 %v674_v18  ;;  %s5340_s26 = sld [smem:[#allocation5_spill]]  ;;  %s5318_s25 = smov 104  }
  0x13   : > { %v621_v4 = vadd.f32 %v619_v0, %v617_v2  ;;  %v622_v5 = vadd.f32 %v620_v1, %v618_v3  ;;  %4205 = vmatprep.subr.mxu0 %v673_v19  ;;  %v3915_v31 = vld [vmem:[%s5300_s4] ss:$0 sm:$0xff]  ;;  %s5324_s20 = smov 48  }
  0x14   : > { %4206 = vmatpush3.msra.mxu0 %v673_v19  ;;  %v3916_v38 = vld [vmem:[%s5302_s6] ss:$0 sm:$0xff] }
  0x15   : > { %v626_v6 = vsel %vm625_vm0, %v621_v4, 0.0  ;;  %v630_v7 = vsel %vm629_vm1, %v622_v5, 0.0  ;;  %4207 = vmatprep.subr.mxu0 %v672_v20 }
  0x16   : > { %627 = vadd.xlane.f32.xlu0 %v626_v6  ;;  %4208 = vmatpush3.msra.mxu0 %v672_v20 }
  0x17   : > { %4209 = vmatprep.subr.mxu0 %v671_v21 }
  0x18   : > { %4210 = vmatpush3.msra.mxu0 %v671_v21  ;;  %v3914_v29 = vld [vmem:[%s5340_s26] ss:$0 sm:$0xff]  ;;  %s4793_s26 = scalar_lea.vmem %s5341_s3, %s5352_s30  ;;  %s5344_s3 = smov 80  }
  0x19   : > { %v4796_v49 = vld [vmem:[%s4793_s26] ss:$0 sm:$0xff] }
  0x1a   : > { %631 = vadd.xlane.f32.xlu0 %v630_v7 }
  0x9f   : > { %v628_v8 = vpop.xlane.xlu0 %627 }
  0xa0   : > { %v634_v9 = vmul.f32 0.03125, %v628_v8 }
  0xa2   : > { %v636_v10 = vsub.f32 %v621_v4, %v634_v9 }
  0xa3   : > { %v632_v11 = vpop.xlane.xlu0 %631 }
  0xa4   : > { %v635_v12 = vmul.f32 0.03125, %v632_v11  ;;  %v638_v13 = vmul.f32 %v636_v10, %v636_v10 }
  0xa6   : > { %v637_v14 = vsub.f32 %v622_v5, %v635_v12  ;;  %v640_v15 = vsel %vm625_vm0, %v638_v13, 0.0 }
  0xa7   : > { %641 = vadd.xlane.f32.xlu1 %v640_v15 }
  0xa8   : > { %v639_v16 = vmul.f32 %v637_v14, %v637_v14 }
  0xaa   : > { %v643_v17 = vsel %vm629_vm1, %v639_v16, 0.0 }
  0xab   : > { %644 = vadd.xlane.f32.xlu1 %v643_v17 }
 0x130   : > { %v642_v22 = vpop.xlane.xlu1 %641 }
 0x131   : > { %v646_v23 = vmul.f32 0.03125, %v642_v22 }
 0x133   : > { %v648_v24 = vadd.f32 1e-05, %v646_v23 }
 0x134   : > { %v645_v25 = vpop.xlane.xlu1 %644 }
 0x135   : > { %4488 = vrsqrt.f32 %v648_v24  ;;  %v647_v26 = vmul.f32 0.03125, %v645_v25 }
 0x137   : > { %v649_v27 = vadd.f32 1e-05, %v647_v26 }
 0x139   : > { %4490 = vrsqrt.f32 %v649_v27 }
 0x142   : > { %v4489_v28 = vpop.eup %4488 }
 0x143   : > { %v652_v30 = vmul.f32 %v4489_v28, %v636_v10 }
 0x145   : > { %v660_v32 = vmul.f32 %v3914_v29, %v652_v30 }
 0x146   : > { %v4491_v33 = vpop.eup %4490 }
 0x147   : > { %v653_v34 = vmul.f32 %v4491_v33, %v637_v14  ;;  %v4748_v35 = vadd.f32 %v3915_v31, %v660_v32 }
 0x149   : > { %v661_v36 = vmul.f32 %v3914_v29, %v653_v34  ;;  %4211 = vmatprep.mubr.msk.f32.mxu0 %vm625_vm0, %v4748_v35 }
 0x14b   : > { %v4752_v37 = vadd.f32 %v3915_v31, %v661_v36 }
 0x14d   : > { %4212 = vmatmul.mubr.msk.f32.vlgmr.msra.gmra.mxu0 %vm625_vm0, %v4752_v37 }
 0x20d   : > { %v4213_v39 = vpop.f32.mrf.mxu0 }
 0x20e   : > { %v4759_v40 = vadd.f32 %v4213_v39, %v3916_v38 }
 0x20f   : > { %v754_v41 = vpop.f32.mrf.mxu0 }
 0x210   : > { %v4761_v42 = vadd.f32 %v3916_v38, %v754_v41  ;;  %986 = vrot.lane.b32.xlu1 %v4759_v40, %s4593_s1  ;;  %771 = vrot.lane.b32.xlu0 %v4759_v40, %s4594_s2  ;;  %v764_v41 = vld [vmem:[%s5303_s7 + $0x8] sm:$0xff] }
 0x212   : > { %4218 = vmatprep.mubr.msk.f32.mxu0 %vm773_vm2, %v4761_v42 }
 0x214   : > { %980 = vrot.lane.b32.xlu0 %v4761_v42, %s5332_s23  ;;  %769 = vrot.lane.b32.xlu1 %v4761_v42, %s4594_s2 }
 0x218   : > { %984 = vrot.lane.b32.xlu1 %v4761_v42, %s4593_s1 }
 0x21c   : > { %982 = vrot.lane.b32.xlu1 %v4759_v40, %s5332_s23 }
 0x282   : > { %v987_v43 = vpop.permute.xlu1 %986  ;;  %v772_v44 = vpop.permute.xlu0 %771 }
 0x283   : > { %4214 = vmatprep.subr.msk.mxu0 %vm773_vm2, %v772_v44  ;;  %4228 = vmatprep.subr.msk.mxu1 %vm773_vm2, %v987_v43 }
 0x284   : > { %4215 = vmatpush3.xpose.msk.msra.mxu0 %vm773_vm2, %v772_v44  ;;  %4229 = vmatpush3.xpose.msk.msra.mxu1 %vm773_vm2, %v987_v43  ;;  %v763_v43 = vld [vmem:[%s5303_s7] sm:$0xff] }
 0x286   : > { %v981_v45 = vpop.permute.xlu0 %980  ;;  %v770_v46 = vpop.permute.xlu1 %769 }
 0x287   : > { %4216 = vmatprep.subr.msk.mxu0 %vm773_vm2, %v770_v46  ;;  %4232 = vmatprep.mubr.msk.f32.mxu1 %vm773_vm2, %v981_v45 }
 0x288   : > { %4217 = vmatpush3.xpose.msk.msra.mxu0 %vm773_vm2, %v770_v46 }
 0x28a   : > { %v985_v47 = vpop.permute.xlu1 %984 }
 0x28b   : > { %4219 = vmatmul.mubr.msk.f32.vlgmr.msra.gmra.mxu0 %vm773_vm2, %v4759_v40  ;;  %4230 = vmatprep.subr.msk.mxu1 %vm773_vm2, %v985_v47 }
 0x28c   : > { %4231 = vmatpush3.xpose.msk.msra.mxu1 %vm773_vm2, %v985_v47 }
 0x28e   : > { %v983_v48 = vpop.permute.xlu1 %982 }
 0x28f   : > { %4233 = vmatmul.mubr.msk.f32.vlgmr.msra.gmra.mxu1 %vm773_vm2, %v983_v48 }
 0x34b   : > { %v4220_v50 = vpop.f32.mrf.mxu0 }
 0x34c   : > { %v858_v51 = vmul.f32 0.35355338, %v4220_v50 }
 0x34d   : > { %v848_v52 = vpop.f32.mrf.mxu0 }
 0x34e   : > { %v857_v53 = vmul.f32 0.35355338, %v848_v52  ;;  %v866_v54 = vadd.f32 %v4796_v49, %v858_v51 }
 0x34f   : > { %v4234_v55 = vpop.f32.mrf.mxu1 }
 0x350   : > { %v872_v56 = vsel %vm871_vm3, %v866_v54, -inf  ;;  %v865_v57 = vadd.f32 %v4796_v49, %v857_v53  ;;  %v1072_v59 = vmul.f32 0.35355338, %v4234_v55 }
 0x351   : > { %v1062_v58 = vpop.f32.mrf.mxu1  ;;  %873 = vmax.xlane.f32.xlu1 %v872_v56 }
 0x352   : > { %v1071_v60 = vmul.f32 0.35355338, %v1062_v58  ;;  %v868_v61 = vsel %vm867_vm4, %v865_v57, -inf  ;;  %v1074_v0 = vadd.f32 %v4796_v49, %v1072_v59 }
 0x353   : > { %869 = vmax.xlane.f32.xlu0 %v868_v61 }
 0x354   : > { %v1073_v62 = vadd.f32 %v4796_v49, %v1071_v60  ;;  %v1078_v1 = vsel %vm871_vm3, %v1074_v0, -inf }
 0x356   : > { %v1075_v63 = vsel %vm867_vm4, %v1073_v62, -inf }
 0x357   : > { %1076 = vmax.xlane.f32.xlu0 %v1075_v63 }
 0x35b   : > { %1079 = vmax.xlane.f32.xlu0 %v1078_v1 }
 0x3da   : > { %v874_v2 = vpop.xlane.xlu1 %873 }
 0x3db   : > { %v876_v3 = vsub.f32 %v866_v54, %v874_v2 }
 0x3dc   : > { %v870_v4 = vpop.xlane.xlu0 %869 }
 0x3dd   : > { %v879_v5 = vmul.f32 1.442695, %v876_v3  ;;  %v875_v6 = vsub.f32 %v865_v57, %v870_v4 }
 0x3df   : > { %4492 = vpow2.f32 %v879_v5  ;;  %v877_v7 = vmul.f32 1.442695, %v875_v6 }
 0x3e0   : > { %v1077_v8 = vpop.xlane.xlu0 %1076 }
 0x3e1   : > { %4494 = vpow2.f32 %v877_v7  ;;  %v1081_v9 = vsub.f32 %v1073_v62, %v1077_v8 }
 0x3e3   : > { %v1083_v10 = vmul.f32 1.442695, %v1081_v9 }
 0x3e4   : > { %v1080_v11 = vpop.xlane.xlu0 %1079 }
 0x3e5   : > { %4496 = vpow2.f32 %v1083_v10  ;;  %v1082_v12 = vsub.f32 %v1074_v0, %v1080_v11 }
 0x3e7   : > { %v1085_v13 = vmul.f32 1.442695, %v1082_v12 }
 0x3e9   : > { %4498 = vpow2.f32 %v1085_v13 }
 0x3ec   : > { %v4493_v14 = vpop.eup %4492 }
 0x3ed   : > { %v884_v15 = vsel %vm871_vm3, %v4493_v14, 0.0 }
 0x3ee   : > { %v4495_v16 = vpop.eup %4494  ;;  %885 = vadd.xlane.f32.xlu1 %v884_v15 }
 0x3ef   : > { %v881_v17 = vsel %vm867_vm4, %v4495_v16, 0.0 }
 0x3f0   : > { %882 = vadd.xlane.f32.xlu0 %v881_v17 }
 0x3f2   : > { %v4497_v18 = vpop.eup %4496 }
 0x3f3   : > { %v1087_v19 = vsel %vm867_vm4, %v4497_v18, 0.0 }
 0x3f4   : > { %1088 = vadd.xlane.f32.xlu0 %v1087_v19 }
 0x3f6   : > { %v4499_v20 = vpop.eup %4498 }
 0x3f7   : > { %v1090_v21 = vsel %vm871_vm3, %v4499_v20, 0.0 }
 0x3f8   : > { %1091 = vadd.xlane.f32.xlu1 %v1090_v21 }
 0x409   : > { %891 = vrot.lane.b32.xlu1 %v4761_v42, %s4596_s27 }
 0x40a   : > { %893 = vrot.lane.b32.xlu0 %v4759_v40, %s4596_s27 }
 0x40d   : > { %1099 = vrot.lane.b32.xlu1 %v4759_v40, %s5330_s28 }
 0x40e   : > { %1353 = vrot.lane.b32.xlu0 %v4759_v40, %s5328_s29 }
 0x411   : > { %1097 = vrot.lane.b32.xlu1 %v4761_v42, %s5330_s28 }
 0x412   : > { %1347 = vrot.lane.b32.xlu0 %v4761_v42, %s5326_s21 }
 0x415   : > { %1351 = vrot.lane.b32.xlu1 %v4761_v42, %s5328_s29  ;;  %s5346_s29 = smov 72  }
 0x416   : > { %1641 = vrot.lane.b32.xlu0 %v4759_v40, %s5320_s24 }
 0x419   : > { %1349 = vrot.lane.b32.xlu1 %v4759_v40, %s5326_s21  ;;  %s5347_s21 = smov 104  }
 0x41a   : > { %1635 = vrot.lane.b32.xlu0 %v4761_v42, %s5318_s25 }
 0x41d   : > { %1639 = vrot.lane.b32.xlu1 %v4761_v42, %s5320_s24  ;;  %s5322_s24 = smov 40  }
 0x421   : > { %1637 = vrot.lane.b32.xlu1 %v4759_v40, %s5318_s25  ;;  %s5343_s25 = smov 56  }
 0x477   : > { %v886_v22 = vpop.xlane.xlu1 %885 }
 0x478   : > { %4500 = vrcp.f32 %v886_v22 }
 0x479   : > { %v883_v23 = vpop.xlane.xlu0 %882 }
 0x47a   : > { %4502 = vrcp.f32 %v883_v23 }
 0x47d   : > { %v1089_v24 = vpop.xlane.xlu0 %1088 }
 0x47e   : > { %4504 = vrcp.f32 %v1089_v24 }
 0x481   : > { %v1092_v25 = vpop.xlane.xlu1 %1091  ;;  %v894_v26 = vpop.permute.xlu0 %893 }
 0x482   : > { %4506 = vrcp.f32 %v1092_v25  ;;  %4221 = vmatprep.subr.msk.mxu0 %vm902_vm5, %v894_v26 }
 0x483   : > { %4222 = vmatpush3.msk.msra.mxu0 %vm902_vm5, %v894_v26 }
 0x485   : > { %v892_v27 = vpop.permute.xlu1 %891  ;;  %v4501_v28 = vpop.eup %4500 }
 0x486   : > { %4223 = vmatprep.subr.mxu0 %v892_v27  ;;  %v890_v32 = vmul.f32 %v4501_v28, %v4493_v14  ;;  %v1354_v45 = vpop.permute.xlu0 %1353 }
 0x487   : > { %v4503_v29 = vpop.eup %4502  ;;  %4224 = vmatpush3.msra.mxu0 %v892_v27 }
 0x488   : > { %v889_v30 = vmul.f32 %v4503_v29, %v4495_v16 }
 0x489   : > { %v1100_v31 = vpop.permute.xlu1 %1099 }
 0x48a   : > { %4225 = vmatprep.mubr.msk.f32.mxu0 %vm867_vm4, %v889_v30  ;;  %4235 = vmatprep.subr.msk.mxu0 %vm902_vm5, %v1100_v31  ;;  %v1348_v50 = vpop.permute.xlu0 %1347 }
 0x48b   : > { %v4505_v33 = vpop.eup %4504  ;;  %4226 = vmatmul.mubr.msk.f32.vlgmr.msra.gmra.mxu0 %vm867_vm4, %v890_v32 }
 0x48c   : > { %4236 = vmatpush3.msk.msra.mxu0 %vm902_vm5, %v1100_v31  ;;  %v1095_v34 = vmul.f32 %v4505_v33, %v4497_v18 }
 0x48d   : > { %v1098_v36 = vpop.permute.xlu1 %1097 }
 0x48e   : > { %4237 = vmatprep.subr.mxu0 %v1098_v36  ;;  %4239 = vmatprep.mubr.msk.f32.mxu0 %vm867_vm4, %v1095_v34  ;;  %v1642_v52 = vpop.permute.xlu0 %1641  ;;  %v765_v34 = vld [vmem:[%s5303_s7 + $0x10] sm:$0xff] }
 0x48f   : > { %v4507_v38 = vpop.eup %4506  ;;  %4238 = vmatpush3.msra.mxu0 %v1098_v36 }
 0x490   : > { %v1096_v39 = vmul.f32 %v4507_v38, %v4499_v20  ;;  %4242 = vmatprep.subr.mxu0 %v764_v41 }
 0x491   : > { %v1352_v51 = vpop.permute.xlu1 %1351 }
 0x492   : > { %4240 = vmatmul.mubr.msk.f32.vlgmr.msra.gmra.mxu0 %vm867_vm4, %v1096_v39  ;;  %v1636_v54 = vpop.permute.xlu0 %1635 }
 0x493   : > { %4243 = vmatpush3.msra.mxu0 %v764_v41 }
 0x494   : > { %4247 = vmatprep.subr.mxu0 %v763_v43 }
 0x495   : > { %v1350_v53 = vpop.permute.xlu1 %1349 }
 0x499   : > { %v1640_v55 = vpop.permute.xlu1 %1639 }
 0x49d   : > { %v1638_v56 = vpop.permute.xlu1 %1637 }
 0x54b   : > { %v4227_v44 = vpop.f32.mrf.mxu0 }
 0x54d   : > { %v971_v46 = vpop.f32.mrf.mxu0 }
 0x552   : > { %v4241_v47 = vpop.f32.mrf.mxu0 }
 0x554   : > { %v1176_v48 = vpop.f32.mrf.mxu0 }
 0x555   : > { %4244 = vmatprep.mubr.msk.f32.mxu0 %vm773_vm2, %v1176_v48 }
 0x556   : > { %4245 = vmatmul.mubr.msk.f32.vlgmr.msra.gmra.mxu0 %vm773_vm2, %v4241_v47 }
 0x557   : > { %4248 = vmatpush3.msra.mxu0 %v763_v43  ;;  %4249 = vmatprep.mubr.msk.f32.mxu0 %vm773_vm2, %v971_v46 }
 0x558   : > { %4252 = vmatprep.subr.msk.mxu0 %vm773_vm2, %v1354_v45 }
 0x55a   : > { %4250 = vmatmul.mubr.msk.f32.vlgmr.msra.gmra.mxu0 %vm773_vm2, %v4227_v44 }
 0x55b   : > { %4253 = vmatpush3.xpose.msk.msra.mxu0 %vm773_vm2, %v1354_v45  ;;  %4256 = vmatprep.mubr.msk.f32.mxu0 %vm773_vm2, %v1348_v50 }
 0x55c   : > { %4254 = vmatprep.subr.msk.mxu0 %vm773_vm2, %v1352_v51 }
 0x55f   : > { %4255 = vmatpush3.xpose.msk.msra.mxu0 %vm773_vm2, %v1352_v51 }
 0x560   : > { %4271 = vmatprep.subr.msk.mxu0 %vm773_vm2, %v1642_v52 }
 0x562   : > { %4257 = vmatmul.mubr.msk.f32.vlgmr.msra.gmra.mxu0 %vm773_vm2, %v1350_v53 }
 0x563   : > { %4272 = vmatpush3.xpose.msk.msra.mxu0 %vm773_vm2, %v1642_v52  ;;  %4275 = vmatprep.mubr.msk.f32.mxu0 %vm773_vm2, %v1636_v54 }
 0x564   : > { %4273 = vmatprep.subr.msk.mxu0 %vm773_vm2, %v1640_v55 }
 0x567   : > { %4274 = vmatpush3.xpose.msk.msra.mxu0 %vm773_vm2, %v1640_v55 }
 0x56a   : > { %4276 = vmatmul.mubr.msk.f32.vlgmr.msra.gmra.mxu0 %vm773_vm2, %v1638_v56 }
 0x616   : > { %v4246_v57 = vpop.f32.mrf.mxu0 }
 0x618   : > { %v1257_v58 = vpop.f32.mrf.mxu0 }
 0x61a   : > { %v4251_v59 = vpop.f32.mrf.mxu0 }
 0x61b   : > { %v4864_v60 = vadd.f32 %v4251_v59, %v4246_v57  ;;  %v766_v57 = vld [vmem:[%s5303_s7 + $0x18] sm:$0xff] }
 0x61c   : > { %v1338_v61 = vpop.f32.mrf.mxu0 }
 0x61d   : > { %v4866_v62 = vadd.f32 %v1338_v61, %v1257_v58 }
 0x622   : > { %v4258_v63 = vpop.f32.mrf.mxu0 }
 0x623   : > { %v1439_v0 = vmul.f32 0.35355338, %v4258_v63 }
 0x624   : > { %v1429_v1 = vpop.f32.mrf.mxu0 }
 0x625   : > { %v1438_v2 = vmul.f32 0.35355338, %v1429_v1  ;;  %v1441_v3 = vadd.f32 %v4796_v49, %v1439_v0 }
 0x627   : > { %v1445_v4 = vsel %vm871_vm3, %v1441_v3, -inf  ;;  %v1440_v5 = vadd.f32 %v4796_v49, %v1438_v2 }
 0x628   : > { %1446 = vmax.xlane.f32.xlu1 %v1445_v4 }
 0x629   : > { %v1442_v6 = vsel %vm867_vm4, %v1440_v5, -inf }
 0x62a   : > { %1443 = vmax.xlane.f32.xlu0 %v1442_v6  ;;  %v4277_v7 = vpop.f32.mrf.mxu0 }
 0x62b   : > { %v1727_v26 = vmul.f32 0.35355338, %v4277_v7 }
 0x62c   : > { %v1717_v8 = vpop.f32.mrf.mxu0 }
 0x62d   : > { %v1726_v9 = vmul.f32 0.35355338, %v1717_v8  ;;  %v1729_v27 = vadd.f32 %v4796_v49, %v1727_v26 }
 0x62f   : > { %v1728_v10 = vadd.f32 %v4796_v49, %v1726_v9  ;;  %v1733_v28 = vsel %vm871_vm3, %v1729_v27, -inf }
 0x631   : > { %v1730_v11 = vsel %vm867_vm4, %v1728_v10, -inf }
 0x639   : > { %1464 = vrot.lane.b32.xlu1 %v4761_v42, %s5324_s20 }
 0x65d   : > { %1731 = vmax.xlane.f32.xlu1 %v1730_v11 }
 0x6b1   : > { %v1447_v12 = vpop.xlane.xlu1 %1446 }
 0x6b2   : > { %v1449_v13 = vsub.f32 %v1441_v3, %v1447_v12  ;;  %v3956_v3 = vld [vmem:[%s5304_s8] ss:$0 sm:$0xff] }
 0x6b3   : > { %v1444_v14 = vpop.xlane.xlu0 %1443 }
 0x6b4   : > { %v1452_v15 = vmul.f32 1.442695, %v1449_v13  ;;  %v1448_v16 = vsub.f32 %v1440_v5, %v1444_v14 }
 0x6b5   : > { %v1465_v22 = vpop.permute.xlu1 %1464 }
 0x6b6   : > { %4508 = vpow2.f32 %v1452_v15  ;;  %v1450_v17 = vmul.f32 1.442695, %v1448_v16 }
 0x6b8   : > { %4510 = vpow2.f32 %v1450_v17 }
 0x6c3   : > { %v4509_v18 = vpop.eup %4508 }
 0x6c4   : > { %v1457_v19 = vsel %vm871_vm3, %v4509_v18, 0.0 }
 0x6c5   : > { %v4511_v20 = vpop.eup %4510  ;;  %1458 = vadd.xlane.f32.xlu0 %v1457_v19 }
 0x6c6   : > { %v1454_v21 = vsel %vm867_vm4, %v4511_v20, 0.0 }
 0x6c9   : > { %1455 = vadd.xlane.f32.xlu0 %v1454_v21  ;;  %v1979_v21 = vld [vmem:[%s5307_s11 + $0x8] sm:$0xff] }
 0x6df   : > { %1466 = vrot.lane.b32.xlu0 %v4759_v40, %s5324_s20  ;;  %s5348_s20 = smov 48  }
 0x6e6   : > { %v1732_v23 = vpop.xlane.xlu1 %1731 }
 0x6e7   : > { %v1736_v24 = vsub.f32 %v1728_v10, %v1732_v23 }
 0x6e9   : > { %v1738_v25 = vmul.f32 1.442695, %v1736_v24 }
 0x6eb   : > { %4512 = vpow2.f32 %v1738_v25 }
 0x6f8   : > { %v4513_v29 = vpop.eup %4512 }
 0x6f9   : > { %v1742_v30 = vsel %vm867_vm4, %v4513_v29, 0.0 }
 0x6fe   : > { %1734 = vmax.xlane.f32.xlu0 %v1733_v28 }
 0x702   : > { %1743 = vadd.xlane.f32.xlu0 %v1742_v30  ;;  %v3957_v30 = vld [vmem:[%s5305_s9] ss:$0 sm:$0xff] }
 0x718   : > { %1754 = vrot.lane.b32.xlu0 %v4759_v40, %s5322_s24 }
 0x74e   : > { %v1459_v31 = vpop.xlane.xlu0 %1458 }
 0x74f   : > { %4514 = vrcp.f32 %v1459_v31 }
 0x752   : > { %v1456_v32 = vpop.xlane.xlu0 %1455 }
 0x753   : > { %4516 = vrcp.f32 %v1456_v32 }
 0x756   : > { %v1467_v33 = vpop.permute.xlu0 %1466 }
 0x757   : > { %4259 = vmatprep.subr.msk.mxu1 %vm902_vm5, %v1467_v33 }
 0x758   : > { %4260 = vmatpush3.msk.msra.mxu1 %vm902_vm5, %v1467_v33 }
 0x759   : > { %4261 = vmatprep.subr.mxu1 %v1465_v22 }
 0x75a   : > { %4262 = vmatpush3.msra.mxu1 %v1465_v22  ;;  %v1978_v22 = vld [vmem:[%s5307_s11] sm:$0xff] }
 0x75b   : > { %4266 = vmatprep.subr.mxu1 %v765_v34 }
 0x75c   : > { %v4515_v36 = vpop.eup %4514 }
 0x75d   : > { %v1463_v40 = vmul.f32 %v4515_v36, %v4509_v18  ;;  %v3958_v36 = vld [vmem:[%s5306_s10] ss:$0 sm:$0xff] }
 0x760   : > { %v4517_v38 = vpop.eup %4516 }
 0x761   : > { %v1462_v39 = vmul.f32 %v4517_v38, %v4511_v20  ;;  %v1980_v20 = vld [vmem:[%s5307_s11 + $0x10] sm:$0xff] }
 0x763   : > { %4263 = vmatprep.mubr.msk.f32.mxu1 %vm867_vm4, %v1462_v39 }
 0x764   : > { %4264 = vmatmul.mubr.msk.f32.vlgmr.msra.gmra.mxu1 %vm867_vm4, %v1463_v40 }
 0x765   : > { %4267 = vmatpush3.msra.mxu1 %v765_v34 }
 0x787   : > { %v1735_v41 = vpop.xlane.xlu0 %1734 }
 0x788   : > { %v1737_v43 = vsub.f32 %v1729_v27, %v1735_v41  ;;  %v2103_v41 = vld [vmem:[%s5309_s13 + $0x78] sm:$0xff] }
 0x78a   : > { %v1740_v44 = vmul.f32 1.442695, %v1737_v43  ;;  %v2102_v43 = vld [vmem:[%s5309_s13 + $0x70] sm:$0xff] }
 0x78b   : > { %v1744_v45 = vpop.xlane.xlu0 %1743 }
 0x78c   : > { %4518 = vpow2.f32 %v1740_v44  ;;  %v2101_v44 = vld [vmem:[%s5309_s13 + $0x68] sm:$0xff] }
 0x78d   : > { %4520 = vrcp.f32 %v1744_v45  ;;  %v2100_v45 = vld [vmem:[%s5309_s13 + $0x60] sm:$0xff] }
 0x78f   : > { %v1755_v46 = vpop.permute.xlu0 %1754 }
 0x790   : > { %4278 = vmatprep.subr.msk.mxu1 %vm902_vm5, %v1755_v46 }
 0x799   : > { %v4519_v47 = vpop.eup %4518 }
 0x79a   : > { %v1745_v48 = vsel %vm871_vm3, %v4519_v47, 0.0  ;;  %v4521_v50 = vpop.eup %4520 }
 0x79b   : > { %1746 = vadd.xlane.f32.xlu1 %v1745_v48  ;;  %v1750_v54 = vmul.f32 %v4521_v50, %v4513_v29  ;;  %v2097_v48 = vld [vmem:[%s5309_s13 + $0x48] sm:$0xff]  ;;  %v2096_v50 = vld [vmem:[%s5309_s13 + $0x40] sm:$0xff] }
 0x7ac   : > { %1752 = vrot.lane.b32.xlu1 %v4761_v42, %s5322_s24  ;;  %s5349_s24 = smov 40  }
 0x824   : > { %v4265_v51 = vpop.f32.mrf.mxu1  ;;  %v1747_v52 = vpop.xlane.xlu1 %1746 }
 0x825   : > { %4522 = vrcp.f32 %v1747_v52  ;;  %v2094_v52 = vld [vmem:[%s5309_s13 + $0x30] sm:$0xff] }
 0x826   : > { %v1543_v53 = vpop.f32.mrf.mxu1 }
 0x827   : > { %4268 = vmatprep.mubr.msk.f32.mxu1 %vm773_vm2, %v1543_v53  ;;  %v2093_v53 = vld [vmem:[%s5309_s13 + $0x28] sm:$0xff] }
 0x828   : > { %4269 = vmatmul.mubr.msk.f32.vlgmr.msra.gmra.mxu1 %vm773_vm2, %v4265_v51  ;;  %v1753_v55 = vpop.permute.xlu1 %1752  ;;  %v2095_v51 = vld [vmem:[%s5309_s13 + $0x38] sm:$0xff] }
 0x829   : > { %4279 = vmatpush3.msk.msra.mxu1 %vm902_vm5, %v1755_v46  ;;  %4282 = vmatprep.mubr.msk.f32.mxu1 %vm867_vm4, %v1750_v54  ;;  %v2099_v46 = vld [vmem:[%s5309_s13 + $0x58] sm:$0xff]  ;;  %v2092_v54 = vld [vmem:[%s5309_s13 + $0x20] sm:$0xff] }
 0x82a   : > { %4280 = vmatprep.subr.mxu1 %v1753_v55 }
 0x82b   : > { %4281 = vmatpush3.msra.mxu1 %v1753_v55  ;;  %v2091_v55 = vld [vmem:[%s5309_s13 + $0x18] sm:$0xff] }
 0x82c   : > { %4285 = vmatprep.subr.mxu1 %v766_v57 }
 0x832   : > { %v4523_v56 = vpop.eup %4522 }
 0x833   : > { %v1751_v42 = vmul.f32 %v4523_v56, %v4519_v47  ;;  %v2098_v47 = vld [vmem:[%s5309_s13 + $0x50] sm:$0xff] }
 0x834   : > { %v2090_v56 = vld [vmem:[%s5309_s13 + $0x10] sm:$0xff] }
 0x835   : > { %4283 = vmatmul.mubr.msk.f32.vlgmr.msra.gmra.mxu1 %vm867_vm4, %v1751_v42  ;;  %v2089_v42 = vld [vmem:[%s5309_s13 + $0x8] sm:$0xff] }
 0x836   : > { %4286 = vmatpush3.msra.mxu1 %v766_v57  ;;  %v2088_v57 = vld [vmem:[%s5309_s13] sm:$0xff] }
 0x837   : > { %4301 = vmatprep.subr.mxu1 %v2103_v41 }
 0x8e8   : > { %v4270_v58 = vpop.f32.mrf.mxu1 }
 0x8e9   : > { %v1634_v59 = vadd.f32 %v4270_v58, %v4864_v60  ;;  %v3959_v58 = vld [vmem:[%s5308_s12] ss:$0 sm:$0xff] }
 0x8ea   : > { %v1624_v61 = vpop.f32.mrf.mxu1 }
 0x8eb   : > { %v1633_v63 = vadd.f32 %v1624_v61, %v4866_v62 }
 0x8f5   : > { %v4284_v0 = vpop.f32.mrf.mxu1 }
 0x8f7   : > { %v1831_v1 = vpop.f32.mrf.mxu1 }
 0x8f8   : > { %4287 = vmatprep.mubr.msk.f32.mxu1 %vm773_vm2, %v1831_v1 }
 0x8f9   : > { %4288 = vmatmul.mubr.msk.f32.vlgmr.msra.gmra.mxu1 %vm773_vm2, %v4284_v0 }
 0x8fa   : > { %4302 = vmatpush3.msra.mxu1 %v2103_v41 }
 0x8fb   : > { %4303 = vmatprep.subr.mxu1 %v2102_v43 }
 0x8fc   : > { %4304 = vmatpush3.msra.mxu1 %v2102_v43 }
 0x8fd   : > { %4305 = vmatprep.subr.mxu1 %v2101_v44 }
 0x8fe   : > { %4306 = vmatpush3.msra.mxu1 %v2101_v44 }
 0x8ff   : > { %4307 = vmatprep.subr.mxu1 %v2100_v45 }
 0x900   : > { %4308 = vmatpush3.msra.mxu1 %v2100_v45 }
 0x901   : > { %4309 = vmatprep.subr.mxu1 %v2099_v46 }
 0x902   : > { %4310 = vmatpush3.msra.mxu1 %v2099_v46 }
 0x903   : > { %4311 = vmatprep.subr.mxu1 %v2098_v47 }
 0x904   : > { %4312 = vmatpush3.msra.mxu1 %v2098_v47 }
 0x905   : > { %4313 = vmatprep.subr.mxu1 %v2097_v48 }
 0x906   : > { %4314 = vmatpush3.msra.mxu1 %v2097_v48  ;;  %v3963_v48 = vld [vmem:[%s5311_s15] ss:$0 sm:$0xff] }
 0x907   : > { %4315 = vmatprep.subr.mxu1 %v2096_v50 }
 0x908   : > { %4316 = vmatpush3.msra.mxu1 %v2096_v50 }
 0x909   : > { %4317 = vmatprep.subr.mxu1 %v2095_v51 }
 0x90a   : > { %4318 = vmatpush3.msra.mxu1 %v2095_v51 }
 0x90b   : > { %4319 = vmatprep.subr.mxu1 %v2094_v52 }
 0x90c   : > { %4320 = vmatpush3.msra.mxu1 %v2094_v52 }
 0x90d   : > { %4321 = vmatprep.subr.mxu1 %v2093_v53 }
 0x90e   : > { %4322 = vmatpush3.msra.mxu1 %v2093_v53 }
 0x90f   : > { %4323 = vmatprep.subr.mxu1 %v2092_v54 }
 0x910   : > { %4324 = vmatpush3.msra.mxu1 %v2092_v54  ;;  %v3964_v54 = vld [vmem:[%s5312_s16] ss:$0 sm:$0xff] }
 0x911   : > { %4325 = vmatprep.subr.mxu1 %v2091_v55 }
 0x912   : > { %4326 = vmatpush3.msra.mxu1 %v2091_v55 }
 0x913   : > { %4327 = vmatprep.subr.mxu1 %v2090_v56 }
 0x914   : > { %4328 = vmatpush3.msra.mxu1 %v2090_v56 }
 0x915   : > { %4329 = vmatprep.subr.mxu1 %v2089_v42 }
 0x916   : > { %4330 = vmatpush3.msra.mxu1 %v2089_v42 }
 0x917   : > { %4331 = vmatprep.subr.mxu1 %v2088_v57 }
 0x918   : > { %4332 = vmatpush3.msra.mxu1 %v2088_v57  ;;  %v3970_v57 = vld [vmem:[%s5302_s6 + $0x1] ss:$0 sm:$0xff] }
 0x9b9   : > { %v4289_v2 = vpop.f32.mrf.mxu1 }
 0x9ba   : > { %v1922_v4 = vadd.f32 %v4289_v2, %v1634_v59 }
 0x9bb   : > { %v1912_v5 = vpop.f32.mrf.mxu1 }
 0x9bc   : > { %v1931_v6 = vadd.f32 %v3956_v3, %v1922_v4  ;;  %v1921_v7 = vadd.f32 %v1912_v5, %v1633_v63 }
 0x9be   : > { %v1930_v8 = vadd.f32 %v3956_v3, %v1921_v7  ;;  %v1933_v60 = vadd.f32 %v1931_v6, %v4752_v37 }
 0x9c0   : > { %v1939_v62 = vsel %vm629_vm1, %v1933_v60, 0.0  ;;  %v1932_v9 = vadd.f32 %v1930_v8, %v4748_v35  ;;  %v1981_v35 = vld [vmem:[%s5307_s11 + $0x18] sm:$0xff] }
 0x9c1   : > { %1940 = vadd.xlane.f32.xlu0 %v1939_v62  ;;  %4290 = vmatprep.subr.mxu0 %v1981_v35 }
 0x9c2   : > { %v1936_v10 = vsel %vm625_vm0, %v1932_v9, 0.0  ;;  %4291 = vmatpush3.msra.mxu0 %v1981_v35 }
 0x9c3   : > { %1937 = vadd.xlane.f32.xlu1 %v1936_v10  ;;  %4292 = vmatprep.subr.mxu0 %v1980_v20 }
 0x9c4   : > { %4293 = vmatpush3.msra.mxu0 %v1980_v20 }
 0x9c5   : > { %4294 = vmatprep.subr.mxu0 %v1979_v21 }
 0x9c6   : > { %4295 = vmatpush3.msra.mxu0 %v1979_v21 }
 0x9c7   : > { %4296 = vmatprep.subr.mxu0 %v1978_v22 }
 0x9c8   : > { %4297 = vmatpush3.msra.mxu0 %v1978_v22 }
 0xa4a   : > { %v1941_v11 = vpop.xlane.xlu0 %1940 }
 0xa4b   : > { %v1943_v12 = vmul.f32 0.03125, %v1941_v11 }
 0xa4c   : > { %v1938_v13 = vpop.xlane.xlu1 %1937 }
 0xa4d   : > { %v1945_v14 = vsub.f32 %v1933_v60, %v1943_v12  ;;  %v1942_v15 = vmul.f32 0.03125, %v1938_v13 }
 0xa4f   : > { %v1944_v16 = vsub.f32 %v1932_v9, %v1942_v15  ;;  %v1947_v17 = vmul.f32 %v1945_v14, %v1945_v14 }
 0xa51   : > { %v1951_v18 = vsel %vm629_vm1, %v1947_v17, 0.0  ;;  %v1946_v19 = vmul.f32 %v1944_v16, %v1944_v16  ;;  %v3962_v17 = vld [vmem:[%s5310_s14] ss:$0 sm:$0xff] }
 0xa52   : > { %1952 = vadd.xlane.f32.xlu1 %v1951_v18 }
 0xa53   : > { %v1948_v37 = vsel %vm625_vm0, %v1946_v19, 0.0 }
 0xa54   : > { %1949 = vadd.xlane.f32.xlu0 %v1948_v37 }
 0xadb   : > { %v1953_v23 = vpop.xlane.xlu1 %1952 }
 0xadc   : > { %v1955_v24 = vmul.f32 0.03125, %v1953_v23 }
 0xadd   : > { %v1950_v25 = vpop.xlane.xlu0 %1949 }
 0xade   : > { %v1957_v26 = vadd.f32 1e-05, %v1955_v24  ;;  %v1954_v27 = vmul.f32 0.03125, %v1950_v25 }
 0xae0   : > { %4524 = vrsqrt.f32 %v1957_v26  ;;  %v1956_v28 = vadd.f32 1e-05, %v1954_v27 }
 0xae2   : > { %4526 = vrsqrt.f32 %v1956_v28 }
 0xaed   : > { %v4525_v29 = vpop.eup %4524 }
 0xaee   : > { %v1961_v31 = vmul.f32 %v4525_v29, %v1945_v14 }
 0xaef   : > { %v4527_v32 = vpop.eup %4526 }
 0xaf0   : > { %v1960_v33 = vmul.f32 %v4527_v32, %v1944_v16  ;;  %v1969_v34 = vmul.f32 %v3957_v30, %v1961_v31 }
 0xaf2   : > { %v1968_v38 = vmul.f32 %v3957_v30, %v1960_v33  ;;  %v4937_v40 = vadd.f32 %v3958_v36, %v1969_v34  ;;  %v3968_v34 = vld [vmem:[%s5301_s5 + $0x38] sm:$0xff] }
 0xaf3   : > { %4336 = vmatprep.subr.mxu0 %v3968_v34 }
 0xaf4   : > { %v4935_v39 = vadd.f32 %v3958_v36, %v1968_v38  ;;  %v3967_v36 = vld [vmem:[%s5301_s5 + $0x30] sm:$0xff]  ;;  %v3966_v38 = vld [vmem:[%s5301_s5 + $0x28] sm:$0xff] }
 0xaf6   : > { %4298 = vmatprep.mubr.msk.f32.mxu0 %vm625_vm0, %v4935_v39 }
 0xaf7   : > { %4299 = vmatmul.mubr.msk.f32.vlgmr.msra.gmra.mxu0 %vm625_vm0, %v4937_v40 }
 0xaf8   : > { %4337 = vmatpush3.msra.mxu0 %v3968_v34 }
 0xaf9   : > { %4338 = vmatprep.subr.mxu0 %v3967_v36 }
 0xafa   : > { %4339 = vmatpush3.msra.mxu0 %v3967_v36 }
 0xafb   : > { %4340 = vmatprep.subr.mxu0 %v3966_v38 }
 0xafc   : > { %4341 = vmatpush3.msra.mxu0 %v3966_v38  ;;  %v5079_v38 = vld [vmem:[%s4793_s26] ss:$0 sm:$0xff]  ;;  %s5345_s26 = smov 112  }
 0xbb7   : > { %v4300_v59 = vpop.f32.mrf.mxu0 }
 0xbb8   : > { %v2067_v61 = vadd.f32 %v4300_v59, %v3959_v58 }
 0xbb9   : > { %v2061_v63 = vpop.f32.mrf.mxu0 }
 0xbba   : > { %v2071_v0 = vmul.f32 %v2067_v61, %v2067_v61  ;;  %v2062_v1 = vadd.f32 %v3959_v58, %v2061_v63 }
 0xbbc   : > { %v2073_v2 = vmul.f32 %v2071_v0, %v2067_v61  ;;  %v2070_v3 = vmul.f32 %v2062_v1, %v2062_v1 }
 0xbbe   : > { %v2075_v4 = vmul.f32 0.044715, %v2073_v2  ;;  %v2072_v5 = vmul.f32 %v2070_v3, %v2062_v1 }
 0xbc0   : > { %v2077_v6 = vadd.f32 %v2075_v4, %v2067_v61  ;;  %v2074_v7 = vmul.f32 0.044715, %v2072_v5 }
 0xbc2   : > { %v2079_v8 = vmul.f32 0.7978846, %v2077_v6  ;;  %v2076_v60 = vadd.f32 %v2074_v7, %v2062_v1 }
 0xbc4   : > { %4528 = vtanh.f32 %v2079_v8  ;;  %v2078_v62 = vmul.f32 0.7978846, %v2076_v60 }
 0xbc6   : > { %4530 = vtanh.f32 %v2078_v62 }
 0xbd1   : > { %v4529_v9 = vpop.eup %4528 }
 0xbd2   : > { %v2083_v10 = vadd.f32 1.0, %v4529_v9 }
 0xbd3   : > { %v4531_v11 = vpop.eup %4530 }
 0xbd4   : > { %v2082_v12 = vadd.f32 1.0, %v4531_v11  ;;  %v2085_v13 = vmul.f32 0.5, %v2083_v10 }
 0xbd6   : > { %v2084_v14 = vmul.f32 0.5, %v2082_v12  ;;  %v2087_v16 = vmul.f32 %v2085_v13, %v2067_v61 }
 0xbd8   : > { %v2086_v15 = vmul.f32 %v2084_v14, %v2062_v1 }
 0xbda   : > { %4333 = vmatprep.mubr.f32.mxu1 %v2086_v15 }
 0xbdb   : > { %4334 = vmatmul.mubr.f32.vlgmr.msra.gmra.mxu1 %v2087_v16 }
 0xc9b   : > { %v4335_v18 = vpop.f32.mrf.mxu1 }
 0xc9c   : > { %v2183_v19 = vadd.f32 %v4335_v18, %v3962_v17 }
 0xc9d   : > { %v2177_v37 = vpop.f32.mrf.mxu1 }
 0xc9e   : > { %v2178_v35 = vadd.f32 %v3962_v17, %v2177_v37  ;;  %v2187_v20 = vadd.f32 %v2183_v19, %v4937_v40 }
 0xca0   : > { %v2193_v21 = vsel %vm629_vm1, %v2187_v20, 0.0  ;;  %v2186_v22 = vadd.f32 %v2178_v35, %v4935_v39  ;;  %v3965_v39 = vld [vmem:[%s5301_s5 + $0x20] sm:$0xff] }
 0xca1   : > { %2194 = vadd.xlane.f32.xlu1 %v2193_v21  ;;  %4342 = vmatprep.subr.mxu0 %v3965_v39 }
 0xca2   : > { %v2190_v23 = vsel %vm625_vm0, %v2186_v22, 0.0  ;;  %4343 = vmatpush3.msra.mxu0 %v3965_v39 }
 0xca3   : > { %2191 = vadd.xlane.f32.xlu0 %v2190_v23 }
 0xd2a   : > { %v2195_v24 = vpop.xlane.xlu1 %2194 }
 0xd2b   : > { %v2197_v25 = vmul.f32 0.03125, %v2195_v24 }
 0xd2c   : > { %v2192_v26 = vpop.xlane.xlu0 %2191 }
 0xd2d   : > { %v2199_v27 = vsub.f32 %v2187_v20, %v2197_v25  ;;  %v2196_v28 = vmul.f32 0.03125, %v2192_v26 }
 0xd2f   : > { %v2198_v29 = vsub.f32 %v2186_v22, %v2196_v28  ;;  %v2201_v30 = vmul.f32 %v2199_v27, %v2199_v27 }
 0xd31   : > { %v2205_v31 = vsel %vm629_vm1, %v2201_v30, 0.0  ;;  %v2200_v32 = vmul.f32 %v2198_v29, %v2198_v29 }
 0xd32   : > { %2206 = vadd.xlane.f32.xlu1 %v2205_v31 }
 0xd33   : > { %v2202_v33 = vsel %vm625_vm0, %v2200_v32, 0.0 }
 0xd34   : > { %2203 = vadd.xlane.f32.xlu0 %v2202_v33 }
 0xdbb   : > { %v2207_v40 = vpop.xlane.xlu1 %2206 }
 0xdbc   : > { %v2209_v41 = vmul.f32 0.03125, %v2207_v40 }
 0xdbd   : > { %v2204_v43 = vpop.xlane.xlu0 %2203 }
 0xdbe   : > { %v2211_v44 = vadd.f32 1e-05, %v2209_v41  ;;  %v2208_v45 = vmul.f32 0.03125, %v2204_v43  ;;  %v3974_v41 = vld [vmem:[%s5303_s7 + $0x28] sm:$0xff] }
 0xdc0   : > { %4532 = vrsqrt.f32 %v2211_v44  ;;  %v2210_v46 = vadd.f32 1e-05, %v2208_v45 }
 0xdc2   : > { %4534 = vrsqrt.f32 %v2210_v46 }
 0xdcd   : > { %v4533_v47 = vpop.eup %4532 }
 0xdce   : > { %v2215_v50 = vmul.f32 %v4533_v47, %v2199_v27 }
 0xdcf   : > { %v4535_v51 = vpop.eup %4534 }
 0xdd0   : > { %v2214_v52 = vmul.f32 %v4535_v51, %v2198_v29  ;;  %v2223_v53 = vmul.f32 %v3963_v48, %v2215_v50 }
 0xdd2   : > { %v2222_v55 = vmul.f32 %v3963_v48, %v2214_v52  ;;  %v5023_v42 = vadd.f32 %v3964_v54, %v2223_v53 }
 0xdd4   : > { %v5021_v56 = vadd.f32 %v3964_v54, %v2222_v55 }
 0xdd6   : > { %4344 = vmatprep.mubr.msk.f32.mxu0 %vm625_vm0, %v5021_v56 }
 0xdd7   : > { %4345 = vmatmul.mubr.msk.f32.vlgmr.msra.gmra.mxu0 %vm625_vm0, %v5023_v42 }
 0xe97   : > { %v4346_v58 = vpop.f32.mrf.mxu0 }
 0xe98   : > { %v5032_v59 = vadd.f32 %v4346_v58, %v3970_v57 }
 0xe99   : > { %v2317_v61 = vpop.f32.mrf.mxu0 }
 0xe9a   : > { %v5034_v63 = vadd.f32 %v3970_v57, %v2317_v61  ;;  %2335 = vrot.lane.b32.xlu0 %v5032_v59, %s4594_s2  ;;  %v3973_v61 = vld [vmem:[%s5303_s7 + $0x20] sm:$0xff] }
 0xe9c   : > { %2333 = vrot.lane.b32.xlu1 %v5034_v63, %s4594_s2  ;;  %4351 = vmatprep.mubr.msk.f32.mxu0 %vm773_vm2, %v5034_v63  ;;  %s5342_s2 = smov 120  }
 0xf0c   : > { %v2336_v0 = vpop.permute.xlu0 %2335 }
 0xf0d   : > { %4347 = vmatprep.subr.msk.mxu0 %vm773_vm2, %v2336_v0 }
 0xf0e   : > { %4348 = vmatpush3.xpose.msk.msra.mxu0 %vm773_vm2, %v2336_v0  ;;  %v2334_v1 = vpop.permute.xlu1 %2333 }
 0xf0f   : > { %4349 = vmatprep.subr.msk.mxu0 %vm773_vm2, %v2334_v1 }
 0xf12   : > { %4350 = vmatpush3.xpose.msk.msra.mxu0 %vm773_vm2, %v2334_v1 }
 0xf15   : > { %4352 = vmatmul.mubr.msk.f32.vlgmr.msra.gmra.mxu0 %vm773_vm2, %v5032_v59 }
 0xfd5   : > { %v4353_v2 = vpop.f32.mrf.mxu0 }
 0xfd6   : > { %v2421_v3 = vmul.f32 0.35355338, %v4353_v2 }
 0xfd7   : > { %v2411_v4 = vpop.f32.mrf.mxu0 }
 0xfd8   : > { %v2420_v5 = vmul.f32 0.35355338, %v2411_v4  ;;  %v2423_v6 = vadd.f32 %v4796_v49, %v2421_v3 }
 0xfda   : > { %v2427_v7 = vsel %vm871_vm3, %v2423_v6, -inf  ;;  %v2422_v8 = vadd.f32 %v4796_v49, %v2420_v5 }
 0xfdb   : > { %2428 = vmax.xlane.f32.xlu0 %v2427_v7 }
 0xfdc   : > { %v2424_v60 = vsel %vm867_vm4, %v2422_v8, -inf }
 0xfdd   : > { %2425 = vmax.xlane.f32.xlu1 %v2424_v60 }
0x1064   : > { %v2429_v62 = vpop.xlane.xlu0 %2428 }
0x1065   : > { %v2431_v9 = vsub.f32 %v2423_v6, %v2429_v62 }
0x1066   : > { %v2426_v10 = vpop.xlane.xlu1 %2425 }
0x1067   : > { %v2434_v11 = vmul.f32 1.442695, %v2431_v9  ;;  %v2430_v12 = vsub.f32 %v2422_v8, %v2426_v10 }
0x1069   : > { %4536 = vpow2.f32 %v2434_v11  ;;  %v2432_v13 = vmul.f32 1.442695, %v2430_v12 }
0x106b   : > { %4538 = vpow2.f32 %v2432_v13 }
0x1076   : > { %v4537_v14 = vpop.eup %4536 }
0x1077   : > { %v2439_v15 = vsel %vm871_vm3, %v4537_v14, 0.0 }
0x1078   : > { %v4539_v16 = vpop.eup %4538  ;;  %2440 = vadd.xlane.f32.xlu1 %v2439_v15 }
0x1079   : > { %v2436_v17 = vsel %vm867_vm4, %v4539_v16, 0.0 }
0x107a   : > { %2437 = vadd.xlane.f32.xlu0 %v2436_v17 }
0x1089   : > { %2446 = vrot.lane.b32.xlu1 %v5034_v63, %s4596_s27 }
0x108d   : > { %2540 = vrot.lane.b32.xlu1 %v5032_v59, %s4593_s1 }
0x1090   : > { %2448 = vrot.lane.b32.xlu0 %v5032_v59, %s4596_s27  ;;  %s5350_s27 = sshll.u32 %s5352_s30, 4 }
0x1091   : > { %2538 = vrot.lane.b32.xlu1 %v5034_v63, %s4593_s1 }
0x1094   : > { %2534 = vrot.lane.b32.xlu0 %v5034_v63, %s5342_s2 }
0x1095   : > { %2536 = vrot.lane.b32.xlu1 %v5032_v59, %s5342_s2 }
0x1101   : > { %v2441_v18 = vpop.xlane.xlu1 %2440 }
0x1102   : > { %4540 = vrcp.f32 %v2441_v18 }
0x1103   : > { %v2438_v19 = vpop.xlane.xlu0 %2437 }
0x1104   : > { %4542 = vrcp.f32 %v2438_v19 }
0x1105   : > { %v2447_v37 = vpop.permute.xlu1 %2446 }
0x1107   : > { %v2449_v35 = vpop.permute.xlu0 %2448 }
0x1108   : > { %4354 = vmatprep.subr.msk.mxu0 %vm902_vm5, %v2449_v35 }
0x1109   : > { %4355 = vmatpush3.msk.msra.mxu0 %vm902_vm5, %v2449_v35  ;;  %v2541_v20 = vpop.permute.xlu1 %2540 }
0x110a   : > { %4356 = vmatprep.subr.mxu0 %v2447_v37 }
0x110b   : > { %4357 = vmatpush3.msra.mxu0 %v2447_v37  ;;  %v2535_v25 = vpop.permute.xlu0 %2534 }
0x110c   : > { %4361 = vmatprep.subr.msk.mxu0 %vm773_vm2, %v2541_v20 }
0x110d   : > { %v2539_v26 = vpop.permute.xlu1 %2538 }
0x110f   : > { %v4541_v21 = vpop.eup %4540 }
0x1110   : > { %v2445_v24 = vmul.f32 %v4541_v21, %v4537_v14 }
0x1111   : > { %v4543_v22 = vpop.eup %4542  ;;  %v2537_v27 = vpop.permute.xlu1 %2536 }
0x1112   : > { %v2444_v23 = vmul.f32 %v4543_v22, %v4539_v16 }
0x1114   : > { %4358 = vmatprep.mubr.msk.f32.mxu0 %vm867_vm4, %v2444_v23 }
0x1115   : > { %4359 = vmatmul.mubr.msk.f32.vlgmr.msra.gmra.mxu0 %vm867_vm4, %v2445_v24 }
0x1116   : > { %4362 = vmatpush3.xpose.msk.msra.mxu0 %vm773_vm2, %v2541_v20  ;;  %4365 = vmatprep.mubr.msk.f32.mxu0 %vm773_vm2, %v2535_v25 }
0x1117   : > { %4363 = vmatprep.subr.msk.mxu0 %vm773_vm2, %v2539_v26 }
0x111a   : > { %4364 = vmatpush3.xpose.msk.msra.mxu0 %vm773_vm2, %v2539_v26 }
0x111b   : > { %4375 = vmatprep.subr.mxu0 %v3974_v41 }
0x111d   : > { %4366 = vmatmul.mubr.msk.f32.vlgmr.msra.gmra.mxu0 %vm773_vm2, %v2537_v27 }
0x111e   : > { %4376 = vmatpush3.msra.mxu0 %v3974_v41 }
0x11d5   : > { %v4360_v28 = vpop.f32.mrf.mxu0 }
0x11d7   : > { %v2525_v29 = vpop.f32.mrf.mxu0 }
0x11dd   : > { %v4367_v30 = vpop.f32.mrf.mxu0 }
0x11de   : > { %v2626_v31 = vmul.f32 0.35355338, %v4367_v30 }
0x11df   : > { %v2616_v32 = vpop.f32.mrf.mxu0 }
0x11e0   : > { %v2625_v33 = vmul.f32 0.35355338, %v2616_v32  ;;  %v2628_v34 = vadd.f32 %v4796_v49, %v2626_v31 }
0x11e2   : > { %v2632_v36 = vsel %vm871_vm3, %v2628_v34, -inf  ;;  %v2627_v39 = vadd.f32 %v5079_v38, %v2625_v33 }
0x11e3   : > { %2633 = vmax.xlane.f32.xlu1 %v2632_v36 }
0x11e4   : > { %v2629_v40 = vsel %vm867_vm4, %v2627_v39, -inf }
0x11e5   : > { %2630 = vmax.xlane.f32.xlu0 %v2629_v40 }
0x11f4   : > { %2651 = vrot.lane.b32.xlu1 %v5034_v63, %s5343_s25 }
0x11f8   : > { %2907 = vrot.lane.b32.xlu1 %v5032_v59, %s5344_s3 }
0x11fc   : > { %2905 = vrot.lane.b32.xlu1 %v5034_v63, %s5344_s3 }
0x1200   : > { %2903 = vrot.lane.b32.xlu1 %v5032_v59, %s5345_s26 }
0x1204   : > { %3193 = vrot.lane.b32.xlu1 %v5034_v63, %s5346_s29 }
0x1208   : > { %3191 = vrot.lane.b32.xlu1 %v5032_v59, %s5347_s21 }
0x126c   : > { %v2634_v49 = vpop.xlane.xlu1 %2633 }
0x126d   : > { %v2636_v43 = vsub.f32 %v2628_v34, %v2634_v49 }
0x126e   : > { %v2631_v44 = vpop.xlane.xlu0 %2630 }
0x126f   : > { %v2639_v45 = vmul.f32 1.442695, %v2636_v43  ;;  %v2635_v46 = vsub.f32 %v2627_v39, %v2631_v44 }
0x1270   : > { %v2652_v47 = vpop.permute.xlu1 %2651 }
0x1271   : > { %4544 = vpow2.f32 %v2639_v45  ;;  %v2637_v48 = vmul.f32 1.442695, %v2635_v46 }
0x1273   : > { %4546 = vpow2.f32 %v2637_v48 }
0x1274   : > { %v2908_v50 = vpop.permute.xlu1 %2907 }
0x1275   : > { %4385 = vmatprep.subr.msk.mxu0 %vm773_vm2, %v2908_v50 }
0x1278   : > { %v2906_v6 = vpop.permute.xlu1 %2905 }
0x127c   : > { %v2904_v60 = vpop.permute.xlu1 %2903 }
0x127e   : > { %v4545_v51 = vpop.eup %4544 }
0x127f   : > { %v2644_v52 = vsel %vm871_vm3, %v4545_v51, 0.0 }
0x1280   : > { %v4547_v53 = vpop.eup %4546  ;;  %2645 = vadd.xlane.f32.xlu0 %v2644_v52  ;;  %v3194_v9 = vpop.permute.xlu1 %3193 }
0x1281   : > { %v2641_v54 = vsel %vm867_vm4, %v4547_v53, 0.0 }
0x1284   : > { %2642 = vadd.xlane.f32.xlu0 %v2641_v54  ;;  %v3192_v10 = vpop.permute.xlu1 %3191 }
0x129a   : > { %2653 = vrot.lane.b32.xlu0 %v5032_v59, %s5343_s25 }
0x129e   : > { %2901 = vrot.lane.b32.xlu0 %v5034_v63, %s5345_s26  ;;  %s616_s26 = scalar_lea.vmem %s5315_s19, %s5350_s27 }
0x12a2   : > { %3195 = vrot.lane.b32.xlu0 %v5032_v59, %s5346_s29 }
0x12a6   : > { %3189 = vrot.lane.b32.xlu0 %v5034_v63, %s5347_s21 }
0x1309   : > { %v2646_v55 = vpop.xlane.xlu0 %2645 }
0x130a   : > { %4548 = vrcp.f32 %v2646_v55 }
0x130d   : > { %v2643_v57 = vpop.xlane.xlu0 %2642 }
0x130e   : > { %4550 = vrcp.f32 %v2643_v57 }
0x1311   : > { %v2654_v58 = vpop.permute.xlu0 %2653 }
0x1312   : > { %4368 = vmatprep.subr.msk.mxu1 %vm902_vm5, %v2654_v58 }
0x1313   : > { %4369 = vmatpush3.msk.msra.mxu1 %vm902_vm5, %v2654_v58 }
0x1314   : > { %4370 = vmatprep.subr.mxu1 %v2652_v47 }
0x1315   : > { %4371 = vmatpush3.msra.mxu1 %v2652_v47  ;;  %v2902_v4 = vpop.permute.xlu0 %2901 }
0x1316   : > { %4380 = vmatprep.subr.mxu1 %v3973_v61 }
0x1317   : > { %v4549_v0 = vpop.eup %4548 }
0x1318   : > { %v2650_v3 = vmul.f32 %v4549_v0, %v4545_v51 }
0x1319   : > { %v3196_v8 = vpop.permute.xlu0 %3195 }
0x131b   : > { %v4551_v1 = vpop.eup %4550 }
0x131c   : > { %v2649_v2 = vmul.f32 %v4551_v1, %v4547_v53 }
0x131d   : > { %v3190_v62 = vpop.permute.xlu0 %3189 }
0x131e   : > { %4372 = vmatprep.mubr.msk.f32.mxu1 %vm867_vm4, %v2649_v2 }
0x131f   : > { %4373 = vmatmul.mubr.msk.f32.vlgmr.msra.gmra.mxu1 %vm867_vm4, %v2650_v3 }
0x1320   : > { %4382 = vmatprep.mubr.msk.f32.mxu1 %vm773_vm2, %v2525_v29  ;;  %4381 = vmatpush3.msra.mxu1 %v3973_v61 }
0x1323   : > { %4383 = vmatmul.mubr.msk.f32.vlgmr.msra.gmra.mxu1 %vm773_vm2, %v4360_v28 }
0x13df   : > { %v4374_v5 = vpop.f32.mrf.mxu1 }
0x13e1   : > { %v2730_v7 = vpop.f32.mrf.mxu1 }
0x13e2   : > { %4377 = vmatprep.mubr.msk.f32.mxu0 %vm773_vm2, %v2730_v7 }
0x13e3   : > { %4378 = vmatmul.mubr.msk.f32.vlgmr.msra.gmra.mxu0 %vm773_vm2, %v4374_v5  ;;  %v4384_v1 = vpop.f32.mrf.mxu1 }
0x13e4   : > { %4386 = vmatpush3.xpose.msk.msra.mxu0 %vm773_vm2, %v2908_v50  ;;  %4389 = vmatprep.mubr.msk.f32.mxu0 %vm773_vm2, %v2902_v4 }
0x13e5   : > { %4387 = vmatprep.subr.msk.mxu0 %vm773_vm2, %v2906_v6  ;;  %v2892_v2 = vpop.f32.mrf.mxu1 }
0x13e8   : > { %4388 = vmatpush3.xpose.msk.msra.mxu0 %vm773_vm2, %v2906_v6 }
0x13e9   : > { %4404 = vmatprep.subr.msk.mxu0 %vm773_vm2, %v3196_v8 }
0x13eb   : > { %4390 = vmatmul.mubr.msk.f32.vlgmr.msra.gmra.mxu0 %vm773_vm2, %v2904_v60 }
0x13ec   : > { %4405 = vmatpush3.xpose.msk.msra.mxu0 %vm773_vm2, %v3196_v8  ;;  %4408 = vmatprep.mubr.msk.f32.mxu0 %vm773_vm2, %v3190_v62  ;;  %v3976_v62 = vld [vmem:[%s5303_s7 + $0x38] sm:$0xff] }
0x13ed   : > { %4406 = vmatprep.subr.msk.mxu0 %vm773_vm2, %v3194_v9 }
0x13f0   : > { %4407 = vmatpush3.xpose.msk.msra.mxu0 %vm773_vm2, %v3194_v9 }
0x13f3   : > { %4409 = vmatmul.mubr.msk.f32.vlgmr.msra.gmra.mxu0 %vm773_vm2, %v3192_v10 }
0x14a3   : > { %v5131_v11 = vpop.f32.mrf.mxu0 }
0x14a4   : > { %v2898_v9 = vadd.f32 %v4384_v1, %v5131_v11  ;;  %v4038_v1 = vld [vmem:[%s5309_s13 + $0xd8] sm:$0xff] }
0x14a5   : > { %v5133_v12 = vpop.f32.mrf.mxu0 }
0x14ab   : > { %v4391_v13 = vpop.f32.mrf.mxu0 }
0x14ac   : > { %v2993_v14 = vmul.f32 0.35355338, %v4391_v13  ;;  %v2893_v13 = vadd.f32 %v2892_v2, %v5133_v12  ;;  %v4037_v2 = vld [vmem:[%s5309_s13 + $0xd0] sm:$0xff] }
0x14ad   : > { %v2983_v15 = vpop.f32.mrf.mxu0 }
0x14ae   : > { %v2992_v16 = vmul.f32 0.35355338, %v2983_v15  ;;  %v2995_v17 = vadd.f32 %v5079_v38, %v2993_v14 }
0x14b0   : > { %v2999_v18 = vsel %vm871_vm3, %v2995_v17, -inf  ;;  %v2994_v19 = vadd.f32 %v5079_v38, %v2992_v16 }
0x14b1   : > { %3000 = vmax.xlane.f32.xlu1 %v2999_v18 }
0x14b2   : > { %v2996_v37 = vsel %vm867_vm4, %v2994_v19, -inf }
0x14b3   : > { %2997 = vmax.xlane.f32.xlu0 %v2996_v37  ;;  %v4410_v35 = vpop.f32.mrf.mxu0  ;;  %v4014_v37 = vld [vmem:[%s5304_s8 + $0x1] ss:$0 sm:$0xff] }
0x14b4   : > { %v3281_v41 = vmul.f32 0.35355338, %v4410_v35 }
0x14b5   : > { %v3271_v20 = vpop.f32.mrf.mxu0 }
0x14b6   : > { %v3280_v21 = vmul.f32 0.35355338, %v3271_v20  ;;  %v3283_v49 = vadd.f32 %v5079_v38, %v3281_v41 }
0x14b8   : > { %v3282_v22 = vadd.f32 %v5079_v38, %v3280_v21  ;;  %v3287_v43 = vsel %vm871_vm3, %v3283_v49, -inf  ;;  %v3975_v38 = vld [vmem:[%s5303_s7 + $0x30] sm:$0xff] }
0x14ba   : > { %v3284_v23 = vsel %vm867_vm4, %v3282_v22, -inf }
0x14c2   : > { %3018 = vrot.lane.b32.xlu1 %v5034_v63, %s5348_s20 }
0x14e6   : > { %3285 = vmax.xlane.f32.xlu1 %v3284_v23 }
0x153a   : > { %v3001_v24 = vpop.xlane.xlu1 %3000 }
0x153b   : > { %v3003_v25 = vsub.f32 %v2995_v17, %v3001_v24 }
0x153c   : > { %v2998_v26 = vpop.xlane.xlu0 %2997 }
0x153d   : > { %v3006_v27 = vmul.f32 1.442695, %v3003_v25  ;;  %v3002_v28 = vsub.f32 %v2994_v19, %v2998_v26 }
0x153e   : > { %v3019_v34 = vpop.permute.xlu1 %3018 }
0x153f   : > { %4552 = vpow2.f32 %v3006_v27  ;;  %v3004_v29 = vmul.f32 1.442695, %v3002_v28 }
0x1541   : > { %4554 = vpow2.f32 %v3004_v29 }
0x154c   : > { %v4553_v30 = vpop.eup %4552 }
0x154d   : > { %v3011_v31 = vsel %vm871_vm3, %v4553_v30, 0.0 }
0x154e   : > { %v4555_v32 = vpop.eup %4554  ;;  %3012 = vadd.xlane.f32.xlu0 %v3011_v31 }
0x154f   : > { %v3008_v33 = vsel %vm867_vm4, %v4555_v32, 0.0 }
0x1552   : > { %3009 = vadd.xlane.f32.xlu0 %v3008_v33 }
0x1568   : > { %3020 = vrot.lane.b32.xlu0 %v5032_v59, %s5348_s20 }
0x156f   : > { %v3286_v36 = vpop.xlane.xlu1 %3285 }
0x1570   : > { %v3290_v39 = vsub.f32 %v3282_v22, %v3286_v36  ;;  %v4021_v36 = vld [vmem:[%s5307_s11 + $0x30] sm:$0xff] }
0x1572   : > { %v3292_v40 = vmul.f32 1.442695, %v3290_v39  ;;  %v4020_v39 = vld [vmem:[%s5307_s11 + $0x28] sm:$0xff] }
0x1574   : > { %4556 = vpow2.f32 %v3292_v40  ;;  %v4019_v40 = vld [vmem:[%s5307_s11 + $0x20] sm:$0xff] }
0x1581   : > { %v4557_v44 = vpop.eup %4556 }
0x1582   : > { %v3296_v45 = vsel %vm867_vm4, %v4557_v44, 0.0 }
0x1587   : > { %3288 = vmax.xlane.f32.xlu0 %v3287_v43 }
0x158b   : > { %3297 = vadd.xlane.f32.xlu0 %v3296_v45 }
0x15a1   : > { %3308 = vrot.lane.b32.xlu0 %v5032_v59, %s5349_s24 }
0x15d7   : > { %v3013_v46 = vpop.xlane.xlu0 %3012 }
0x15d8   : > { %4558 = vrcp.f32 %v3013_v46 }
0x15db   : > { %v3010_v47 = vpop.xlane.xlu0 %3009 }
0x15dc   : > { %4560 = vrcp.f32 %v3010_v47 }
0x15df   : > { %v3021_v48 = vpop.permute.xlu0 %3020 }
0x15e0   : > { %4392 = vmatprep.subr.msk.mxu1 %vm902_vm5, %v3021_v48 }
0x15e1   : > { %4393 = vmatpush3.msk.msra.mxu1 %vm902_vm5, %v3021_v48  ;;  %v4017_v48 = vld [vmem:[%s5305_s9 + $0x1] ss:$0 sm:$0xff] }
0x15e2   : > { %4394 = vmatprep.subr.mxu1 %v3019_v34 }
0x15e3   : > { %4395 = vmatpush3.msra.mxu1 %v3019_v34 }
0x15e4   : > { %4399 = vmatprep.subr.mxu1 %v3975_v38 }
0x15e5   : > { %v4559_v50 = vpop.eup %4558 }
0x15e6   : > { %v3017_v59 = vmul.f32 %v4559_v50, %v4553_v30 }
0x15e9   : > { %v4561_v51 = vpop.eup %4560 }
0x15ea   : > { %v3016_v52 = vmul.f32 %v4561_v51, %v4555_v32 }
0x15ec   : > { %4396 = vmatprep.mubr.msk.f32.mxu1 %vm867_vm4, %v3016_v52 }
0x15ed   : > { %4397 = vmatmul.mubr.msk.f32.vlgmr.msra.gmra.mxu1 %vm867_vm4, %v3017_v59  ;;  %v4018_v59 = vld [vmem:[%s5306_s10 + $0x1] ss:$0 sm:$0xff] }
0x15ee   : > { %4400 = vmatpush3.msra.mxu1 %v3975_v38 }
0x1610   : > { %v3289_v53 = vpop.xlane.xlu0 %3288 }
0x1611   : > { %v3291_v54 = vsub.f32 %v3283_v49, %v3289_v53 }
0x1613   : > { %v3294_v55 = vmul.f32 1.442695, %v3291_v54 }
0x1614   : > { %v3298_v57 = vpop.xlane.xlu0 %3297 }
0x1615   : > { %4562 = vpow2.f32 %v3294_v55 }
0x1616   : > { %4564 = vrcp.f32 %v3298_v57  ;;  %v4042_v57 = vld [vmem:[%s5309_s13 + $0xf8] sm:$0xff] }
0x1618   : > { %v3309_v58 = vpop.permute.xlu0 %3308 }
0x1619   : > { %4411 = vmatprep.subr.msk.mxu1 %vm902_vm5, %v3309_v58 }
0x1622   : > { %v4563_v61 = vpop.eup %4562 }
0x1623   : > { %v3299_v0 = vsel %vm871_vm3, %v4563_v61, 0.0  ;;  %v4565_v3 = vpop.eup %4564 }
0x1624   : > { %3300 = vadd.xlane.f32.xlu1 %v3299_v0  ;;  %v3304_v7 = vmul.f32 %v4565_v3, %v4557_v44  ;;  %v4039_v0 = vld [vmem:[%s5309_s13 + $0xe0] sm:$0xff]  ;;  %v4036_v3 = vld [vmem:[%s5309_s13 + $0xc8] sm:$0xff] }
0x1635   : > { %3306 = vrot.lane.b32.xlu1 %v5034_v63, %s5349_s24 }
0x16ad   : > { %v4398_v4 = vpop.f32.mrf.mxu1  ;;  %v3301_v5 = vpop.xlane.xlu1 %3300 }
0x16ae   : > { %4566 = vrcp.f32 %v3301_v5  ;;  %v4034_v5 = vld [vmem:[%s5309_s13 + $0xb8] sm:$0xff] }
0x16af   : > { %v3097_v6 = vpop.f32.mrf.mxu1 }
0x16b0   : > { %4401 = vmatprep.mubr.msk.f32.mxu1 %vm773_vm2, %v3097_v6  ;;  %v4033_v6 = vld [vmem:[%s5309_s13 + $0xb0] sm:$0xff] }
0x16b1   : > { %4402 = vmatmul.mubr.msk.f32.vlgmr.msra.gmra.mxu1 %vm773_vm2, %v4398_v4  ;;  %v3307_v8 = vpop.permute.xlu1 %3306  ;;  %v4035_v4 = vld [vmem:[%s5309_s13 + $0xc0] sm:$0xff] }
0x16b2   : > { %4412 = vmatpush3.msk.msra.mxu1 %vm902_vm5, %v3309_v58  ;;  %4415 = vmatprep.mubr.msk.f32.mxu1 %vm867_vm4, %v3304_v7  ;;  %v4041_v58 = vld [vmem:[%s5309_s13 + $0xf0] sm:$0xff]  ;;  %v4032_v7 = vld [vmem:[%s5309_s13 + $0xa8] sm:$0xff] }
0x16b3   : > { %4413 = vmatprep.subr.mxu1 %v3307_v8 }
0x16b4   : > { %4414 = vmatpush3.msra.mxu1 %v3307_v8  ;;  %v4031_v8 = vld [vmem:[%s5309_s13 + $0xa0] sm:$0xff] }
0x16b5   : > { %4418 = vmatprep.subr.mxu1 %v3976_v62 }
0x16bb   : > { %v4567_v63 = vpop.eup %4566 }
0x16bc   : > { %v3305_v60 = vmul.f32 %v4567_v63, %v4563_v61  ;;  %v4040_v61 = vld [vmem:[%s5309_s13 + $0xe8] sm:$0xff]  ;;  %v4030_v63 = vld [vmem:[%s5309_s13 + $0x98] sm:$0xff] }
0x16be   : > { %4416 = vmatmul.mubr.msk.f32.vlgmr.msra.gmra.mxu1 %vm867_vm4, %v3305_v60  ;;  %v4029_v60 = vld [vmem:[%s5309_s13 + $0x90] sm:$0xff] }
0x16bf   : > { %4419 = vmatpush3.msra.mxu1 %v3976_v62  ;;  %v4028_v62 = vld [vmem:[%s5309_s13 + $0x88] sm:$0xff] }
0x16c0   : > { %4434 = vmatprep.subr.mxu1 %v4042_v57 }
0x1771   : > { %v4403_v10 = vpop.f32.mrf.mxu1 }
0x1772   : > { %v3188_v14 = vadd.f32 %v4403_v10, %v2898_v9  ;;  %v4027_v9 = vld [vmem:[%s5309_s13 + $0x80] sm:$0xff] }
0x1773   : > { %v3178_v15 = vpop.f32.mrf.mxu1  ;;  %v4024_v10 = vld [vmem:[%s5308_s12 + $0x1] ss:$0 sm:$0xff] }
0x1774   : > { %v3187_v16 = vadd.f32 %v3178_v15, %v2893_v13 }
0x177e   : > { %v4417_v17 = vpop.f32.mrf.mxu1 }
0x1780   : > { %v3385_v18 = vpop.f32.mrf.mxu1 }
0x1781   : > { %4420 = vmatprep.mubr.msk.f32.mxu1 %vm773_vm2, %v3385_v18 }
0x1782   : > { %4421 = vmatmul.mubr.msk.f32.vlgmr.msra.gmra.mxu1 %vm773_vm2, %v4417_v17 }
0x1783   : > { %4435 = vmatpush3.msra.mxu1 %v4042_v57 }
0x1784   : > { %4436 = vmatprep.subr.mxu1 %v4041_v58 }
0x1785   : > { %4437 = vmatpush3.msra.mxu1 %v4041_v58  ;;  %v4047_v58 = vld [vmem:[%s5311_s15 + $0x1] ss:$0 sm:$0xff] }
0x1786   : > { %4438 = vmatprep.subr.mxu1 %v4040_v61 }
0x1787   : > { %4439 = vmatpush3.msra.mxu1 %v4040_v61 }
0x1788   : > { %4440 = vmatprep.subr.mxu1 %v4039_v0 }
0x1789   : > { %4441 = vmatpush3.msra.mxu1 %v4039_v0 }
0x178a   : > { %4442 = vmatprep.subr.mxu1 %v4038_v1 }
0x178b   : > { %4443 = vmatpush3.msra.mxu1 %v4038_v1  ;;  %v4048_v1 = vld [vmem:[%s5312_s16 + $0x1] ss:$0 sm:$0xff] }
0x178c   : > { %4444 = vmatprep.subr.mxu1 %v4037_v2 }
0x178d   : > { %4445 = vmatpush3.msra.mxu1 %v4037_v2 }
0x178e   : > { %4446 = vmatprep.subr.mxu1 %v4036_v3 }
0x178f   : > { %4447 = vmatpush3.msra.mxu1 %v4036_v3 }
0x1790   : > { %4448 = vmatprep.subr.mxu1 %v4035_v4 }
0x1791   : > { %4449 = vmatpush3.msra.mxu1 %v4035_v4 }
0x1792   : > { %4450 = vmatprep.subr.mxu1 %v4034_v5 }
0x1793   : > { %4451 = vmatpush3.msra.mxu1 %v4034_v5 }
0x1794   : > { %4452 = vmatprep.subr.mxu1 %v4033_v6 }
0x1795   : > { %4453 = vmatpush3.msra.mxu1 %v4033_v6 }
0x1796   : > { %4454 = vmatprep.subr.mxu1 %v4032_v7 }
0x1797   : > { %4455 = vmatpush3.msra.mxu1 %v4032_v7 }
0x1798   : > { %4456 = vmatprep.subr.mxu1 %v4031_v8 }
0x1799   : > { %4457 = vmatpush3.msra.mxu1 %v4031_v8 }
0x179a   : > { %4458 = vmatprep.subr.mxu1 %v4030_v63 }
0x179b   : > { %4459 = vmatpush3.msra.mxu1 %v4030_v63 }
0x179c   : > { %4460 = vmatprep.subr.mxu1 %v4029_v60 }
0x179d   : > { %4461 = vmatpush3.msra.mxu1 %v4029_v60 }
0x179e   : > { %4462 = vmatprep.subr.mxu1 %v4028_v62 }
0x179f   : > { %4463 = vmatpush3.msra.mxu1 %v4028_v62 }
0x17a0   : > { %4464 = vmatprep.subr.mxu1 %v4027_v9 }
0x17a1   : > { %4465 = vmatpush3.msra.mxu1 %v4027_v9 }
0x1842   : > { %v4422_v19 = vpop.f32.mrf.mxu1 }
0x1843   : > { %v3476_v35 = vadd.f32 %v4422_v19, %v3188_v14 }
0x1844   : > { %v3466_v20 = vpop.f32.mrf.mxu1 }
0x1845   : > { %v3486_v11 = vadd.f32 %v4014_v37, %v3476_v35  ;;  %v3475_v21 = vadd.f32 %v3466_v20, %v3187_v16 }
0x1847   : > { %v3485_v22 = vadd.f32 %v4014_v37, %v3475_v21  ;;  %v3488_v12 = vadd.f32 %v3486_v11, %v5023_v42 }
0x1849   : > { %v3496_v23 = vsel %vm629_vm1, %v3488_v12, 0.0  ;;  %v3487_v24 = vadd.f32 %v3485_v22, %v5021_v56  ;;  %v4022_v56 = vld [vmem:[%s5307_s11 + $0x38] sm:$0xff] }
0x184a   : > { %3497 = vadd.xlane.f32.xlu0 %v3496_v23  ;;  %4423 = vmatprep.subr.mxu0 %v4022_v56 }
0x184b   : > { %v3493_v25 = vsel %vm625_vm0, %v3487_v24, 0.0  ;;  %4424 = vmatpush3.msra.mxu0 %v4022_v56 }
0x184c   : > { %3494 = vadd.xlane.f32.xlu1 %v3493_v25  ;;  %4425 = vmatprep.subr.mxu0 %v4021_v36 }
0x184d   : > { %4426 = vmatpush3.msra.mxu0 %v4021_v36 }
0x184e   : > { %4427 = vmatprep.subr.mxu0 %v4020_v39 }
0x184f   : > { %4428 = vmatpush3.msra.mxu0 %v4020_v39 }
0x1850   : > { %4429 = vmatprep.subr.mxu0 %v4019_v40 }
0x1851   : > { %4430 = vmatpush3.msra.mxu0 %v4019_v40 }
0x18d3   : > { %v3498_v26 = vpop.xlane.xlu0 %3497 }
0x18d4   : > { %v3500_v27 = vmul.f32 0.03125, %v3498_v26 }
0x18d5   : > { %v3495_v28 = vpop.xlane.xlu1 %3494 }
0x18d6   : > { %v3502_v29 = vsub.f32 %v3488_v12, %v3500_v27  ;;  %v3499_v30 = vmul.f32 0.03125, %v3495_v28 }
0x18d8   : > { %v3501_v31 = vsub.f32 %v3487_v24, %v3499_v30  ;;  %v3504_v32 = vmul.f32 %v3502_v29, %v3502_v29 }
0x18da   : > { %v3508_v33 = vsel %vm629_vm1, %v3504_v32, 0.0  ;;  %v3503_v34 = vmul.f32 %v3501_v31, %v3501_v31 }
0x18db   : > { %3509 = vadd.xlane.f32.xlu1 %v3508_v33 }
0x18dc   : > { %v3505_v42 = vsel %vm625_vm0, %v3503_v34, 0.0 }
0x18dd   : > { %3506 = vadd.xlane.f32.xlu0 %v3505_v42 }
0x1964   : > { %v3510_v41 = vpop.xlane.xlu1 %3509 }
0x1965   : > { %v3512_v49 = vmul.f32 0.03125, %v3510_v41 }
0x1966   : > { %v3507_v43 = vpop.xlane.xlu0 %3506 }
0x1967   : > { %v3514_v44 = vadd.f32 1e-05, %v3512_v49  ;;  %v3511_v45 = vmul.f32 0.03125, %v3507_v43 }
0x1969   : > { %4568 = vrsqrt.f32 %v3514_v44  ;;  %v3513_v46 = vadd.f32 1e-05, %v3511_v45 }
0x196b   : > { %4570 = vrsqrt.f32 %v3513_v46 }
0x1976   : > { %v4569_v47 = vpop.eup %4568 }
0x1977   : > { %v3518_v38 = vmul.f32 %v4569_v47, %v3502_v29 }
0x1978   : > { %v4571_v50 = vpop.eup %4570 }
0x1979   : > { %v3517_v51 = vmul.f32 %v4571_v50, %v3501_v31  ;;  %v3526_v52 = vmul.f32 %v4017_v48, %v3518_v38  ;;  %v4044_v31 = vld [vmem:[%s5310_s14 + $0x1] ss:$0 sm:$0xff] }
0x197b   : > { %v3525_v53 = vmul.f32 %v4017_v48, %v3517_v51  ;;  %v5204_v55 = vadd.f32 %v4018_v59, %v3526_v52 }
0x197d   : > { %v5202_v54 = vadd.f32 %v4018_v59, %v3525_v53 }
0x197f   : > { %4431 = vmatprep.mubr.msk.f32.mxu0 %vm625_vm0, %v5202_v54 }
0x1980   : > { %4432 = vmatmul.mubr.msk.f32.vlgmr.msra.gmra.mxu0 %vm625_vm0, %v5204_v55 }
0x1a40   : > { %v4433_v13 = vpop.f32.mrf.mxu0 }
0x1a41   : > { %v3626_v14 = vadd.f32 %v4433_v13, %v4024_v10 }
0x1a42   : > { %v3620_v15 = vpop.f32.mrf.mxu0 }
0x1a43   : > { %v3630_v16 = vmul.f32 %v3626_v14, %v3626_v14  ;;  %v3621_v17 = vadd.f32 %v4024_v10, %v3620_v15 }
0x1a45   : > { %v3632_v18 = vmul.f32 %v3630_v16, %v3626_v14  ;;  %v3629_v19 = vmul.f32 %v3621_v17, %v3621_v17 }
0x1a47   : > { %v3634_v37 = vmul.f32 0.044715, %v3632_v18  ;;  %v3631_v35 = vmul.f32 %v3629_v19, %v3621_v17 }
0x1a49   : > { %v3636_v20 = vadd.f32 %v3634_v37, %v3626_v14  ;;  %v3633_v11 = vmul.f32 0.044715, %v3631_v35 }
0x1a4b   : > { %v3638_v21 = vmul.f32 0.7978846, %v3636_v20  ;;  %v3635_v22 = vadd.f32 %v3633_v11, %v3621_v17 }
0x1a4d   : > { %4572 = vtanh.f32 %v3638_v21  ;;  %v3637_v12 = vmul.f32 0.7978846, %v3635_v22  ;;  %v4049_v22 = vld [vmem:[%s5313_s17] ss:$0 sm:$0xff] }
0x1a4f   : > { %4574 = vtanh.f32 %v3637_v12 }
0x1a5a   : > { %v4573_v23 = vpop.eup %4572 }
0x1a5b   : > { %v3642_v24 = vadd.f32 1.0, %v4573_v23 }
0x1a5c   : > { %v4575_v25 = vpop.eup %4574 }
0x1a5d   : > { %v3641_v26 = vadd.f32 1.0, %v4575_v25  ;;  %v3644_v27 = vmul.f32 0.5, %v3642_v24  ;;  %v4050_v24 = vld [vmem:[%s5314_s18] ss:$0 sm:$0xff] }
0x1a5f   : > { %v3643_v28 = vmul.f32 0.5, %v3641_v26  ;;  %v3646_v30 = vmul.f32 %v3644_v27, %v3626_v14 }
0x1a61   : > { %v3645_v29 = vmul.f32 %v3643_v28, %v3621_v17 }
0x1a63   : > { %4466 = vmatprep.mubr.f32.mxu1 %v3645_v29 }
0x1a64   : > { %4467 = vmatmul.mubr.f32.vlgmr.msra.gmra.mxu1 %v3646_v30 }
0x1b24   : > { %v4468_v32 = vpop.f32.mrf.mxu1 }
0x1b25   : > { %v3744_v33 = vadd.f32 %v4468_v32, %v4044_v31 }
0x1b26   : > { %v3738_v34 = vpop.f32.mrf.mxu1 }
0x1b27   : > { %v3739_v42 = vadd.f32 %v4044_v31, %v3738_v34  ;;  %v3748_v56 = vadd.f32 %v3744_v33, %v5204_v55 }
0x1b29   : > { %v3756_v36 = vsel %vm629_vm1, %v3748_v56, 0.0  ;;  %v3747_v39 = vadd.f32 %v3739_v42, %v5202_v54 }
0x1b2a   : > { %3757 = vadd.xlane.f32.xlu1 %v3756_v36 }
0x1b2b   : > { %v3753_v40 = vsel %vm625_vm0, %v3747_v39, 0.0 }
0x1b2c   : > { %3754 = vadd.xlane.f32.xlu0 %v3753_v40 }
0x1bb3   : > { %v3758_v41 = vpop.xlane.xlu1 %3757 }
0x1bb4   : > { %v3760_v49 = vmul.f32 0.03125, %v3758_v41 }
0x1bb5   : > { %v3755_v43 = vpop.xlane.xlu0 %3754 }
0x1bb6   : > { %v3762_v44 = vsub.f32 %v3748_v56, %v3760_v49  ;;  %v3759_v45 = vmul.f32 0.03125, %v3755_v43 }
0x1bb8   : > { %v3761_v46 = vsub.f32 %v3747_v39, %v3759_v45  ;;  %v3764_v47 = vmul.f32 %v3762_v44, %v3762_v44 }
0x1bba   : > { %v3768_v48 = vsel %vm629_vm1, %v3764_v47, 0.0  ;;  %v3763_v38 = vmul.f32 %v3761_v46, %v3761_v46 }
0x1bbb   : > { %3769 = vadd.xlane.f32.xlu1 %v3768_v48 }
0x1bbc   : > { %v3765_v50 = vsel %vm625_vm0, %v3763_v38, 0.0 }
0x1bbd   : > { %3766 = vadd.xlane.f32.xlu0 %v3765_v50 }
0x1c44   : > { %v3770_v51 = vpop.xlane.xlu1 %3769 }
0x1c45   : > { %v3772_v52 = vmul.f32 0.03125, %v3770_v51 }
0x1c46   : > { %v3767_v59 = vpop.xlane.xlu0 %3766 }
0x1c47   : > { %v3774_v53 = vadd.f32 1e-05, %v3772_v52  ;;  %v3771_v54 = vmul.f32 0.03125, %v3767_v59 }
0x1c49   : > { %4576 = vrsqrt.f32 %v3774_v53  ;;  %v3773_v55 = vadd.f32 1e-05, %v3771_v54 }
0x1c4b   : > { %4578 = vrsqrt.f32 %v3773_v55 }
0x1c56   : > { %v4577_v57 = vpop.eup %4576 }
0x1c57   : > { %v3778_v61 = vmul.f32 %v4577_v57, %v3762_v44 }
0x1c58   : > { %v4579_v0 = vpop.eup %4578 }
0x1c59   : > { %v3786_v2 = vmul.f32 %v4047_v58, %v3778_v61  ;;  %v3777_v3 = vmul.f32 %v4579_v0, %v3761_v46 }
0x1c5b   : > { %v3794_v4 = vadd.f32 %v4048_v1, %v3786_v2  ;;  %v3785_v5 = vmul.f32 %v4047_v58, %v3777_v3 }
0x1c5d   : > { %v3800_v6 = vsel %vm629_vm1, %v3794_v4, 0.0  ;;  %v3793_v7 = vadd.f32 %v4048_v1, %v3785_v5 }
0x1c5e   : > { %3801 = vadd.xlane.f32.xlu1 %v3800_v6 }
0x1c5f   : > { %v3797_v8 = vsel %vm625_vm0, %v3793_v7, 0.0 }
0x1c60   : > { %3798 = vadd.xlane.f32.xlu0 %v3797_v8 }
0x1ce7   : > { %v3802_v63 = vpop.xlane.xlu1 %3801 }
0x1ce8   : > { %v3804_v60 = vmul.f32 0.03125, %v3802_v63 }
0x1ce9   : > { %v3799_v62 = vpop.xlane.xlu0 %3798 }
0x1cea   : > { %v3806_v9 = vsub.f32 %v3794_v4, %v3804_v60  ;;  %v3803_v10 = vmul.f32 0.03125, %v3799_v62 }
0x1cec   : > { %v3805_v13 = vsub.f32 %v3793_v7, %v3803_v10  ;;  %v3808_v14 = vmul.f32 %v3806_v9, %v3806_v9 }
0x1cee   : > { %v3812_v15 = vsel %vm629_vm1, %v3808_v14, 0.0  ;;  %v3807_v16 = vmul.f32 %v3805_v13, %v3805_v13 }
0x1cef   : > { %3813 = vadd.xlane.f32.xlu1 %v3812_v15 }
0x1cf0   : > { %v3809_v17 = vsel %vm625_vm0, %v3807_v16, 0.0 }
0x1cf1   : > { %3810 = vadd.xlane.f32.xlu0 %v3809_v17 }
0x1d78   : > { %v3814_v18 = vpop.xlane.xlu1 %3813 }
0x1d79   : > { %v3816_v19 = vmul.f32 0.03125, %v3814_v18 }
0x1d7a   : > { %v3811_v37 = vpop.xlane.xlu0 %3810 }
0x1d7b   : > { %v3818_v35 = vadd.f32 1e-05, %v3816_v19  ;;  %v3815_v20 = vmul.f32 0.03125, %v3811_v37 }
0x1d7d   : > { %4580 = vrsqrt.f32 %v3818_v35  ;;  %v3817_v11 = vadd.f32 1e-05, %v3815_v20 }
0x1d7f   : > { %4582 = vrsqrt.f32 %v3817_v11 }
0x1d8a   : > { %v4581_v21 = vpop.eup %4580 }
0x1d8b   : > { %v3822_v12 = vmul.f32 %v4581_v21, %v3806_v9 }
0x1d8c   : > { %v4583_v23 = vpop.eup %4582 }
0x1d8d   : > { %v3830_v25 = vmul.f32 %v4049_v22, %v3822_v12  ;;  %v3821_v26 = vmul.f32 %v4583_v23, %v3805_v13 }
0x1d8f   : > { %v3838_v27 = vadd.f32 %v4050_v24, %v3830_v25  ;;  %v3829_v28 = vmul.f32 %v4049_v22, %v3821_v26 }
0x1d91   : > { %3840 = vst.msk [vmem:[%s616_s26 + $0x8] sm:$0x3f] %vm629_vm1, %v3838_v27  ;;  %v3837_v29 = vadd.f32 %v4050_v24, %v3829_v28 }
0x1d93   : > { %3839 = vst.msk [vmem:[%s616_s26] sm:$0xff] %vm625_vm0, %v3837_v29 }
0x1d94 PF: > { %s29_s0 = sadd.s32 1, %s4591_s0  }
0x1d95   : > { %p26_p4 = scmp.ge.s32.totalorder %s29_s0, 4  }
0x1d97   :  { %28 = sbr.rel (!%p26_p4) target bundleno = 5 (0x5), region = 141 }

</bundles_post_ra>
